<compile_context>
chip_gen: v7x
topology: tpu7x:2x2x1
jax: 0.10.0
libtpu: 0.0.40
codegen_flags: <defaults>
</compile_context>

<pallas_src>
import functools

import jax
import jax.numpy as jnp
from jax import lax
from jax.experimental import pallas as pl
from jax.experimental.pallas import tpu as pltpu

EPS = 1e-5
N_PARAMS = 12  # number of parameter arrays fed to the kernel (see init_params)

# Row indices in the packed (8, 1024) gamma/beta slabs, and their channel widths.
BN_STN1, BN_STN2, BN_STN3, BN_STN4, BN_STN5, BN_F1, BN_F2, BN_F3 = range(8)
BN_WIDTH = (64, 128, 1024, 512, 256, 64, 128, 1024)


def pointnetfeat_kernel(B, N, x_ref,
                        w_s1, w_s2, w_s3, w_fc1, w_fc2, w_fc3, b_fc3,
                        w_f1, w_f2, w_f3, gamma_ref, beta_ref,
                        gfeat_ref, trans9_ref):
  rows = B * N

  def bn_act(y, bn_idx, relu):
    # Training-mode BatchNorm1d (biased variance), fused to one scale/shift apply.
    # Stats in one pass (sum / sum-of-squares), f32 accumulation, guarded against
    # cancellation with max(var, 0).
    c = y.shape[-1]
    inv_n = 1.0 / float(y.shape[0])
    s = jnp.sum(y, axis=0, keepdims=True)                    # (1, C)
    ss = jnp.sum(y * y, axis=0, keepdims=True)               # (1, C)
    mean = s * inv_n
    var = jnp.maximum(ss * inv_n - mean * mean, 0.0)
    gamma = gamma_ref[bn_idx:bn_idx + 1, 0:c]                 # (1, C)
    beta = beta_ref[bn_idx:bn_idx + 1, 0:c]                   # (1, C)
    scale = gamma * lax.rsqrt(var + EPS)                      # EUP rsqrt (free slot)
    shift = beta - mean * scale
    out = y * scale + shift                                   # single VPU sweep
    return jnp.maximum(out, 0.0) if relu else out

  def conv_bn(h, w_ref, bn_idx, relu=True):
    # 1x1 Conv1d / Linear == channel matmul. bf16 operands on the MXU, f32 acc.
    # Bias omitted: cancelled exactly by the BN mean subtraction.
    w = w_ref[...]
    y = jnp.dot(h.astype(w.dtype), w, preferred_element_type=jnp.float32)
    return bn_act(y, bn_idx, relu)

  def conv3_bn(h3, w_ref, bn_idx):
    # 3->64 layer as three VPU broadcast FMAs; a K=3 matmul would waste the MXU.
    w = w_ref[...]                                            # (3, 64) f32
    y = (h3[:, 0:1] * w[0:1, :]
         + h3[:, 1:2] * w[1:2, :]
         + h3[:, 2:3] * w[2:3, :])                            # (rows, 64)
    return bn_act(y, bn_idx, relu=True)

  x3 = x_ref[...]                                             # (B, N, 3) f32
  xf = x3.reshape(rows, 3)                                    # (B*N, 3)

  # ---------------- STN3d ----------------
  h = conv3_bn(xf, w_s1, BN_STN1)                             # (B*N, 64)
  h = conv_bn(h, w_s2, BN_STN2)                               # (B*N, 128)
  h = conv_bn(h, w_s3, BN_STN3)                               # (B*N, 1024)
  # torch.max(x, 2): max over points, per batch element (single XLU reduce).
  gmax = jnp.max(h.reshape(B, N, 1024), axis=1)               # (B, 1024)
  f = conv_bn(gmax, w_fc1, BN_STN4)                           # (B, 512)
  f = conv_bn(f, w_fc2, BN_STN5)                              # (B, 256)
  t = jnp.dot(f, w_fc3[...], preferred_element_type=jnp.float32) + b_fc3[...]  # (B, 9)
  # add flattened 3x3 identity [1,0,0,0,1,0,0,0,1]
  idx = lax.broadcasted_iota(jnp.int32, (1, 9), 1)
  iden = jnp.where(idx % 4 == 0, 1.0, 0.0).astype(t.dtype)
  t9 = t + iden                                               # (B, 9), row-major trans
  trans9_ref[...] = t9

  # -- apply transform: x2[b,n,:] = sum_c x[b,n,c] * trans[b,c,:]  (VPU FMAs) --
  r0 = jnp.expand_dims(t9[:, 0:3], 1)                         # (B, 1, 3)
  r1 = jnp.expand_dims(t9[:, 3:6], 1)
  r2 = jnp.expand_dims(t9[:, 6:9], 1)
  x2 = (x3[:, :, 0:1] * r0
        + x3[:, :, 1:2] * r1
        + x3[:, :, 2:3] * r2)                                 # (B, N, 3)
  x2f = x2.reshape(rows, 3)                                   # (B*N, 3)

  # ---------------- feature trunk ----------------
  h1 = conv3_bn(x2f, w_f1, BN_F1)                             # (B*N, 64)   (pointfeat)
  h2 = conv_bn(h1, w_f2, BN_F2)                               # (B*N, 128)
  h3 = conv_bn(h2, w_f3, BN_F3, relu=False)                   # (B*N, 1024)
  # torch.sum(x, 2): sum over points, per batch element.
  gfeat_ref[...] = jnp.sum(h3.reshape(B, N, 1024), axis=1)    # (B, 1024)


def pointnetfeat_forward(x_ncl, params):
  """x_ncl: (B, 3, N) float32, exactly like the PyTorch Conv1d input."""
  B, C, N = x_ncl.shape
  assert C == 3
  # TODO(synk): pad N to a multiple of 8 and mask the BN statistics / reductions
  #             to support arbitrary point counts.
  assert N % 8 == 0
  # plain-JAX glue: NCL -> (B, N, 3) channels-last layout for the kernel.
  x3 = jnp.transpose(x_ncl, (0, 2, 1))

  vmem = pl.BlockSpec(memory_space=pltpu.MemorySpace.VMEM)
  gfeat, trans9 = pl.pallas_call(
      functools.partial(pointnetfeat_kernel, B, N),
      out_shape=(jax.ShapeDtypeStruct((B, 1024), jnp.float32),
                 jax.ShapeDtypeStruct((B, 9), jnp.float32)),
      in_specs=[vmem] * (1 + len(params)),
      out_specs=(vmem, vmem),
      compiler_params=pltpu.CompilerParams(
          vmem_limit_bytes=48 * 1024 * 1024),  # headroom; still < v7x's 64 MiB
  )(x3, *params)

  trans = trans9.reshape(B, 3, 3)  # glue reshape
  return gfeat, trans              # == (x, trans) of the global_feat=True branch


def init_params(key):
  """Deterministic synthetic parameters matching the PyTorch module's shapes.

  Weights are stored pre-transposed as (Cin, Cout); the big matmul weights are
  kept in bf16 (MXU-native). Conv/fc biases preceding training-mode BN are
  dropped (exactly cancelled by the mean subtraction); only fc3's bias survives.
  BN gamma/beta are packed into two (8, 1024) slabs, one row per BN layer.
  """
  def nxt():
    nonlocal key
    key, sub = jax.random.split(key)
    return sub

  def w(cin, cout, dtype):
    return (jax.random.normal(nxt(), (cin, cout), jnp.float32)
            / jnp.sqrt(float(cin))).astype(dtype)

  gamma = jnp.zeros((8, 1024), jnp.float32)
  beta = jnp.zeros((8, 1024), jnp.float32)
  for i, c in enumerate(BN_WIDTH):
    g = 1.0 + 0.1 * jax.random.normal(nxt(), (c,), jnp.float32)
    b = 0.1 * jax.random.normal(nxt(), (c,), jnp.float32)
    gamma = gamma.at[i, 0:c].set(g)
    beta = beta.at[i, 0:c].set(b)

  params = [
      w(3, 64, jnp.float32),        # STN conv1 (VPU broadcast-FMA path)
      w(64, 128, jnp.bfloat16),     # STN conv2
      w(128, 1024, jnp.bfloat16),   # STN conv3
      w(1024, 512, jnp.bfloat16),   # STN fc1
      w(512, 256, jnp.bfloat16),    # STN fc2
      w(256, 9, jnp.float32),       # STN fc3
      0.05 * jax.random.normal(nxt(), (1, 9), jnp.float32),  # STN fc3 bias
      w(3, 64, jnp.float32),        # feat conv1 (VPU broadcast-FMA path)
      w(64, 128, jnp.bfloat16),     # feat conv2
      w(128, 1024, jnp.bfloat16),   # feat conv3
      gamma,                        # (8, 1024) gamma slab
      beta,                         # (8, 1024) beta slab
  ]
  assert len(params) == N_PARAMS
  return params


if __name__ == "__main__":
  key = jax.random.PRNGKey(0)
  pkey, xkey = jax.random.split(key)
  params = init_params(pkey)

  B, N = 2, 16
  x = jax.random.normal(xkey, (B, 3, N), jnp.float32)  # PyTorch NCL input

  gfeat, trans = jax.jit(pointnetfeat_forward)(x, params)
  jax.block_until_ready((gfeat, trans))

  assert gfeat.shape == (B, 1024) and trans.shape == (B, 3, 3)
  print("KERNEL_OK")
</pallas_src>

<mosaic_0001>
module attributes {stable_mosaic.version = 11 : i64} {
  func.func @pointnetfeat_kernel(%arg0: memref<2x16x3xf32, #tpu.memory_space<vmem>>, %arg1: memref<3x64xf32, #tpu.memory_space<vmem>>, %arg2: memref<64x128xbf16, #tpu.memory_space<vmem>>, %arg3: memref<128x1024xbf16, #tpu.memory_space<vmem>>, %arg4: memref<1024x512xbf16, #tpu.memory_space<vmem>>, %arg5: memref<512x256xbf16, #tpu.memory_space<vmem>>, %arg6: memref<256x9xf32, #tpu.memory_space<vmem>>, %arg7: memref<1x9xf32, #tpu.memory_space<vmem>>, %arg8: memref<3x64xf32, #tpu.memory_space<vmem>>, %arg9: memref<64x128xbf16, #tpu.memory_space<vmem>>, %arg10: memref<128x1024xbf16, #tpu.memory_space<vmem>>, %arg11: memref<8x1024xf32, #tpu.memory_space<vmem>>, %arg12: memref<8x1024xf32, #tpu.memory_space<vmem>>, %arg13: memref<2x1024xf32, #tpu.memory_space<vmem>>, %arg14: memref<2x9xf32, #tpu.memory_space<vmem>>) attributes {dimension_semantics = [], scalar_prefetch = 0 : i64, scratch_operands = 0 : i64, tpu.core_type = #tpu.core_type<tc>} {
    %c0 = arith.constant 0 : index
    %c0_0 = arith.constant 0 : index
    %c0_1 = arith.constant 0 : index
    %0 = vector.load %arg0[%c0, %c0_0, %c0_1] : memref<2x16x3xf32, #tpu.memory_space<vmem>>, vector<2x16x3xf32>
    %1 = vector.shape_cast %0 : vector<2x16x3xf32> to vector<32x3xf32>
    %c0_2 = arith.constant 0 : index
    %c0_3 = arith.constant 0 : index
    %2 = vector.load %arg1[%c0_2, %c0_3] : memref<3x64xf32, #tpu.memory_space<vmem>>, vector<3x64xf32>
    %3 = vector.extract_strided_slice %1 {offsets = [0, 0], sizes = [32, 1], strides = [1, 1]} : vector<32x3xf32> to vector<32x1xf32>
    %4 = vector.extract_strided_slice %2 {offsets = [0, 0], sizes = [1, 64], strides = [1, 1]} : vector<3x64xf32> to vector<1x64xf32>
    %5 = vector.broadcast %3 : vector<32x1xf32> to vector<32x64xf32>
    %6 = vector.broadcast %4 : vector<1x64xf32> to vector<32x64xf32>
    %7 = arith.mulf %5, %6 : vector<32x64xf32>
    %8 = vector.extract_strided_slice %1 {offsets = [0, 1], sizes = [32, 1], strides = [1, 1]} : vector<32x3xf32> to vector<32x1xf32>
    %9 = vector.extract_strided_slice %2 {offsets = [1, 0], sizes = [1, 64], strides = [1, 1]} : vector<3x64xf32> to vector<1x64xf32>
    %10 = vector.broadcast %8 : vector<32x1xf32> to vector<32x64xf32>
    %11 = vector.broadcast %9 : vector<1x64xf32> to vector<32x64xf32>
    %12 = arith.mulf %10, %11 : vector<32x64xf32>
    %13 = arith.addf %7, %12 : vector<32x64xf32>
    %14 = vector.extract_strided_slice %1 {offsets = [0, 2], sizes = [32, 1], strides = [1, 1]} : vector<32x3xf32> to vector<32x1xf32>
    %15 = vector.extract_strided_slice %2 {offsets = [2, 0], sizes = [1, 64], strides = [1, 1]} : vector<3x64xf32> to vector<1x64xf32>
    %16 = vector.broadcast %14 : vector<32x1xf32> to vector<32x64xf32>
    %17 = vector.broadcast %15 : vector<1x64xf32> to vector<32x64xf32>
    %18 = arith.mulf %16, %17 : vector<32x64xf32>
    %19 = arith.addf %13, %18 : vector<32x64xf32>
    %cst = arith.constant dense<0.000000e+00> : vector<64xf32>
    %20 = vector.multi_reduction <add>, %19, %cst [0] : vector<32x64xf32> to vector<64xf32>
    %21 = vector.shape_cast %20 : vector<64xf32> to vector<1x64xf32>
    %22 = arith.mulf %19, %19 : vector<32x64xf32>
    %cst_4 = arith.constant dense<0.000000e+00> : vector<64xf32>
    %23 = vector.multi_reduction <add>, %22, %cst_4 [0] : vector<32x64xf32> to vector<64xf32>
    %24 = vector.shape_cast %23 : vector<64xf32> to vector<1x64xf32>
    %cst_5 = arith.constant 3.125000e-02 : f32
    %25 = vector.broadcast %cst_5 : f32 to vector<1x64xf32>
    %26 = arith.mulf %21, %25 : vector<1x64xf32>
    %cst_6 = arith.constant 3.125000e-02 : f32
    %27 = vector.broadcast %cst_6 : f32 to vector<1x64xf32>
    %28 = arith.mulf %24, %27 : vector<1x64xf32>
    %29 = arith.mulf %26, %26 : vector<1x64xf32>
    %30 = arith.subf %28, %29 : vector<1x64xf32>
    %cst_7 = arith.constant 0.000000e+00 : f32
    %31 = vector.broadcast %cst_7 : f32 to vector<1x64xf32>
    %32 = arith.maximumf %30, %31 : vector<1x64xf32>
    %c0_8 = arith.constant 0 : index
    %c0_9 = arith.constant 0 : index
    %33 = vector.load %arg11[%c0_8, %c0_9] : memref<8x1024xf32, #tpu.memory_space<vmem>>, vector<1x64xf32>
    %c0_10 = arith.constant 0 : index
    %c0_11 = arith.constant 0 : index
    %34 = vector.load %arg12[%c0_10, %c0_11] : memref<8x1024xf32, #tpu.memory_space<vmem>>, vector<1x64xf32>
    %cst_12 = arith.constant 9.99999974E-6 : f32
    %35 = vector.broadcast %cst_12 : f32 to vector<1x64xf32>
    %36 = arith.addf %32, %35 : vector<1x64xf32>
    %37 = math.rsqrt %36 : vector<1x64xf32>
    %38 = arith.mulf %33, %37 : vector<1x64xf32>
    %39 = arith.mulf %26, %38 : vector<1x64xf32>
    %40 = arith.subf %34, %39 : vector<1x64xf32>
    %41 = vector.broadcast %38 : vector<1x64xf32> to vector<32x64xf32>
    %42 = arith.mulf %19, %41 : vector<32x64xf32>
    %43 = vector.broadcast %40 : vector<1x64xf32> to vector<32x64xf32>
    %44 = arith.addf %42, %43 : vector<32x64xf32>
    %cst_13 = arith.constant 0.000000e+00 : f32
    %45 = vector.broadcast %cst_13 : f32 to vector<32x64xf32>
    %46 = arith.maximumf %44, %45 : vector<32x64xf32>
    %c0_14 = arith.constant 0 : index
    %c0_15 = arith.constant 0 : index
    %47 = vector.load %arg2[%c0_14, %c0_15] : memref<64x128xbf16, #tpu.memory_space<vmem>>, vector<64x128xbf16>
    %48 = arith.truncf %46 : vector<32x64xf32> to vector<32x64xbf16>
    %cst_16 = arith.constant dense<0.000000e+00> : vector<32x128xf32>
    %49 = tpu.matmul %48, %47, %cst_16 {dimension_numbers = #tpu.dot_dimension_numbers<[1], [0], [0], [1], [0, 0, 1, 1], [], []>} : vector<32x64xbf16>, vector<64x128xbf16>, vector<32x128xf32> -> vector<32x128xf32>
    %cst_17 = arith.constant dense<0.000000e+00> : vector<128xf32>
    %50 = vector.multi_reduction <add>, %49, %cst_17 [0] : vector<32x128xf32> to vector<128xf32>
    %51 = vector.shape_cast %50 : vector<128xf32> to vector<1x128xf32>
    %52 = arith.mulf %49, %49 : vector<32x128xf32>
    %cst_18 = arith.constant dense<0.000000e+00> : vector<128xf32>
    %53 = vector.multi_reduction <add>, %52, %cst_18 [0] : vector<32x128xf32> to vector<128xf32>
    %54 = vector.shape_cast %53 : vector<128xf32> to vector<1x128xf32>
    %cst_19 = arith.constant 3.125000e-02 : f32
    %55 = vector.broadcast %cst_19 : f32 to vector<1x128xf32>
    %56 = arith.mulf %51, %55 : vector<1x128xf32>
    %cst_20 = arith.constant 3.125000e-02 : f32
    %57 = vector.broadcast %cst_20 : f32 to vector<1x128xf32>
    %58 = arith.mulf %54, %57 : vector<1x128xf32>
    %59 = arith.mulf %56, %56 : vector<1x128xf32>
    %60 = arith.subf %58, %59 : vector<1x128xf32>
    %cst_21 = arith.constant 0.000000e+00 : f32
    %61 = vector.broadcast %cst_21 : f32 to vector<1x128xf32>
    %62 = arith.maximumf %60, %61 : vector<1x128xf32>
    %c1 = arith.constant 1 : index
    %c0_22 = arith.constant 0 : index
    %63 = vector.load %arg11[%c1, %c0_22] : memref<8x1024xf32, #tpu.memory_space<vmem>>, vector<1x128xf32>
    %c1_23 = arith.constant 1 : index
    %c0_24 = arith.constant 0 : index
    %64 = vector.load %arg12[%c1_23, %c0_24] : memref<8x1024xf32, #tpu.memory_space<vmem>>, vector<1x128xf32>
    %cst_25 = arith.constant 9.99999974E-6 : f32
    %65 = vector.broadcast %cst_25 : f32 to vector<1x128xf32>
    %66 = arith.addf %62, %65 : vector<1x128xf32>
    %67 = math.rsqrt %66 : vector<1x128xf32>
    %68 = arith.mulf %63, %67 : vector<1x128xf32>
    %69 = arith.mulf %56, %68 : vector<1x128xf32>
    %70 = arith.subf %64, %69 : vector<1x128xf32>
    %71 = vector.broadcast %68 : vector<1x128xf32> to vector<32x128xf32>
    %72 = arith.mulf %49, %71 : vector<32x128xf32>
    %73 = vector.broadcast %70 : vector<1x128xf32> to vector<32x128xf32>
    %74 = arith.addf %72, %73 : vector<32x128xf32>
    %cst_26 = arith.constant 0.000000e+00 : f32
    %75 = vector.broadcast %cst_26 : f32 to vector<32x128xf32>
    %76 = arith.maximumf %74, %75 : vector<32x128xf32>
    %c0_27 = arith.constant 0 : index
    %c0_28 = arith.constant 0 : index
    %77 = vector.load %arg3[%c0_27, %c0_28] : memref<128x1024xbf16, #tpu.memory_space<vmem>>, vector<128x1024xbf16>
    %78 = arith.truncf %76 : vector<32x128xf32> to vector<32x128xbf16>
    %cst_29 = arith.constant dense<0.000000e+00> : vector<32x1024xf32>
    %79 = tpu.matmul %78, %77, %cst_29 {dimension_numbers = #tpu.dot_dimension_numbers<[1], [0], [0], [1], [0, 0, 1, 1], [], []>} : vector<32x128xbf16>, vector<128x1024xbf16>, vector<32x1024xf32> -> vector<32x1024xf32>
    %cst_30 = arith.constant dense<0.000000e+00> : vector<1024xf32>
    %80 = vector.multi_reduction <add>, %79, %cst_30 [0] : vector<32x1024xf32> to vector<1024xf32>
    %81 = vector.shape_cast %80 : vector<1024xf32> to vector<1x1024xf32>
    %82 = arith.mulf %79, %79 : vector<32x1024xf32>
    %cst_31 = arith.constant dense<0.000000e+00> : vector<1024xf32>
    %83 = vector.multi_reduction <add>, %82, %cst_31 [0] : vector<32x1024xf32> to vector<1024xf32>
    %84 = vector.shape_cast %83 : vector<1024xf32> to vector<1x1024xf32>
    %cst_32 = arith.constant 3.125000e-02 : f32
    %85 = vector.broadcast %cst_32 : f32 to vector<1x1024xf32>
    %86 = arith.mulf %81, %85 : vector<1x1024xf32>
    %cst_33 = arith.constant 3.125000e-02 : f32
    %87 = vector.broadcast %cst_33 : f32 to vector<1x1024xf32>
    %88 = arith.mulf %84, %87 : vector<1x1024xf32>
    %89 = arith.mulf %86, %86 : vector<1x1024xf32>
    %90 = arith.subf %88, %89 : vector<1x1024xf32>
    %cst_34 = arith.constant 0.000000e+00 : f32
    %91 = vector.broadcast %cst_34 : f32 to vector<1x1024xf32>
    %92 = arith.maximumf %90, %91 : vector<1x1024xf32>
    %c2 = arith.constant 2 : index
    %c0_35 = arith.constant 0 : index
    %93 = vector.load %arg11[%c2, %c0_35] : memref<8x1024xf32, #tpu.memory_space<vmem>>, vector<1x1024xf32>
    %c2_36 = arith.constant 2 : index
    %c0_37 = arith.constant 0 : index
    %94 = vector.load %arg12[%c2_36, %c0_37] : memref<8x1024xf32, #tpu.memory_space<vmem>>, vector<1x1024xf32>
    %cst_38 = arith.constant 9.99999974E-6 : f32
    %95 = vector.broadcast %cst_38 : f32 to vector<1x1024xf32>
    %96 = arith.addf %92, %95 : vector<1x1024xf32>
    %97 = math.rsqrt %96 : vector<1x1024xf32>
    %98 = arith.mulf %93, %97 : vector<1x1024xf32>
    %99 = arith.mulf %86, %98 : vector<1x1024xf32>
    %100 = arith.subf %94, %99 : vector<1x1024xf32>
    %101 = vector.broadcast %98 : vector<1x1024xf32> to vector<32x1024xf32>
    %102 = arith.mulf %79, %101 : vector<32x1024xf32>
    %103 = vector.broadcast %100 : vector<1x1024xf32> to vector<32x1024xf32>
    %104 = arith.addf %102, %103 : vector<32x1024xf32>
    %cst_39 = arith.constant 0.000000e+00 : f32
    %105 = vector.broadcast %cst_39 : f32 to vector<32x1024xf32>
    %106 = arith.maximumf %104, %105 : vector<32x1024xf32>
    %107 = vector.shape_cast %106 : vector<32x1024xf32> to vector<2x16x1024xf32>
    %cst_40 = arith.constant dense<0xFF800000> : vector<2x1024xf32>
    %108 = vector.multi_reduction <maximumf>, %107, %cst_40 [1] : vector<2x16x1024xf32> to vector<2x1024xf32>
    %c0_41 = arith.constant 0 : index
    %c0_42 = arith.constant 0 : index
    %109 = vector.load %arg4[%c0_41, %c0_42] : memref<1024x512xbf16, #tpu.memory_space<vmem>>, vector<1024x512xbf16>
    %110 = arith.truncf %108 : vector<2x1024xf32> to vector<2x1024xbf16>
    %cst_43 = arith.constant dense<0.000000e+00> : vector<2x512xf32>
    %111 = tpu.matmul %110, %109, %cst_43 {dimension_numbers = #tpu.dot_dimension_numbers<[1], [0], [0], [1], [0, 0, 1, 1], [], []>} : vector<2x1024xbf16>, vector<1024x512xbf16>, vector<2x512xf32> -> vector<2x512xf32>
    %cst_44 = arith.constant dense<0.000000e+00> : vector<512xf32>
    %112 = vector.multi_reduction <add>, %111, %cst_44 [0] : vector<2x512xf32> to vector<512xf32>
    %113 = vector.shape_cast %112 : vector<512xf32> to vector<1x512xf32>
    %114 = arith.mulf %111, %111 : vector<2x512xf32>
    %cst_45 = arith.constant dense<0.000000e+00> : vector<512xf32>
    %115 = vector.multi_reduction <add>, %114, %cst_45 [0] : vector<2x512xf32> to vector<512xf32>
    %116 = vector.shape_cast %115 : vector<512xf32> to vector<1x512xf32>
    %cst_46 = arith.constant 5.000000e-01 : f32
    %117 = vector.broadcast %cst_46 : f32 to vector<1x512xf32>
    %118 = arith.mulf %113, %117 : vector<1x512xf32>
    %cst_47 = arith.constant 5.000000e-01 : f32
    %119 = vector.broadcast %cst_47 : f32 to vector<1x512xf32>
    %120 = arith.mulf %116, %119 : vector<1x512xf32>
    %121 = arith.mulf %118, %118 : vector<1x512xf32>
    %122 = arith.subf %120, %121 : vector<1x512xf32>
    %cst_48 = arith.constant 0.000000e+00 : f32
    %123 = vector.broadcast %cst_48 : f32 to vector<1x512xf32>
    %124 = arith.maximumf %122, %123 : vector<1x512xf32>
    %c3 = arith.constant 3 : index
    %c0_49 = arith.constant 0 : index
    %125 = vector.load %arg11[%c3, %c0_49] : memref<8x1024xf32, #tpu.memory_space<vmem>>, vector<1x512xf32>
    %c3_50 = arith.constant 3 : index
    %c0_51 = arith.constant 0 : index
    %126 = vector.load %arg12[%c3_50, %c0_51] : memref<8x1024xf32, #tpu.memory_space<vmem>>, vector<1x512xf32>
    %cst_52 = arith.constant 9.99999974E-6 : f32
    %127 = vector.broadcast %cst_52 : f32 to vector<1x512xf32>
    %128 = arith.addf %124, %127 : vector<1x512xf32>
    %129 = math.rsqrt %128 : vector<1x512xf32>
    %130 = arith.mulf %125, %129 : vector<1x512xf32>
    %131 = arith.mulf %118, %130 : vector<1x512xf32>
    %132 = arith.subf %126, %131 : vector<1x512xf32>
    %133 = vector.broadcast %130 : vector<1x512xf32> to vector<2x512xf32>
    %134 = arith.mulf %111, %133 : vector<2x512xf32>
    %135 = vector.broadcast %132 : vector<1x512xf32> to vector<2x512xf32>
    %136 = arith.addf %134, %135 : vector<2x512xf32>
    %cst_53 = arith.constant 0.000000e+00 : f32
    %137 = vector.broadcast %cst_53 : f32 to vector<2x512xf32>
    %138 = arith.maximumf %136, %137 : vector<2x512xf32>
    %c0_54 = arith.constant 0 : index
    %c0_55 = arith.constant 0 : index
    %139 = vector.load %arg5[%c0_54, %c0_55] : memref<512x256xbf16, #tpu.memory_space<vmem>>, vector<512x256xbf16>
    %140 = arith.truncf %138 : vector<2x512xf32> to vector<2x512xbf16>
    %cst_56 = arith.constant dense<0.000000e+00> : vector<2x256xf32>
    %141 = tpu.matmul %140, %139, %cst_56 {dimension_numbers = #tpu.dot_dimension_numbers<[1], [0], [0], [1], [0, 0, 1, 1], [], []>} : vector<2x512xbf16>, vector<512x256xbf16>, vector<2x256xf32> -> vector<2x256xf32>
    %cst_57 = arith.constant dense<0.000000e+00> : vector<256xf32>
    %142 = vector.multi_reduction <add>, %141, %cst_57 [0] : vector<2x256xf32> to vector<256xf32>
    %143 = vector.shape_cast %142 : vector<256xf32> to vector<1x256xf32>
    %144 = arith.mulf %141, %141 : vector<2x256xf32>
    %cst_58 = arith.constant dense<0.000000e+00> : vector<256xf32>
    %145 = vector.multi_reduction <add>, %144, %cst_58 [0] : vector<2x256xf32> to vector<256xf32>
    %146 = vector.shape_cast %145 : vector<256xf32> to vector<1x256xf32>
    %cst_59 = arith.constant 5.000000e-01 : f32
    %147 = vector.broadcast %cst_59 : f32 to vector<1x256xf32>
    %148 = arith.mulf %143, %147 : vector<1x256xf32>
    %cst_60 = arith.constant 5.000000e-01 : f32
    %149 = vector.broadcast %cst_60 : f32 to vector<1x256xf32>
    %150 = arith.mulf %146, %149 : vector<1x256xf32>
    %151 = arith.mulf %148, %148 : vector<1x256xf32>
    %152 = arith.subf %150, %151 : vector<1x256xf32>
    %cst_61 = arith.constant 0.000000e+00 : f32
    %153 = vector.broadcast %cst_61 : f32 to vector<1x256xf32>
    %154 = arith.maximumf %152, %153 : vector<1x256xf32>
    %c4 = arith.constant 4 : index
    %c0_62 = arith.constant 0 : index
    %155 = vector.load %arg11[%c4, %c0_62] : memref<8x1024xf32, #tpu.memory_space<vmem>>, vector<1x256xf32>
    %c4_63 = arith.constant 4 : index
    %c0_64 = arith.constant 0 : index
    %156 = vector.load %arg12[%c4_63, %c0_64] : memref<8x1024xf32, #tpu.memory_space<vmem>>, vector<1x256xf32>
    %cst_65 = arith.constant 9.99999974E-6 : f32
    %157 = vector.broadcast %cst_65 : f32 to vector<1x256xf32>
    %158 = arith.addf %154, %157 : vector<1x256xf32>
    %159 = math.rsqrt %158 : vector<1x256xf32>
    %160 = arith.mulf %155, %159 : vector<1x256xf32>
    %161 = arith.mulf %148, %160 : vector<1x256xf32>
    %162 = arith.subf %156, %161 : vector<1x256xf32>
    %163 = vector.broadcast %160 : vector<1x256xf32> to vector<2x256xf32>
    %164 = arith.mulf %141, %163 : vector<2x256xf32>
    %165 = vector.broadcast %162 : vector<1x256xf32> to vector<2x256xf32>
    %166 = arith.addf %164, %165 : vector<2x256xf32>
    %cst_66 = arith.constant 0.000000e+00 : f32
    %167 = vector.broadcast %cst_66 : f32 to vector<2x256xf32>
    %168 = arith.maximumf %166, %167 : vector<2x256xf32>
    %c0_67 = arith.constant 0 : index
    %c0_68 = arith.constant 0 : index
    %169 = vector.load %arg6[%c0_67, %c0_68] : memref<256x9xf32, #tpu.memory_space<vmem>>, vector<256x9xf32>
    %cst_69 = arith.constant dense<0.000000e+00> : vector<2x9xf32>
    %170 = tpu.matmul %168, %169, %cst_69 {dimension_numbers = #tpu.dot_dimension_numbers<[1], [0], [0], [1], [0, 0, 1, 1], [], []>} : vector<2x256xf32>, vector<256x9xf32>, vector<2x9xf32> -> vector<2x9xf32>
    %c0_70 = arith.constant 0 : index
    %c0_71 = arith.constant 0 : index
    %171 = vector.load %arg7[%c0_70, %c0_71] : memref<1x9xf32, #tpu.memory_space<vmem>>, vector<1x9xf32>
    %172 = vector.broadcast %171 : vector<1x9xf32> to vector<2x9xf32>
    %173 = arith.addf %170, %172 : vector<2x9xf32>
    %174 = tpu.iota {dimensions = array<i32: 1>} : vector<1x9xi32>
    %c4_i32 = arith.constant 4 : i32
    %c0_i32 = arith.constant 0 : i32
    %175 = arith.cmpi eq, %c4_i32, %c0_i32 : i32
    %c1_i32 = arith.constant 1 : i32
    %176 = arith.select %175, %c1_i32, %c4_i32 : i32
    %177 = vector.broadcast %176 : i32 to vector<1x9xi32>
    %178 = arith.remsi %174, %177 : vector<1x9xi32>
    %c0_i32_72 = arith.constant 0 : i32
    %179 = vector.broadcast %c0_i32_72 : i32 to vector<1x9xi32>
    %180 = arith.cmpi ne, %178, %179 : vector<1x9xi32>
    %c0_i32_73 = arith.constant 0 : i32
    %181 = vector.broadcast %c0_i32_73 : i32 to vector<1x9xi32>
    %182 = arith.cmpi slt, %178, %181 : vector<1x9xi32>
    %c0_i32_74 = arith.constant 0 : i32
    %183 = arith.cmpi slt, %176, %c0_i32_74 : i32
    %184 = vector.broadcast %183 : i1 to vector<1x9xi1>
    %185 = vector.broadcast %184 : vector<1x9xi1> to vector<1x9xi1>
    %186 = arith.xori %182, %185 : vector<1x9xi1>
    %187 = arith.andi %186, %180 : vector<1x9xi1>
    %188 = vector.broadcast %176 : i32 to vector<1x9xi32>
    %189 = arith.addi %178, %188 : vector<1x9xi32>
    %190 = arith.select %187, %189, %178 : vector<1x9xi1>, vector<1x9xi32>
    %c0_i32_75 = arith.constant 0 : i32
    %191 = vector.broadcast %c0_i32_75 : i32 to vector<1x9xi32>
    %192 = arith.cmpi eq, %190, %191 : vector<1x9xi32>
    %cst_76 = arith.constant 1.000000e+00 : f32
    %cst_77 = arith.constant 0.000000e+00 : f32
    %193 = vector.broadcast %cst_76 : f32 to vector<1x9xf32>
    %194 = vector.broadcast %cst_77 : f32 to vector<1x9xf32>
    %195 = arith.select %192, %193, %194 : vector<1x9xi1>, vector<1x9xf32>
    %196 = vector.broadcast %195 : vector<1x9xf32> to vector<2x9xf32>
    %197 = arith.addf %173, %196 : vector<2x9xf32>
    %c0_78 = arith.constant 0 : index
    %c0_79 = arith.constant 0 : index
    %198 = vector.load %arg14[%c0_78, %c0_79] : memref<2x9xf32, #tpu.memory_space<vmem>>, vector<2x9xf32>
    tpu.vector_store %arg14[%c0_78, %c0_79], %197 {strides = array<i32>} : memref<2x9xf32, #tpu.memory_space<vmem>>, vector<2x9xf32>,
    %199 = vector.extract_strided_slice %197 {offsets = [0, 0], sizes = [2, 3], strides = [1, 1]} : vector<2x9xf32> to vector<2x3xf32>
    %200 = vector.shape_cast %199 : vector<2x3xf32> to vector<2x1x3xf32>
    %201 = vector.extract_strided_slice %197 {offsets = [0, 3], sizes = [2, 3], strides = [1, 1]} : vector<2x9xf32> to vector<2x3xf32>
    %202 = vector.shape_cast %201 : vector<2x3xf32> to vector<2x1x3xf32>
    %203 = vector.extract_strided_slice %197 {offsets = [0, 6], sizes = [2, 3], strides = [1, 1]} : vector<2x9xf32> to vector<2x3xf32>
    %204 = vector.shape_cast %203 : vector<2x3xf32> to vector<2x1x3xf32>
    %205 = vector.extract_strided_slice %0 {offsets = [0, 0, 0], sizes = [2, 16, 1], strides = [1, 1, 1]} : vector<2x16x3xf32> to vector<2x16x1xf32>
    %206 = vector.broadcast %205 : vector<2x16x1xf32> to vector<2x16x3xf32>
    %207 = vector.broadcast %200 : vector<2x1x3xf32> to vector<2x16x3xf32>
    %208 = arith.mulf %206, %207 : vector<2x16x3xf32>
    %209 = vector.extract_strided_slice %0 {offsets = [0, 0, 1], sizes = [2, 16, 1], strides = [1, 1, 1]} : vector<2x16x3xf32> to vector<2x16x1xf32>
    %210 = vector.broadcast %209 : vector<2x16x1xf32> to vector<2x16x3xf32>
    %211 = vector.broadcast %202 : vector<2x1x3xf32> to vector<2x16x3xf32>
    %212 = arith.mulf %210, %211 : vector<2x16x3xf32>
    %213 = arith.addf %208, %212 : vector<2x16x3xf32>
    %214 = vector.extract_strided_slice %0 {offsets = [0, 0, 2], sizes = [2, 16, 1], strides = [1, 1, 1]} : vector<2x16x3xf32> to vector<2x16x1xf32>
    %215 = vector.broadcast %214 : vector<2x16x1xf32> to vector<2x16x3xf32>
    %216 = vector.broadcast %204 : vector<2x1x3xf32> to vector<2x16x3xf32>
    %217 = arith.mulf %215, %216 : vector<2x16x3xf32>
    %218 = arith.addf %213, %217 : vector<2x16x3xf32>
    %219 = vector.shape_cast %218 : vector<2x16x3xf32> to vector<32x3xf32>
    %c0_80 = arith.constant 0 : index
    %c0_81 = arith.constant 0 : index
    %220 = vector.load %arg8[%c0_80, %c0_81] : memref<3x64xf32, #tpu.memory_space<vmem>>, vector<3x64xf32>
    %221 = vector.extract_strided_slice %219 {offsets = [0, 0], sizes = [32, 1], strides = [1, 1]} : vector<32x3xf32> to vector<32x1xf32>
    %222 = vector.extract_strided_slice %220 {offsets = [0, 0], sizes = [1, 64], strides = [1, 1]} : vector<3x64xf32> to vector<1x64xf32>
    %223 = vector.broadcast %221 : vector<32x1xf32> to vector<32x64xf32>
    %224 = vector.broadcast %222 : vector<1x64xf32> to vector<32x64xf32>
    %225 = arith.mulf %223, %224 : vector<32x64xf32>
    %226 = vector.extract_strided_slice %219 {offsets = [0, 1], sizes = [32, 1], strides = [1, 1]} : vector<32x3xf32> to vector<32x1xf32>
    %227 = vector.extract_strided_slice %220 {offsets = [1, 0], sizes = [1, 64], strides = [1, 1]} : vector<3x64xf32> to vector<1x64xf32>
    %228 = vector.broadcast %226 : vector<32x1xf32> to vector<32x64xf32>
    %229 = vector.broadcast %227 : vector<1x64xf32> to vector<32x64xf32>
    %230 = arith.mulf %228, %229 : vector<32x64xf32>
    %231 = arith.addf %225, %230 : vector<32x64xf32>
    %232 = vector.extract_strided_slice %219 {offsets = [0, 2], sizes = [32, 1], strides = [1, 1]} : vector<32x3xf32> to vector<32x1xf32>
    %233 = vector.extract_strided_slice %220 {offsets = [2, 0], sizes = [1, 64], strides = [1, 1]} : vector<3x64xf32> to vector<1x64xf32>
    %234 = vector.broadcast %232 : vector<32x1xf32> to vector<32x64xf32>
    %235 = vector.broadcast %233 : vector<1x64xf32> to vector<32x64xf32>
    %236 = arith.mulf %234, %235 : vector<32x64xf32>
    %237 = arith.addf %231, %236 : vector<32x64xf32>
    %cst_82 = arith.constant dense<0.000000e+00> : vector<64xf32>
    %238 = vector.multi_reduction <add>, %237, %cst_82 [0] : vector<32x64xf32> to vector<64xf32>
    %239 = vector.shape_cast %238 : vector<64xf32> to vector<1x64xf32>
    %240 = arith.mulf %237, %237 : vector<32x64xf32>
    %cst_83 = arith.constant dense<0.000000e+00> : vector<64xf32>
    %241 = vector.multi_reduction <add>, %240, %cst_83 [0] : vector<32x64xf32> to vector<64xf32>
    %242 = vector.shape_cast %241 : vector<64xf32> to vector<1x64xf32>
    %cst_84 = arith.constant 3.125000e-02 : f32
    %243 = vector.broadcast %cst_84 : f32 to vector<1x64xf32>
    %244 = arith.mulf %239, %243 : vector<1x64xf32>
    %cst_85 = arith.constant 3.125000e-02 : f32
    %245 = vector.broadcast %cst_85 : f32 to vector<1x64xf32>
    %246 = arith.mulf %242, %245 : vector<1x64xf32>
    %247 = arith.mulf %244, %244 : vector<1x64xf32>
    %248 = arith.subf %246, %247 : vector<1x64xf32>
    %cst_86 = arith.constant 0.000000e+00 : f32
    %249 = vector.broadcast %cst_86 : f32 to vector<1x64xf32>
    %250 = arith.maximumf %248, %249 : vector<1x64xf32>
    %c5 = arith.constant 5 : index
    %c0_87 = arith.constant 0 : index
    %251 = vector.load %arg11[%c5, %c0_87] : memref<8x1024xf32, #tpu.memory_space<vmem>>, vector<1x64xf32>
    %c5_88 = arith.constant 5 : index
    %c0_89 = arith.constant 0 : index
    %252 = vector.load %arg12[%c5_88, %c0_89] : memref<8x1024xf32, #tpu.memory_space<vmem>>, vector<1x64xf32>
    %cst_90 = arith.constant 9.99999974E-6 : f32
    %253 = vector.broadcast %cst_90 : f32 to vector<1x64xf32>
    %254 = arith.addf %250, %253 : vector<1x64xf32>
    %255 = math.rsqrt %254 : vector<1x64xf32>
    %256 = arith.mulf %251, %255 : vector<1x64xf32>
    %257 = arith.mulf %244, %256 : vector<1x64xf32>
    %258 = arith.subf %252, %257 : vector<1x64xf32>
    %259 = vector.broadcast %256 : vector<1x64xf32> to vector<32x64xf32>
    %260 = arith.mulf %237, %259 : vector<32x64xf32>
    %261 = vector.broadcast %258 : vector<1x64xf32> to vector<32x64xf32>
    %262 = arith.addf %260, %261 : vector<32x64xf32>
    %cst_91 = arith.constant 0.000000e+00 : f32
    %263 = vector.broadcast %cst_91 : f32 to vector<32x64xf32>
    %264 = arith.maximumf %262, %263 : vector<32x64xf32>
    %c0_92 = arith.constant 0 : index
    %c0_93 = arith.constant 0 : index
    %265 = vector.load %arg9[%c0_92, %c0_93] : memref<64x128xbf16, #tpu.memory_space<vmem>>, vector<64x128xbf16>
    %266 = arith.truncf %264 : vector<32x64xf32> to vector<32x64xbf16>
    %cst_94 = arith.constant dense<0.000000e+00> : vector<32x128xf32>
    %267 = tpu.matmul %266, %265, %cst_94 {dimension_numbers = #tpu.dot_dimension_numbers<[1], [0], [0], [1], [0, 0, 1, 1], [], []>} : vector<32x64xbf16>, vector<64x128xbf16>, vector<32x128xf32> -> vector<32x128xf32>
    %cst_95 = arith.constant dense<0.000000e+00> : vector<128xf32>
    %268 = vector.multi_reduction <add>, %267, %cst_95 [0] : vector<32x128xf32> to vector<128xf32>
    %269 = vector.shape_cast %268 : vector<128xf32> to vector<1x128xf32>
    %270 = arith.mulf %267, %267 : vector<32x128xf32>
    %cst_96 = arith.constant dense<0.000000e+00> : vector<128xf32>
    %271 = vector.multi_reduction <add>, %270, %cst_96 [0] : vector<32x128xf32> to vector<128xf32>
    %272 = vector.shape_cast %271 : vector<128xf32> to vector<1x128xf32>
    %cst_97 = arith.constant 3.125000e-02 : f32
    %273 = vector.broadcast %cst_97 : f32 to vector<1x128xf32>
    %274 = arith.mulf %269, %273 : vector<1x128xf32>
    %cst_98 = arith.constant 3.125000e-02 : f32
    %275 = vector.broadcast %cst_98 : f32 to vector<1x128xf32>
    %276 = arith.mulf %272, %275 : vector<1x128xf32>
    %277 = arith.mulf %274, %274 : vector<1x128xf32>
    %278 = arith.subf %276, %277 : vector<1x128xf32>
    %cst_99 = arith.constant 0.000000e+00 : f32
    %279 = vector.broadcast %cst_99 : f32 to vector<1x128xf32>
    %280 = arith.maximumf %278, %279 : vector<1x128xf32>
    %c6 = arith.constant 6 : index
    %c0_100 = arith.constant 0 : index
    %281 = vector.load %arg11[%c6, %c0_100] : memref<8x1024xf32, #tpu.memory_space<vmem>>, vector<1x128xf32>
    %c6_101 = arith.constant 6 : index
    %c0_102 = arith.constant 0 : index
    %282 = vector.load %arg12[%c6_101, %c0_102] : memref<8x1024xf32, #tpu.memory_space<vmem>>, vector<1x128xf32>
    %cst_103 = arith.constant 9.99999974E-6 : f32
    %283 = vector.broadcast %cst_103 : f32 to vector<1x128xf32>
    %284 = arith.addf %280, %283 : vector<1x128xf32>
    %285 = math.rsqrt %284 : vector<1x128xf32>
    %286 = arith.mulf %281, %285 : vector<1x128xf32>
    %287 = arith.mulf %274, %286 : vector<1x128xf32>
    %288 = arith.subf %282, %287 : vector<1x128xf32>
    %289 = vector.broadcast %286 : vector<1x128xf32> to vector<32x128xf32>
    %290 = arith.mulf %267, %289 : vector<32x128xf32>
    %291 = vector.broadcast %288 : vector<1x128xf32> to vector<32x128xf32>
    %292 = arith.addf %290, %291 : vector<32x128xf32>
    %cst_104 = arith.constant 0.000000e+00 : f32
    %293 = vector.broadcast %cst_104 : f32 to vector<32x128xf32>
    %294 = arith.maximumf %292, %293 : vector<32x128xf32>
    %c0_105 = arith.constant 0 : index
    %c0_106 = arith.constant 0 : index
    %295 = vector.load %arg10[%c0_105, %c0_106] : memref<128x1024xbf16, #tpu.memory_space<vmem>>, vector<128x1024xbf16>
    %296 = arith.truncf %294 : vector<32x128xf32> to vector<32x128xbf16>
    %cst_107 = arith.constant dense<0.000000e+00> : vector<32x1024xf32>
    %297 = tpu.matmul %296, %295, %cst_107 {dimension_numbers = #tpu.dot_dimension_numbers<[1], [0], [0], [1], [0, 0, 1, 1], [], []>} : vector<32x128xbf16>, vector<128x1024xbf16>, vector<32x1024xf32> -> vector<32x1024xf32>
    %cst_108 = arith.constant dense<0.000000e+00> : vector<1024xf32>
    %298 = vector.multi_reduction <add>, %297, %cst_108 [0] : vector<32x1024xf32> to vector<1024xf32>
    %299 = vector.shape_cast %298 : vector<1024xf32> to vector<1x1024xf32>
    %300 = arith.mulf %297, %297 : vector<32x1024xf32>
    %cst_109 = arith.constant dense<0.000000e+00> : vector<1024xf32>
    %301 = vector.multi_reduction <add>, %300, %cst_109 [0] : vector<32x1024xf32> to vector<1024xf32>
    %302 = vector.shape_cast %301 : vector<1024xf32> to vector<1x1024xf32>
    %cst_110 = arith.constant 3.125000e-02 : f32
    %303 = vector.broadcast %cst_110 : f32 to vector<1x1024xf32>
    %304 = arith.mulf %299, %303 : vector<1x1024xf32>
    %cst_111 = arith.constant 3.125000e-02 : f32
    %305 = vector.broadcast %cst_111 : f32 to vector<1x1024xf32>
    %306 = arith.mulf %302, %305 : vector<1x1024xf32>
    %307 = arith.mulf %304, %304 : vector<1x1024xf32>
    %308 = arith.subf %306, %307 : vector<1x1024xf32>
    %cst_112 = arith.constant 0.000000e+00 : f32
    %309 = vector.broadcast %cst_112 : f32 to vector<1x1024xf32>
    %310 = arith.maximumf %308, %309 : vector<1x1024xf32>
    %c7 = arith.constant 7 : index
    %c0_113 = arith.constant 0 : index
    %311 = vector.load %arg11[%c7, %c0_113] : memref<8x1024xf32, #tpu.memory_space<vmem>>, vector<1x1024xf32>
    %c7_114 = arith.constant 7 : index
    %c0_115 = arith.constant 0 : index
    %312 = vector.load %arg12[%c7_114, %c0_115] : memref<8x1024xf32, #tpu.memory_space<vmem>>, vector<1x1024xf32>
    %cst_116 = arith.constant 9.99999974E-6 : f32
    %313 = vector.broadcast %cst_116 : f32 to vector<1x1024xf32>
    %314 = arith.addf %310, %313 : vector<1x1024xf32>
    %315 = math.rsqrt %314 : vector<1x1024xf32>
    %316 = arith.mulf %311, %315 : vector<1x1024xf32>
    %317 = arith.mulf %304, %316 : vector<1x1024xf32>
    %318 = arith.subf %312, %317 : vector<1x1024xf32>
    %319 = vector.broadcast %316 : vector<1x1024xf32> to vector<32x1024xf32>
    %320 = arith.mulf %297, %319 : vector<32x1024xf32>
    %321 = vector.broadcast %318 : vector<1x1024xf32> to vector<32x1024xf32>
    %322 = arith.addf %320, %321 : vector<32x1024xf32>
    %323 = vector.shape_cast %322 : vector<32x1024xf32> to vector<2x16x1024xf32>
    %cst_117 = arith.constant dense<0.000000e+00> : vector<2x1024xf32>
    %324 = vector.multi_reduction <add>, %323, %cst_117 [1] : vector<2x16x1024xf32> to vector<2x1024xf32>
    %c0_118 = arith.constant 0 : index
    %c0_119 = arith.constant 0 : index
    %325 = vector.load %arg13[%c0_118, %c0_119] : memref<2x1024xf32, #tpu.memory_space<vmem>>, vector<2x1024xf32>
    tpu.vector_store %arg13[%c0_118, %c0_119], %324 {strides = array<i32>} : memref<2x1024xf32, #tpu.memory_space<vmem>>, vector<2x1024xf32>,
    return
  }
}

</mosaic_0001>

<bundles_post_ra>
// kernel: pointnetfeat_forward.1
= control target key start
LH: loop header
LB: loop body
LE: loop exit
PB: predicated region body
PF: predicated region fallthrough
CT: control target
= control target key end

     0   :  { %20 = vsyncpa [#allocation3], 0  ;;  %s8859_s0 = inlined_call_operand.vmem [shape: f32[2,16,3], index: 0, kind: input, shape index: {}]   ;;  %s8860_s1 = inlined_call_operand.vmem [shape: f32[3,64], index: 1, kind: input, shape index: {}]   ;;  %s8861_s2 = inlined_call_operand.vmem [shape: bf16[64,128], index: 2, kind: input, shape index: {}]   ;;  %s8862_s3 = inlined_call_operand.hbm [shape: bf16[128,1024], index: 3, kind: input, shape index: {}]   ;;  %s8863_s4 = inlined_call_operand.hbm [shape: bf16[1024,512], index: 4, kind: input, shape index: {}]   ;;  %s8864_s5 = inlined_call_operand.hbm [shape: bf16[512,256], index: 5, kind: input, shape index: {}]   ;;  %s8865_s6 = inlined_call_operand.vmem [shape: f32[256,9], index: 6, kind: input, shape index: {}]   ;;  %s8866_s7 = inlined_call_operand.vmem [shape: f32[1,9], index: 7, kind: input, shape index: {}]   ;;  %s8867_s8 = inlined_call_operand.vmem [shape: f32[3,64], index: 8, kind: input, shape index: {}]   ;;  %s8868_s9 = inlined_call_operand.vmem [shape: bf16[64,128], index: 9, kind: input, shape index: {}]   ;;  %s8869_s10 = inlined_call_operand.hbm [shape: bf16[128,1024], index: 10, kind: input, shape index: {}]   ;;  %s8870_s11 = inlined_call_operand.vmem [shape: f32[8,1024], index: 11, kind: input, shape index: {}]   ;;  %s8871_s12 = inlined_call_operand.vmem [shape: f32[8,1024], index: 12, kind: input, shape index: {}]   ;;  %s8872_s13 = inlined_call_operand.hbm [shape: f32[2,1024], index: 13, kind: output, shape index: {0}]   ;;  %s8873_s14 = inlined_call_operand.vmem [shape: f32[2,9], index: 14, kind: output, shape index: {1}]  }
   0x1   :  { %21 = vsyncpa [#allocation6], 0 }
   0x2   :  { %22 = vsyncpa [#allocation9], 0 }
   0x3   :  { %23 = vsyncpa [#allocation4], 0  ;;  %s7507_s29 = smov [#allocation5]   ;;  %s7389_s17 = scalar_lea.hbm %s8863_s4, 32768 }
   0x4   :  { %s47_s30 = sshll.u32 %s7507_s29, 4  ;;  %p7390_p0 = scmp.ne.s32.totalorder %s8863_s4, %s7389_s17  ;;  %s48_s30 = int_to_ptr.vmem [resolvable:$true] %s47_s30 }
   0x5   :  { %p7393_p1 = scmp.lt.u32.totalorder %s7389_s17, %s8863_s4 }
   0x7   :  { %p7395_p2 = pnand %p7393_p1, %p7390_p0 }
   0x9   :  { %7398 = shalt.err (!%p7395_p2)
}
   0xa   :  { %s7399_s22 = scalar_lea.vmem %s48_s30, 32768  ;;  %p7404_p4 = scmp.lt.s32.totalorder %s48_s30, %s48_s30 }
   0xb   :  { %p7400_p3 = scmp.ne.s32.totalorder %s48_s30, %s7399_s22  ;;  %p7405_p5 = scmp.lt.s32.totalorder %s7399_s22, %s7399_s22 }
   0xd   :  { %p7406_p6 = por %p7405_p5, %p7404_p4 }
   0xf   :  { %p7407_p7 = pnand %p7406_p6, %p7400_p3 }
  0x11   :  { %7410 = shalt.err (!%p7407_p7)
}
  0x12   :  { %s7508_s23 = smov 256   ;;  %s7509_s24 = smov 16  }
  0x13   :  { %53 = dma.hbm_to_vmem [thread:$0]  %s8863_s4, 32768, %s48_s30, [#allocation6], %s7508_s23, %s7508_s23, %s7509_s24  }
  0x14   :  { %s7510_s27 = smov [#allocation2]   ;;  %s7411_s16 = scalar_lea.hbm %s8862_s3, 8192 }
  0x15   :  { %s35_s28 = sshll.u32 %s7510_s27, 4  ;;  %p7412_p8 = scmp.ne.s32.totalorder %s8862_s3, %s7411_s16  ;;  %s36_s28 = int_to_ptr.vmem [resolvable:$true] %s35_s28 }
  0x16   :  { %p7415_p9 = scmp.lt.u32.totalorder %s7411_s16, %s8862_s3 }
  0x18   :  { %p7417_p10 = pnand %p7415_p9, %p7412_p8 }
  0x1a   :  { %7420 = shalt.err (!%p7417_p10)
}
  0x1b   :  { %s7421_s21 = scalar_lea.vmem %s36_s28, 8192  ;;  %p7426_p12 = scmp.lt.s32.totalorder %s36_s28, %s36_s28 }
  0x1c   :  { %p7422_p11 = scmp.ne.s32.totalorder %s36_s28, %s7421_s21  ;;  %p7427_p13 = scmp.lt.s32.totalorder %s7421_s21, %s7421_s21 }
  0x1e   :  { %p7428_p0 = por %p7427_p13, %p7426_p12 }
  0x20   :  { %p7429_p1 = pnand %p7428_p0, %p7422_p11 }
  0x22   :  { %7432 = shalt.err (!%p7429_p1)
}
  0x23   :  { %s7511_s4 = smov 512   ;;  %s7512_s30 = smov 32  }
  0x24   :  { %41 = dma.hbm_to_vmem [thread:$0]  %s8862_s3, 8192, %s36_s28, [#allocation3], %s7511_s4, %s7511_s4, %s7512_s30  }
  0x25   :  { %s7513_s24 = smov [#allocation7]   ;;  %s7433_s29 = scalar_lea.hbm %s8864_s5, 8192 }
  0x26   :  { %s59_s25 = sshll.u32 %s7513_s24, 4  ;;  %p7434_p2 = scmp.ne.s32.totalorder %s8864_s5, %s7433_s29  ;;  %s60_s25 = int_to_ptr.vmem [resolvable:$true] %s59_s25 }
  0x27   :  { %p7437_p3 = scmp.lt.u32.totalorder %s7433_s29, %s8864_s5 }
  0x29   :  { %p7439_p4 = pnand %p7437_p3, %p7434_p2 }
  0x2b   :  { %7442 = shalt.err (!%p7439_p4)
}
  0x2c   :  { %s7443_s19 = scalar_lea.vmem %s60_s25, 8192  ;;  %p7448_p6 = scmp.lt.s32.totalorder %s60_s25, %s60_s25 }
  0x2d   :  { %p7444_p5 = scmp.ne.s32.totalorder %s60_s25, %s7443_s19  ;;  %p7449_p7 = scmp.lt.s32.totalorder %s7443_s19, %s7443_s19 }
  0x2f   :  { %p7450_p8 = por %p7449_p7, %p7448_p6 }
  0x31   :  { %p7451_p9 = pnand %p7450_p8, %p7444_p5 }
  0x33   :  { %7454 = shalt.err (!%p7451_p9)
}
  0x34   :  { %s7514_s3 = smov 128   ;;  %s7515_s28 = smov 8  }
  0x35   :  { %65 = dma.hbm_to_vmem [thread:$0]  %s8864_s5, 8192, %s60_s25, [#allocation6], %s7514_s3, %s7514_s3, %s7515_s28  }
  0x36   :  { %s7516_s22 = smov [#allocation8]   ;;  %s7455_s27 = scalar_lea.hbm %s8869_s10, 8192 }
  0x37   :  { %s79_s23 = sshll.u32 %s7516_s22, 4  ;;  %p7456_p10 = scmp.ne.s32.totalorder %s8869_s10, %s7455_s27  ;;  %s80_s23 = int_to_ptr.vmem [resolvable:$true] %s79_s23 }
  0x38   :  { %p7459_p11 = scmp.lt.u32.totalorder %s7455_s27, %s8869_s10 }
  0x3a   :  { %p7461_p12 = pnand %p7459_p11, %p7456_p10 }
  0x3c   :  { %7464 = shalt.err (!%p7461_p12)
}
  0x3d   :  { %s7465_s18 = scalar_lea.vmem %s80_s23, 8192  ;;  %p7470_p0 = scmp.lt.s32.totalorder %s80_s23, %s80_s23 }
  0x3e   :  { %p7466_p13 = scmp.ne.s32.totalorder %s80_s23, %s7465_s18  ;;  %p7471_p1 = scmp.lt.s32.totalorder %s7465_s18, %s7465_s18 }
  0x40   :  { %p7472_p2 = por %p7471_p1, %p7470_p0 }
  0x42   :  { %p7473_p3 = pnand %p7472_p2, %p7466_p13 }
  0x44   :  { %7476 = shalt.err (!%p7473_p3)
}
  0x45   :  { %85 = dma.hbm_to_vmem [thread:$0]  %s8869_s10, 8192, %s80_s23, [#allocation9], %s7511_s4, %s7511_s4, %s7512_s30  }
  0x46   :  { %7499 = dma.done.wait [#allocation3], 8192  }
  0x47   :  { %7500 = vsyncadd [#allocation3], 4294959104 }
  0x48   :  { %7501 = dma.done.wait [#allocation6], 40960  }
  0x49   :  { %7502 = vsyncadd [#allocation6], 4294926336 }
  0x4a   :  { %7503 = dma.done.wait [#allocation9], 8192  }
  0x4b   :  { %7504 = vsyncadd [#allocation9], 4294959104  ;;  %v8876_v0 = vmov 1   ;;  %v8879_v1 = vmov 0   ;;  %v103_v2 = vld [vmem:[%s8859_s0] sm:$0xff]  ;;  %v104_v3 = vld [vmem:[%s8859_s0 + $0x8] sm:$0xff]  ;;  %v8878_v11 = vlaneseq }
  0x4c   :  { %6831 = vset.pattern.permute.xlu1 %v8876_v0  ;;  %6830 = vset.pattern.permute.xlu0 %v8879_v1  ;;  %v105_v4 = vld [vmem:[%s8859_s0 + $0x10] sm:$0xff]  ;;  %v8874_v5 = vmov 2   ;;  %v106_v6 = vld [vmem:[%s8859_s0 + $0x18] sm:$0xff]  ;;  %v6849_v7 = vld [vmem:[%s8861_s2] sm:$0xff]   ;;  %vm192_vm0 = vcmask 523264   ;;  %vm1940_vm1 = vcmask 1041409  }
  0x4d   :  { %800 = vmatprep.mubr.bf16.mxu1 %v8879_v1  ;;  %137 = vperm.xlu1 %6831, %v103_v2   ;;  %v6850_v8 = vld [vmem:[%s8861_s2 + $0x8] sm:$0xff]   ;;  %v6851_v9 = vld [vmem:[%s8861_s2 + $0x10] sm:$0xff]   ;;  %v6852_v10 = vld [vmem:[%s8861_s2 + $0x18] sm:$0xff]   ;;  %v7694_v14 = vshrl.u32 %v8878_v11, 7  ;;  %vm3573_vm2 = vcmask 1041408   ;;  %vm4496_vm4 = vcmask 66560  }
  0x4e   :  { %110 = vperm.xlu0 %6830, %v103_v2   ;;  %6727 = vmatprep.subr.bf16.mxu0 %v6849_v7  ;;  %v107_v19 = vld [vmem:[%s8860_s1] sm:$0x7]  ;;  %vm6169_vm5 = vcmask 1043459   ;;  %vm6171_vm6 = vcmask 1045509   ;;  %vm6173_vm7 = vcmask 1047559  }
  0x4f   :  { %6728 = vmatpush3.bf16.msra.mxu0 %v6849_v7  ;;  %8927 = vst [vmem:[#allocation17_spill] sm:$0xff] %v7694_v14  ;;  %v7701_v17 = vsub.s32 1, %v7694_v14  ;;  %v7704_v18 = vsub.s32 0, %v7694_v14  ;;  %v7710_v20 = vsub.s32 2, %v7694_v14 }
  0x50   :  { %6729 = vmatprep.subr.bf16.mxu0 %v6850_v8 }
  0x51   :  { %141 = vperm.xlu1 %6831, %v104_v3   ;;  %8930 = vst [vmem:[#allocation20_spill] sm:$0xff] %v7701_v17  ;;  %v155_v23 = vrot.slane %v107_v19, %v7701_v17  ;;  %v131_v24 = vrot.slane %v107_v19, %v7704_v18  ;;  %v183_v25 = vrot.slane %v107_v19, %v7710_v20 }
  0x52   :  { %115 = vperm.xlu0 %6830, %v104_v3  }
  0x53   :  { %6730 = vmatpush3.bf16.msra.mxu0 %v6850_v8 }
  0x54   :  { %6731 = vmatprep.subr.bf16.mxu0 %v6851_v9 }
  0x55   :  { %145 = vperm.xlu1 %6831, %v105_v4  }
  0x56   :  { %120 = vperm.xlu0 %6830, %v105_v4  }
  0x57   :  { %6732 = vmatpush3.bf16.msra.mxu0 %v6851_v9 }
  0x58   :  { %6733 = vmatprep.subr.bf16.mxu0 %v6852_v10 }
  0x59   :  { %6833 = vset.pattern.permute.xlu1 %v8874_v5 }
  0x5a   :  { %6832 = vset.pattern.permute.xlu0 %v8874_v5  ;;  %169 = vperm.xlu1 %6833, %v104_v3  }
  0x5b   :  { %165 = vperm.xlu0 %6832, %v103_v2   ;;  %6734 = vmatpush3.bf16.msra.mxu0 %v6852_v10 }
  0x5e   :  { %6834 = vset.pattern.permute.xlu1 %v8879_v1 }
  0x5f   :  { %6835 = vset.pattern.permute.xlu0 %v8876_v0  ;;  %125 = vperm.xlu1 %6834, %v106_v6  }
  0x60   :  { %149 = vperm.xlu0 %6835, %v106_v6  }
  0x63   :  { %6836 = vset.pattern.permute.xlu1 %v8874_v5 }
  0x64   :  { %6837 = vset.pattern.permute.xlu0 %v8879_v1  ;;  %173 = vperm.xlu1 %6836, %v105_v4  }
  0x68   :  { %177 = vperm.xlu1 %6836, %v106_v6  }
  0x6c   :  { %6838 = vset.pattern.permute.xlu1 %v8879_v1 }
  0xcc   :  { %v7689_v12 = vpop.permute.xlu1 %137 }
  0xcd   :  { %8925 = vst [vmem:[#allocation15_spill] sm:$0xff] %v7689_v12  ;;  %v7691_v13 = vpop.permute.xlu0 %110  ;;  %v156_v26 = vmul.f32 %v155_v23, %v7689_v12 }
  0xce   :  { %8926 = vst [vmem:[#allocation16_spill] sm:$0xff] %v7691_v13  ;;  %v132_v27 = vmul.f32 %v131_v24, %v7691_v13 }
  0xd0   :  { %v7696_v15 = vpop.permute.xlu1 %141  ;;  %v160_v34 = vadd.f32 %v156_v26, %v132_v27 }
  0xd1   :  { %8928 = vst [vmem:[#allocation18_spill] sm:$0xff] %v7696_v15  ;;  %v7698_v16 = vpop.permute.xlu0 %115  ;;  %v157_v28 = vmul.f32 %v155_v23, %v7696_v15 }
  0xd2   :  { %8929 = vst [vmem:[#allocation19_spill] sm:$0xff] %v7698_v16  ;;  %v133_v29 = vmul.f32 %v131_v24, %v7698_v16 }
  0xd4   :  { %v7712_v21 = vpop.permute.xlu1 %145  ;;  %v161_v35 = vadd.f32 %v157_v28, %v133_v29 }
  0xd5   :  { %8931 = vst [vmem:[#allocation21_spill] sm:$0xff] %v7712_v21  ;;  %v7714_v22 = vpop.permute.xlu0 %120  ;;  %v158_v39 = vmul.f32 %v155_v23, %v7712_v21 }
  0xd6   :  { %8932 = vst [vmem:[#allocation22_spill] sm:$0xff] %v7714_v22  ;;  %v134_v40 = vmul.f32 %v131_v24, %v7714_v22 }
  0xd8   :  { %v162_v45 = vadd.f32 %v158_v39, %v134_v40 }
  0xd9   :  { %v7723_v30 = vpop.permute.xlu1 %169 }
  0xda   :  { %8933 = vst [vmem:[#allocation23_spill] sm:$0xff] %v7723_v30  ;;  %v7725_v31 = vpop.permute.xlu0 %165  ;;  %v185_v32 = vmul.f32 %v183_v25, %v7723_v30 }
  0xdb   :  { %8934 = vst [vmem:[#allocation24_spill] sm:$0xff] %v7725_v31  ;;  %v184_v33 = vmul.f32 %v183_v25, %v7725_v31 }
  0xdc   :  { %v189_v37 = vadd.f32 %v185_v32, %v161_v35 }
  0xdd   :  { %v188_v38 = vadd.f32 %v184_v33, %v160_v34 }
  0xde   :  { %v7729_v36 = vpop.permute.xlu1 %125  ;;  %v207_v42 = vmul.f32 %v189_v37, %v189_v37  ;;  %v194_v49 = vsel %vm192_vm0, %v189_v37, 0.0 }
  0xdf   :  { %8935 = vst [vmem:[#allocation25_spill] sm:$0xff] %v7729_v36  ;;  %v7733_v41 = vpop.permute.xlu0 %149  ;;  %v206_v43 = vmul.f32 %v188_v38, %v188_v38  ;;  %v135_v46 = vmul.f32 %v131_v24, %v7729_v36  ;;  %v193_v50 = vsel %vm192_vm0, %v188_v38, 0.0 }
  0xe0   :  { %8936 = vst [vmem:[#allocation26_spill] sm:$0xff] %v7733_v41  ;;  %v159_v47 = vmul.f32 %v155_v23, %v7733_v41  ;;  %v211_v52 = vsel %vm192_vm0, %v207_v42, 0.0  ;;  %v195_v59 = vadd.f32 %v194_v49, %v193_v50 }
  0xe1   :  { %v210_v53 = vsel %vm192_vm0, %v206_v43, 0.0 }
  0xe2   :  { %v163_v55 = vadd.f32 %v159_v47, %v135_v46  ;;  %v212_v62 = vadd.f32 %v211_v52, %v210_v53 }
  0xe3   :  { %v7735_v44 = vpop.permute.xlu1 %173 }
  0xe4   :  { %8937 = vst [vmem:[#allocation27_spill] sm:$0xff] %v7735_v44  ;;  %v186_v48 = vmul.f32 %v183_v25, %v7735_v44 }
  0xe6   :  { %v190_v51 = vadd.f32 %v186_v48, %v162_v45  ;;  %v228_v45 = vld [vmem:[%s8870_s11] ss:$0 sm:$0xff] }
  0xe7   :  { %v7744_v54 = vpop.permute.xlu1 %177  ;;  %v229_v48 = vld [vmem:[%s8871_s12] ss:$0 sm:$0xff] }
  0xe8   :  { %8938 = vst [vmem:[#allocation28_spill] sm:$0xff] %v7744_v54  ;;  %v196_v56 = vsel %vm192_vm0, %v190_v51, 0.0  ;;  %v208_v57 = vmul.f32 %v190_v51, %v190_v51  ;;  %v187_v58 = vmul.f32 %v183_v25, %v7744_v54 }
  0xe9   :  { %v197_v63 = vadd.f32 %v196_v56, %v195_v59 }
  0xea   :  { %v213_v60 = vsel %vm192_vm0, %v208_v57, 0.0  ;;  %v191_v61 = vadd.f32 %v187_v58, %v163_v55 }
  0xeb   :  { %v214_v4 = vadd.f32 %v213_v60, %v212_v62 }
  0xec   :  { %v198_v2 = vsel %vm192_vm0, %v191_v61, 0.0  ;;  %v209_v3 = vmul.f32 %v191_v61, %v191_v61 }
  0xed   :  { %v199_v6 = vadd.f32 %v198_v2, %v197_v63 }
  0xee   :  { %v215_v7 = vsel %vm192_vm0, %v209_v3, 0.0 }
  0xef   :  { %v200_v8 = vrot.slane %v199_v6, 4  ;;  %v216_v9 = vadd.f32 %v215_v7, %v214_v4  ;;  %v387_v7 = vld [vmem:[#allocation2 + $0x28] sm:$0xff] }
  0xf1   :  { %v201_v10 = vadd.f32 %v200_v8, %v199_v6  ;;  %v217_v19 = vrot.slane %v216_v9, 4 }
  0xf3   :  { %v202_v23 = vrot.slane %v201_v10, 2  ;;  %v218_v24 = vadd.f32 %v217_v19, %v216_v9  ;;  %v390_v19 = vld [vmem:[#allocation2 + $0x40] sm:$0xff] }
  0xf5   :  { %v203_v25 = vadd.f32 %v202_v23, %v201_v10  ;;  %v219_v26 = vrot.slane %v218_v24, 2  ;;  %v394_v23 = vld [vmem:[#allocation2 + $0x60] sm:$0xff] }
  0xf7   :  { %v204_v27 = vrot.slane %v203_v25, 1  ;;  %v220_v28 = vadd.f32 %v219_v26, %v218_v24  ;;  %v391_v24 = vld [vmem:[#allocation2 + $0x48] sm:$0xff] }
  0xf8   :  { %v395_v26 = vld [vmem:[#allocation2 + $0x68] sm:$0xff] }
  0xf9   :  { %v205_v29 = vadd.f32 %v204_v27, %v203_v25  ;;  %v221_v32 = vrot.slane %v220_v28, 1  ;;  %v6222_v25 = vcombine.high %v390_v19, %v394_v23  ;;  %v6223_v27 = vcombine.low %v391_v24, %v395_v26 }
  0xfb   :  { %v222_v33 = vadd.f32 %v221_v32, %v220_v28  ;;  %v223_v34 = vmul.f32 0.03125, %v205_v29  ;;  %v6224_v28 = vcombine.high %v391_v24, %v395_v26  ;;  %v6221_v29 = vcombine.low %v390_v19, %v394_v23  ;;  %v398_v32 = vld [vmem:[#allocation2 + $0x80] sm:$0xff]  ;;  %v435_v19 = vld [vmem:[#allocation2 + $0x1a8] sm:$0xff] }
  0xfc   :  { %v438_v26 = vld [vmem:[#allocation2 + $0x1c0] sm:$0xff] }
  0xfd   :  { %v224_v35 = vmul.f32 0.03125, %v222_v33  ;;  %v225_v39 = vmul.f32 %v223_v34, %v223_v34  ;;  %v402_v33 = vld [vmem:[#allocation2 + $0xa0] sm:$0xff] }
  0xff   :  { %v226_v40 = vsub.f32 %v224_v35, %v225_v39  ;;  %v403_v35 = vld [vmem:[#allocation2 + $0xa8] sm:$0xff]  ;;  %v6230_v39 = vcombine.high %v398_v32, %v402_v33 }
 0x101   :  { %v227_v42 = vmax.f32 %v226_v40, 0.0 }
 0x103   :  { %v230_v43 = vadd.f32 1e-05, %v227_v42 }
 0x105   :  { %7337 = vrsqrt.f32 %v230_v43  ;;  %v6229_v43 = vcombine.low %v398_v32, %v402_v33  ;;  %v443_v32 = vld [vmem:[#allocation2 + $0x1e8] sm:$0xff] }
 0x10f   :  { %v7338_v46 = vpop.eup %7337 }
 0x110   :  { %v232_v47 = vmul.f32 %v7338_v46, %v228_v45  ;;  %v406_v45 = vld [vmem:[#allocation2 + $0xc0] sm:$0xff] }
 0x111   :  { %v410_v46 = vld [vmem:[#allocation2 + $0xe0] sm:$0xff] }
 0x112   :  { %v233_v49 = vmul.f32 %v232_v47, %v223_v34  ;;  %v238_v50 = vmul.f32 %v232_v47, %v191_v61  ;;  %v235_v53 = vmul.f32 %v232_v47, %v188_v38  ;;  %v236_v55 = vmul.f32 %v232_v47, %v189_v37  ;;  %v382_v61 = vld [vmem:[#allocation2] sm:$0xff]  ;;  %v383_v37 = vld [vmem:[#allocation2 + $0x8] sm:$0xff] }
 0x113   :  { %v237_v56 = vmul.f32 %v232_v47, %v190_v51  ;;  %v386_v38 = vld [vmem:[#allocation2 + $0x20] sm:$0xff]  ;;  %v6215_v8 = vcombine.low %v383_v37, %v387_v7  ;;  %v6216_v9 = vcombine.high %v383_v37, %v387_v7  ;;  %v399_v34 = vld [vmem:[#allocation2 + $0x88] sm:$0xff] }
 0x114   :  { %v234_v52 = vsub.f32 %v229_v48, %v233_v49  ;;  %v6214_v51 = vcombine.high %v382_v61, %v386_v38  ;;  %v6213_v10 = vcombine.low %v382_v61, %v386_v38  ;;  %v6231_v40 = vcombine.low %v399_v34, %v403_v35  ;;  %v407_v47 = vld [vmem:[#allocation2 + $0xc8] sm:$0xff]  ;;  %v430_v7 = vld [vmem:[#allocation2 + $0x180] sm:$0xff] }
 0x115   :  { %821 = vmatprep.subr.bf16.mxu0 %v6216_v9  ;;  %v6232_v42 = vcombine.high %v399_v34, %v403_v35  ;;  %v6238_v48 = vcombine.high %v406_v45, %v410_v46  ;;  %v411_v49 = vld [vmem:[#allocation2 + $0xe8] sm:$0xff] }
 0x116   :  { %v239_v57 = vadd.f32 %v235_v53, %v234_v52  ;;  %v240_v58 = vadd.f32 %v236_v55, %v234_v52  ;;  %v241_v59 = vadd.f32 %v237_v56, %v234_v52  ;;  %v242_v60 = vadd.f32 %v238_v50, %v234_v52  ;;  %768 = vmatprep.subr.bf16.mxu1 %v6214_v51  ;;  %v414_v55 = vld [vmem:[#allocation2 + $0x100] sm:$0xff]  ;;  %v427_v61 = vld [vmem:[#allocation2 + $0x168] sm:$0xff] }
 0x117   :  { %769 = vmatpush1.bf16.msra.mxu1 %v6213_v10  ;;  %v6239_v50 = vcombine.low %v407_v47, %v411_v49  ;;  %v6240_v52 = vcombine.high %v407_v47, %v411_v49  ;;  %v6237_v53 = vcombine.low %v406_v45, %v410_v46  ;;  %v418_v56 = vld [vmem:[#allocation2 + $0x120] sm:$0xff]  ;;  %v431_v9 = vld [vmem:[#allocation2 + $0x188] sm:$0xff]  ;;  %v7770_v46 = vld [vmem:[#allocation2 + $0x38] sm:$0xff] }
 0x118   :  { %v243_v62 = vmax.f32 %v239_v57, 0.0  ;;  %v244_v63 = vmax.f32 %v240_v58, 0.0  ;;  %v245_v2 = vmax.f32 %v241_v59, 0.0  ;;  %v246_v3 = vmax.f32 %v242_v60, 0.0  ;;  %770 = vmatprep.subr.bf16.mxu1 %v6222_v25  ;;  %v415_v57 = vld [vmem:[#allocation2 + $0x108] sm:$0xff] }
 0x119   :  { %v6246_v58 = vcombine.high %v414_v55, %v418_v56  ;;  %v419_v59 = vld [vmem:[#allocation2 + $0x128] sm:$0xff]  ;;  %v6263_v23 = vcombine.low %v431_v9, %v435_v19  ;;  %v6264_v24 = vcombine.high %v431_v9, %v435_v19 }
 0x11a   :  { %v255_v4 = vpack.c.bf16 %v244_v63, %v243_v62  ;;  %v256_v6 = vpack.c.bf16 %v246_v3, %v245_v2  ;;  %v6247_v60 = vcombine.low %v415_v57, %v419_v59  ;;  %v6248_v62 = vcombine.high %v415_v57, %v419_v59  ;;  %v422_v2 = vld [vmem:[#allocation2 + $0x140] sm:$0xff] }
 0x11b   :  { %771 = vmatpush1.bf16.msra.mxu1 %v6221_v29  ;;  %v6245_v63 = vcombine.low %v414_v55, %v418_v56  ;;  %v426_v3 = vld [vmem:[#allocation2 + $0x160] sm:$0xff] }
 0x11c   :  { %6735 = vmatprep.mubr.msk.bf16.mxu0 %vm192_vm0, %v255_v4  ;;  %772 = vmatprep.subr.bf16.mxu1 %v6230_v39  ;;  %v423_v4 = vld [vmem:[#allocation2 + $0x148] sm:$0xff]  ;;  %v6253_v51 = vcombine.low %v422_v2, %v426_v3  ;;  %v7760_v39 = vld [vmem:[#allocation2 + $0x10] sm:$0xff] }
 0x11d   :  { %6736 = vmatmul.mubr.msk.bf16.vlgmr.msra.gmra.mrb[0].mxu0 %vm192_vm0, %v256_v6  ;;  %v6254_v6 = vcombine.high %v422_v2, %v426_v3  ;;  %v6255_v38 = vcombine.low %v423_v4, %v427_v61  ;;  %v6256_v37 = vcombine.high %v423_v4, %v427_v61 }
 0x11e   :  { %853 = vmatprep.mubr.bf16.mxu0 %v8879_v1  ;;  %822 = vmatpush1.bf16.msra.mxu0 %v6215_v8  ;;  %v434_v8 = vld [vmem:[#allocation2 + $0x1a0] sm:$0xff] }
 0x11f   :  { %823 = vmatprep.subr.bf16.mxu0 %v6224_v28  ;;  %773 = vmatpush1.bf16.msra.mxu1 %v6229_v43  ;;  %v6262_v10 = vcombine.high %v430_v7, %v434_v8  ;;  %v6261_v25 = vcombine.low %v430_v7, %v434_v8  ;;  %v439_v28 = vld [vmem:[#allocation2 + $0x1c8] sm:$0xff] }
 0x120   :  { %774 = vmatprep.subr.bf16.mxu1 %v6238_v48  ;;  %v6271_v33 = vcombine.low %v439_v28, %v443_v32  ;;  %v6272_v34 = vcombine.high %v439_v28, %v443_v32  ;;  %v363_v32 = vld [vmem:[%s8870_s11 + $0x1] ss:$0 sm:$0xff] }
 0x122   :  { %824 = vmatpush1.bf16.msra.mxu0 %v6223_v27  ;;  %v442_v27 = vld [vmem:[#allocation2 + $0x1e0] sm:$0xff] }
 0x123   :  { %825 = vmatprep.subr.bf16.mxu0 %v6232_v42  ;;  %775 = vmatpush1.bf16.msra.mxu1 %v6237_v53  ;;  %v6270_v29 = vcombine.high %v438_v26, %v442_v27  ;;  %v6269_v35 = vcombine.low %v438_v26, %v442_v27  ;;  %v7764_v42 = vld [vmem:[#allocation2 + $0x18] sm:$0xff] }
 0x124   :  { %776 = vmatprep.subr.bf16.mxu1 %v6246_v58  ;;  %v6219_v47 = vcombine.low %v7764_v42, %v7770_v46  ;;  %v6220_v48 = vcombine.high %v7764_v42, %v7770_v46  ;;  %v416_v46 = vld [vmem:[#allocation2 + $0x110] sm:$0xff] }
 0x126   :  { %826 = vmatpush1.bf16.msra.mxu0 %v6231_v40  ;;  %v7762_v40 = vld [vmem:[#allocation2 + $0x30] sm:$0xff] }
 0x127   :  { %827 = vmatprep.subr.bf16.mxu0 %v6240_v52  ;;  %777 = vmatpush1.bf16.msra.mxu1 %v6245_v63  ;;  %v6217_v43 = vcombine.low %v7760_v39, %v7762_v40  ;;  %v6218_v45 = vcombine.high %v7760_v39, %v7762_v40 }
 0x128   :  { %778 = vmatprep.subr.bf16.mxu1 %v6254_v6 }
 0x12a   :  { %828 = vmatpush1.bf16.msra.mxu0 %v6239_v50 }
 0x12b   :  { %829 = vmatprep.subr.bf16.mxu0 %v6248_v62  ;;  %779 = vmatpush1.bf16.msra.mxu1 %v6253_v51 }
 0x12c   :  { %780 = vmatprep.subr.bf16.mxu1 %v6262_v10 }
 0x12e   :  { %830 = vmatpush1.bf16.msra.mxu0 %v6247_v60 }
 0x12f   :  { %831 = vmatprep.subr.bf16.mxu0 %v6256_v37  ;;  %781 = vmatpush1.bf16.msra.mxu1 %v6261_v25 }
 0x130   :  { %782 = vmatprep.subr.bf16.mxu1 %v6270_v29 }
 0x132   :  { %832 = vmatpush1.bf16.msra.mxu0 %v6255_v38 }
 0x133   :  { %833 = vmatprep.subr.bf16.mxu0 %v6264_v24  ;;  %783 = vmatpush1.bf16.msra.mxu1 %v6269_v35  ;;  %v364_v35 = vld [vmem:[%s8871_s12 + $0x1] ss:$0 sm:$0xff] }
 0x134   :  { %874 = vmatprep.subr.bf16.mxu1 %v6218_v45 }
 0x136   :  { %834 = vmatpush1.bf16.msra.mxu0 %v6263_v23 }
 0x137   :  { %835 = vmatprep.subr.bf16.mxu0 %v6272_v34 }
 0x13a   :  { %836 = vmatpush1.bf16.msra.mxu0 %v6271_v33 }
 0x13b   :  { %927 = vmatprep.subr.bf16.mxu0 %v6220_v48 }
 0x1f0   :  { %v6737_v49 = vpop.f32.mrb[0].mxu0 }
 0x1f1   :  { %v321_v50 = vpop.f32.mrb[1].mxu0  ;;  %v347_v58 = vmul.f32 %v6737_v49, %v6737_v49 }
 0x1f2   :  { %v6738_v52 = vpop.f32.mrb[2].mxu0  ;;  %v345_v55 = vmul.f32 %v321_v50, %v321_v50 }
 0x1f3   :  { %v324_v53 = vpop.f32.mrb[3].mxu0  ;;  %v348_v62 = vmul.f32 %v6738_v52, %v6738_v52 }
 0x1f4   :  { %v336_v56 = vadd.f32 %v324_v53, %v321_v50  ;;  %v346_v57 = vmul.f32 %v324_v53, %v324_v53 }
 0x1f6   :  { %v337_v59 = vadd.f32 %v6737_v49, %v336_v56  ;;  %v349_v60 = vadd.f32 %v346_v57, %v345_v55 }
 0x1f8   :  { %v338_v63 = vadd.f32 %v6738_v52, %v337_v59  ;;  %v350_v2 = vadd.f32 %v349_v60, %v347_v58 }
 0x1fa   :  { %v339_v3 = vrot.slane %v338_v63, 4  ;;  %v351_v4 = vadd.f32 %v350_v2, %v348_v62  ;;  %v392_v62 = vld [vmem:[#allocation2 + $0x50] sm:$0xff] }
 0x1fc   :  { %v340_v6 = vadd.f32 %v339_v3, %v338_v63  ;;  %v352_v61 = vrot.slane %v351_v4, 4  ;;  %v396_v3 = vld [vmem:[#allocation2 + $0x70] sm:$0xff] }
 0x1fe   :  { %v341_v38 = vrot.slane %v340_v6, 2  ;;  %v353_v37 = vadd.f32 %v352_v61, %v351_v4  ;;  %v393_v4 = vld [vmem:[#allocation2 + $0x58] sm:$0xff] }
 0x200   :  { %v342_v51 = vadd.f32 %v341_v38, %v340_v6  ;;  %v354_v7 = vrot.slane %v353_v37, 2  ;;  %v397_v6 = vld [vmem:[#allocation2 + $0x78] sm:$0xff] }
 0x202   :  { %v343_v8 = vrot.slane %v342_v51, 1  ;;  %v355_v9 = vadd.f32 %v354_v7, %v353_v37 }
 0x204   :  { %v344_v10 = vadd.f32 %v343_v8, %v342_v51  ;;  %v356_v19 = vrot.slane %v355_v9, 1  ;;  %v6226_v8 = vcombine.high %v392_v62, %v396_v3 }
 0x206   :  { %v357_v23 = vadd.f32 %v356_v19, %v355_v9  ;;  %v358_v24 = vmul.f32 0.03125, %v344_v10  ;;  %v401_v9 = vld [vmem:[#allocation2 + $0x98] sm:$0xff]  ;;  %v6225_v19 = vcombine.low %v392_v62, %v396_v3  ;;  %v436_v3 = vld [vmem:[#allocation2 + $0x1b0] sm:$0xff] }
 0x207   :  { %v405_v10 = vld [vmem:[#allocation2 + $0xb8] sm:$0xff] }
 0x208   :  { %v359_v25 = vmul.f32 0.03125, %v357_v23  ;;  %v360_v26 = vmul.f32 %v358_v24, %v358_v24  ;;  %v6227_v23 = vcombine.low %v393_v4, %v397_v6  ;;  %v6235_v40 = vcombine.low %v401_v9, %v405_v10 }
 0x20a   :  { %v361_v27 = vsub.f32 %v359_v25, %v360_v26  ;;  %v6236_v25 = vcombine.high %v401_v9, %v405_v10  ;;  %v408_v26 = vld [vmem:[#allocation2 + $0xd0] sm:$0xff] }
 0x20c   :  { %v362_v28 = vmax.f32 %v361_v27, 0.0  ;;  %v412_v27 = vld [vmem:[#allocation2 + $0xf0] sm:$0xff] }
 0x20d   :  { %v6242_v42 = vcombine.high %v408_v26, %v412_v27 }
 0x20e   :  { %v365_v29 = vadd.f32 1e-05, %v362_v28  ;;  %v409_v28 = vld [vmem:[#allocation2 + $0xd8] sm:$0xff] }
 0x210   :  { %7339 = vrsqrt.f32 %v365_v29  ;;  %v413_v29 = vld [vmem:[#allocation2 + $0xf8] sm:$0xff] }
 0x21a   :  { %v7340_v33 = vpop.eup %7339 }
 0x21b   :  { %v367_v34 = vmul.f32 %v7340_v33, %v363_v32  ;;  %v417_v32 = vld [vmem:[#allocation2 + $0x118] sm:$0xff] }
 0x21c   :  { %v421_v33 = vld [vmem:[#allocation2 + $0x138] sm:$0xff] }
 0x21d   :  { %v368_v45 = vmul.f32 %v367_v34, %v358_v24  ;;  %v371_v48 = vmul.f32 %v367_v34, %v324_v53  ;;  %v370_v55 = vmul.f32 %v367_v34, %v321_v50  ;;  %v372_v56 = vmul.f32 %v6737_v49, %v367_v34  ;;  %v400_v50 = vld [vmem:[#allocation2 + $0x90] sm:$0xff] }
 0x21e   :  { %v373_v57 = vmul.f32 %v6738_v52, %v367_v34  ;;  %v6228_v53 = vcombine.high %v393_v4, %v397_v6  ;;  %v404_v52 = vld [vmem:[#allocation2 + $0xb0] sm:$0xff]  ;;  %v6241_v34 = vcombine.low %v408_v26, %v412_v27  ;;  %v433_v4 = vld [vmem:[#allocation2 + $0x198] sm:$0xff] }
 0x21f   :  { %v369_v58 = vsub.f32 %v364_v35, %v368_v45  ;;  %v6234_v24 = vcombine.high %v400_v50, %v404_v52  ;;  %v6233_v39 = vcombine.low %v400_v50, %v404_v52  ;;  %v6243_v35 = vcombine.low %v409_v28, %v413_v29  ;;  %v437_v6 = vld [vmem:[#allocation2 + $0x1b8] sm:$0xff]  ;;  %v6855_v26 = vld [vmem:[#allocation5 + $0x4] ss:$16 sps:$4 sm:$0xff]  }
 0x220   :  { %v441_v50 = vld [vmem:[#allocation2 + $0x1d8] sm:$0xff]  ;;  %v6267_v10 = vcombine.low %v433_v4, %v437_v6 }
 0x221   :  { %v375_v59 = vadd.f32 %v371_v48, %v369_v58  ;;  %v374_v60 = vadd.f32 %v370_v55, %v369_v58  ;;  %v376_v63 = vadd.f32 %v372_v56, %v369_v58  ;;  %v377_v2 = vadd.f32 %v373_v57, %v369_v58  ;;  %v424_v55 = vld [vmem:[#allocation2 + $0x150] sm:$0xff]  ;;  %v425_v57 = vld [vmem:[#allocation2 + $0x158] sm:$0xff] }
 0x222   :  { %v6252_v48 = vcombine.high %v417_v32, %v421_v33  ;;  %v428_v56 = vld [vmem:[#allocation2 + $0x170] sm:$0xff]  ;;  %v429_v58 = vld [vmem:[#allocation2 + $0x178] sm:$0xff] }
 0x223   :  { %v379_v61 = vmax.f32 %v375_v59, 0.0  ;;  %v378_v38 = vmax.f32 %v374_v60, 0.0  ;;  %v380_v37 = vmax.f32 %v376_v63, 0.0  ;;  %v381_v51 = vmax.f32 %v377_v2, 0.0  ;;  %v432_v2 = vld [vmem:[#allocation2 + $0x190] sm:$0xff]  ;;  %v445_v52 = vld [vmem:[#allocation2 + $0x1f8] sm:$0xff] }
 0x224   :  { %v6251_v60 = vcombine.low %v417_v32, %v421_v33  ;;  %v6258_v62 = vcombine.high %v424_v55, %v428_v56  ;;  %v6260_v63 = vcombine.high %v425_v57, %v429_v58  ;;  %v6265_v9 = vcombine.low %v432_v2, %v436_v3  ;;  %v6858_v27 = vld [vmem:[#allocation5 + $0xc] ss:$16 sps:$4 sm:$0xff]   ;;  %v6873_v32 = vld [vmem:[#allocation5 + $0x64] ss:$16 sps:$4 sm:$0xff]  }
 0x225   :  { %v7782_v7 = vpack.c.bf16 %v379_v61, %v378_v38  ;;  %v7784_v49 = vpack.c.bf16 %v381_v51, %v380_v37  ;;  %v6257_v61 = vcombine.low %v424_v55, %v428_v56  ;;  %v6259_v38 = vcombine.low %v425_v57, %v429_v58  ;;  %v6876_v33 = vld [vmem:[#allocation5 + $0x6c] ss:$16 sps:$4 sm:$0xff]   ;;  %v6877_v55 = vld [vmem:[#allocation5 + $0x80] ss:$16 sps:$4 sm:$0xff]   ;;  %v6880_v56 = vld [vmem:[#allocation5 + $0x88] ss:$16 sps:$4 sm:$0xff]  }
 0x226   :  { %v6266_v37 = vcombine.high %v432_v2, %v436_v3  ;;  %v6268_v51 = vcombine.high %v433_v4, %v437_v6  ;;  %v6885_v57 = vld [vmem:[#allocation5 + $0xa4] ss:$16 sps:$4 sm:$0xff]   ;;  %v6883_v58 = vld [vmem:[#allocation5 + $0xa0] ss:$16 sps:$4 sm:$0xff]   ;;  %v6892_v3 = vld [vmem:[#allocation5 + $0xc8] ss:$16 sps:$4 sm:$0xff]  }
 0x227   :  { %801 = vmatmul.mubr.bf16.vlgmr.msra.gmra.mrb[0].mxu1 %v7782_v7  ;;  %854 = vmatmul.mubr.bf16.vlgmr.msra.gmra.mrb[4].mxu0 %v7782_v7  ;;  %v6889_v2 = vld [vmem:[#allocation5 + $0xc0] ss:$16 sps:$4 sm:$0xff]   ;;  %v6897_v4 = vld [vmem:[#allocation5 + $0xe4] ss:$16 sps:$4 sm:$0xff]   ;;  %v6900_v6 = vld [vmem:[#allocation5 + $0xec] ss:$16 sps:$4 sm:$0xff]  }
 0x228   :  { %875 = vmatpush1.bf16.msra.mxu1 %v6217_v43  ;;  %928 = vmatpush1.bf16.msra.mxu0 %v6219_v47  ;;  %v6244_v43 = vcombine.high %v409_v28, %v413_v29  ;;  %v420_v47 = vld [vmem:[#allocation2 + $0x130] sm:$0xff]  ;;  %v6856_v29 = vld [vmem:[#allocation5 + $0x8] ss:$16 sps:$4 sm:$0xff]  }
 0x229   :  { %876 = vmatprep.subr.bf16.mxu1 %v6226_v8  ;;  %929 = vmatprep.subr.bf16.mxu0 %v6228_v53  ;;  %v6250_v45 = vcombine.high %v416_v46, %v420_v47  ;;  %v6249_v59 = vcombine.low %v416_v46, %v420_v47  ;;  %v440_v8 = vld [vmem:[#allocation2 + $0x1d0] sm:$0xff]  ;;  %v6870_v46 = vld [vmem:[#allocation5 + $0x4c] ss:$16 sps:$4 sm:$0xff]  }
 0x22a   :  { %810 = vmatprep.mubr.bf16.mxu1 %v8879_v1  ;;  %863 = vmatprep.mubr.bf16.mxu0 %v8879_v1  ;;  %v444_v53 = vld [vmem:[#allocation2 + $0x1f0] sm:$0xff] }
 0x22b   :  { %v6853_v28 = vld [vmem:[#allocation5] ss:$16 sps:$4 sm:$0xff]  }
 0x22c   :  { %877 = vmatpush1.bf16.msra.mxu1 %v6225_v19  ;;  %930 = vmatpush1.bf16.msra.mxu0 %v6227_v23  ;;  %v6274_v19 = vcombine.high %v440_v8, %v444_v53  ;;  %v6276_v23 = vcombine.high %v441_v50, %v445_v52  ;;  %v6865_v47 = vld [vmem:[#allocation5 + $0x40] ss:$16 sps:$4 sm:$0xff]  }
 0x22d   :  { %878 = vmatprep.subr.bf16.mxu1 %v6234_v24  ;;  %931 = vmatprep.subr.bf16.mxu0 %v6236_v25  ;;  %v6273_v24 = vcombine.low %v440_v8, %v444_v53  ;;  %v6275_v25 = vcombine.low %v441_v50, %v445_v52  ;;  %v6901_v8 = vld [vmem:[#allocation5 + $0x100] ss:$16 sps:$4 sm:$0xff]   ;;  %v6904_v53 = vld [vmem:[#allocation5 + $0x108] ss:$16 sps:$4 sm:$0xff]   ;;  %v6909_v50 = vld [vmem:[#allocation5 + $0x124] ss:$16 sps:$4 sm:$0xff]  }
 0x22e   :  { %v6912_v52 = vld [vmem:[#allocation5 + $0x12c] ss:$16 sps:$4 sm:$0xff]  }
 0x22f   :  { %811 = vmatmul.mubr.bf16.gmra.mrb[4].mxu1 %v7784_v49  ;;  %864 = vmatmul.mubr.bf16.gmra.mrb[8].mxu0 %v7784_v49 }
 0x230   :  { %879 = vmatpush1.bf16.msra.mxu1 %v6233_v39  ;;  %932 = vmatpush1.bf16.msra.mxu0 %v6235_v40  ;;  %v6861_v39 = vld [vmem:[#allocation5 + $0x24] ss:$16 sps:$4 sm:$0xff]   ;;  %v6864_v40 = vld [vmem:[#allocation5 + $0x2c] ss:$16 sps:$4 sm:$0xff]  }
 0x231   :  { %880 = vmatprep.subr.bf16.mxu1 %v6242_v42  ;;  %933 = vmatprep.subr.bf16.mxu0 %v6244_v43  ;;  %v6859_v42 = vld [vmem:[#allocation5 + $0x20] ss:$16 sps:$4 sm:$0xff]   ;;  %v6867_v43 = vld [vmem:[#allocation5 + $0x44] ss:$16 sps:$4 sm:$0xff]  }
 0x232   :  { %906 = vmatprep.mubr.bf16.mxu1 %v8879_v1  ;;  %959 = vmatprep.mubr.bf16.mxu0 %v8879_v1 }
 0x234   :  { %881 = vmatpush1.bf16.msra.mxu1 %v6241_v34  ;;  %934 = vmatpush1.bf16.msra.mxu0 %v6243_v35  ;;  %v6871_v34 = vld [vmem:[#allocation5 + $0x60] ss:$16 sps:$4 sm:$0xff]   ;;  %v6874_v35 = vld [vmem:[#allocation5 + $0x68] ss:$16 sps:$4 sm:$0xff]  }
 0x235   :  { %882 = vmatprep.subr.bf16.mxu1 %v6250_v45  ;;  %935 = vmatprep.subr.bf16.mxu0 %v6252_v48  ;;  %v6879_v45 = vld [vmem:[#allocation5 + $0x84] ss:$16 sps:$4 sm:$0xff]   ;;  %v6882_v48 = vld [vmem:[#allocation5 + $0x8c] ss:$16 sps:$4 sm:$0xff]  }
 0x238   :  { %883 = vmatpush1.bf16.msra.mxu1 %v6249_v59  ;;  %936 = vmatpush1.bf16.msra.mxu0 %v6251_v60  ;;  %v6886_v59 = vld [vmem:[#allocation5 + $0xa8] ss:$16 sps:$4 sm:$0xff]   ;;  %v6888_v60 = vld [vmem:[#allocation5 + $0xac] ss:$16 sps:$4 sm:$0xff]  }
 0x239   :  { %884 = vmatprep.subr.bf16.mxu1 %v6258_v62  ;;  %937 = vmatprep.subr.bf16.mxu0 %v6260_v63  ;;  %v6891_v62 = vld [vmem:[#allocation5 + $0xc4] ss:$16 sps:$4 sm:$0xff]   ;;  %v6894_v63 = vld [vmem:[#allocation5 + $0xcc] ss:$16 sps:$4 sm:$0xff]  }
 0x23c   :  { %885 = vmatpush1.bf16.msra.mxu1 %v6257_v61  ;;  %938 = vmatpush1.bf16.msra.mxu0 %v6259_v38  ;;  %v6895_v61 = vld [vmem:[#allocation5 + $0xe0] ss:$16 sps:$4 sm:$0xff]   ;;  %v6898_v38 = vld [vmem:[#allocation5 + $0xe8] ss:$16 sps:$4 sm:$0xff]  }
 0x23d   :  { %886 = vmatprep.subr.bf16.mxu1 %v6266_v37  ;;  %939 = vmatprep.subr.bf16.mxu0 %v6268_v51  ;;  %v6903_v37 = vld [vmem:[#allocation5 + $0x104] ss:$16 sps:$4 sm:$0xff]   ;;  %v6906_v51 = vld [vmem:[#allocation5 + $0x10c] ss:$16 sps:$4 sm:$0xff]  }
 0x240   :  { %887 = vmatpush1.bf16.msra.mxu1 %v6265_v9  ;;  %940 = vmatpush1.bf16.msra.mxu0 %v6267_v10  ;;  %v6907_v9 = vld [vmem:[#allocation5 + $0x120] ss:$16 sps:$4 sm:$0xff]   ;;  %v6910_v10 = vld [vmem:[#allocation5 + $0x128] ss:$16 sps:$4 sm:$0xff]  }
 0x241   :  { %888 = vmatprep.subr.bf16.mxu1 %v6274_v19  ;;  %941 = vmatprep.subr.bf16.mxu0 %v6276_v23  ;;  %v6915_v19 = vld [vmem:[#allocation5 + $0x144] ss:$16 sps:$4 sm:$0xff]   ;;  %v6918_v23 = vld [vmem:[#allocation5 + $0x14c] ss:$16 sps:$4 sm:$0xff]  }
 0x244   :  { %889 = vmatpush1.bf16.msra.mxu1 %v6273_v24  ;;  %942 = vmatpush1.bf16.msra.mxu0 %v6275_v25  ;;  %v6913_v24 = vld [vmem:[#allocation5 + $0x140] ss:$16 sps:$4 sm:$0xff]   ;;  %v6916_v25 = vld [vmem:[#allocation5 + $0x148] ss:$16 sps:$4 sm:$0xff]  }
 0x245   :  { %3245 = vmatprep.subr.bf16.mxu1 %v6855_v26  ;;  %3409 = vmatprep.subr.bf16.mxu0 %v6858_v27  ;;  %v6921_v26 = vld [vmem:[#allocation5 + $0x164] ss:$16 sps:$4 sm:$0xff]   ;;  %v6924_v27 = vld [vmem:[#allocation5 + $0x16c] ss:$16 sps:$4 sm:$0xff]  }
 0x247   :  { %907 = vmatmul.mubr.bf16.vlgmr.msra.gmra.mrb[8].mxu1 %v7782_v7  ;;  %960 = vmatmul.mubr.bf16.vlgmr.msra.gmra.mrb[12].mxu0 %v7782_v7  ;;  %v6862_v7 = vld [vmem:[#allocation5 + $0x28] ss:$16 sps:$4 sm:$0xff]  }
 0x248   :  { %916 = vmatprep.mubr.bf16.mxu1 %v8879_v1  ;;  %969 = vmatprep.mubr.bf16.mxu0 %v8879_v1 }
 0x249   :  { %3246 = vmatpush1.bf16.msra.mxu1 %v6853_v28  ;;  %3410 = vmatpush1.bf16.msra.mxu0 %v6856_v29  ;;  %v6919_v28 = vld [vmem:[#allocation5 + $0x160] ss:$16 sps:$4 sm:$0xff]   ;;  %v6922_v29 = vld [vmem:[#allocation5 + $0x168] ss:$16 sps:$4 sm:$0xff]  }
 0x24a   :  { %3247 = vmatprep.subr.bf16.mxu1 %v6861_v39  ;;  %3411 = vmatprep.subr.bf16.mxu0 %v6864_v40 }
 0x24d   :  { %3248 = vmatpush1.bf16.msra.mxu1 %v6859_v42  ;;  %3412 = vmatpush1.bf16.msra.mxu0 %v6862_v7 }
 0x24e   :  { %3249 = vmatprep.subr.bf16.mxu1 %v6867_v43  ;;  %3413 = vmatprep.subr.bf16.mxu0 %v6870_v46  ;;  %v6927_v43 = vld [vmem:[#allocation5 + $0x184] ss:$16 sps:$4 sm:$0xff]   ;;  %v6930_v46 = vld [vmem:[#allocation5 + $0x18c] ss:$16 sps:$4 sm:$0xff]  }
 0x24f   :  { %917 = vmatmul.mubr.bf16.gmra.mrb[12].mxu1 %v7784_v49  ;;  %970 = vmatmul.mubr.bf16.gmra.mrb[16].mxu0 %v7784_v49  ;;  %v6868_v49 = vld [vmem:[#allocation5 + $0x48] ss:$16 sps:$4 sm:$0xff]  }
 0x251   :  { %3250 = vmatpush1.bf16.msra.mxu1 %v6865_v47  ;;  %3414 = vmatpush1.bf16.msra.mxu0 %v6868_v49 }
 0x252   :  { %3251 = vmatprep.subr.bf16.mxu1 %v6873_v32  ;;  %3415 = vmatprep.subr.bf16.mxu0 %v6876_v33 }
 0x255   :  { %3252 = vmatpush1.bf16.msra.mxu1 %v6871_v34  ;;  %3416 = vmatpush1.bf16.msra.mxu0 %v6874_v35 }
 0x256   :  { %3253 = vmatprep.subr.bf16.mxu1 %v6879_v45  ;;  %3417 = vmatprep.subr.bf16.mxu0 %v6882_v48  ;;  %v6925_v45 = vld [vmem:[#allocation5 + $0x180] ss:$16 sps:$4 sm:$0xff]   ;;  %v6928_v48 = vld [vmem:[#allocation5 + $0x188] ss:$16 sps:$4 sm:$0xff]  }
 0x259   :  { %3254 = vmatpush1.bf16.msra.mxu1 %v6877_v55  ;;  %3418 = vmatpush1.bf16.msra.mxu0 %v6880_v56 }
 0x25a   :  { %3255 = vmatprep.subr.bf16.mxu1 %v6885_v57  ;;  %3419 = vmatprep.subr.bf16.mxu0 %v6888_v60 }
 0x25d   :  { %3256 = vmatpush1.bf16.msra.mxu1 %v6883_v58  ;;  %3420 = vmatpush1.bf16.msra.mxu0 %v6886_v59 }
 0x25e   :  { %3257 = vmatprep.subr.bf16.mxu1 %v6891_v62  ;;  %3421 = vmatprep.subr.bf16.mxu0 %v6894_v63  ;;  %v6933_v62 = vld [vmem:[#allocation5 + $0x1a4] ss:$16 sps:$4 sm:$0xff]  }
 0x261   :  { %3258 = vmatpush1.bf16.msra.mxu1 %v6889_v2  ;;  %3422 = vmatpush1.bf16.msra.mxu0 %v6892_v3 }
 0x262   :  { %3259 = vmatprep.subr.bf16.mxu1 %v6897_v4  ;;  %3423 = vmatprep.subr.bf16.mxu0 %v6900_v6  ;;  %v6936_v6 = vld [vmem:[#allocation5 + $0x1ac] ss:$16 sps:$4 sm:$0xff]  }
 0x265   :  { %3260 = vmatpush1.bf16.msra.mxu1 %v6895_v61  ;;  %3424 = vmatpush1.bf16.msra.mxu0 %v6898_v38 }
 0x266   :  { %3261 = vmatprep.subr.bf16.mxu1 %v6903_v37  ;;  %3425 = vmatprep.subr.bf16.mxu0 %v6906_v51  ;;  %v6931_v37 = vld [vmem:[#allocation5 + $0x1a0] ss:$16 sps:$4 sm:$0xff]  }
 0x269   :  { %3262 = vmatpush1.bf16.msra.mxu1 %v6901_v8  ;;  %3426 = vmatpush1.bf16.msra.mxu0 %v6904_v53  ;;  %v6934_v53 = vld [vmem:[#allocation5 + $0x1a8] ss:$16 sps:$4 sm:$0xff]  }
 0x26a   :  { %3263 = vmatprep.subr.bf16.mxu1 %v6909_v50  ;;  %3427 = vmatprep.subr.bf16.mxu0 %v6912_v52  ;;  %v6939_v50 = vld [vmem:[#allocation5 + $0x1c4] ss:$16 sps:$4 sm:$0xff]  }
 0x26d   :  { %3264 = vmatpush1.bf16.msra.mxu1 %v6907_v9  ;;  %3428 = vmatpush1.bf16.msra.mxu0 %v6910_v10  ;;  %v7520_v10 = vmov 1966171168  }
 0x26e   :  { %3265 = vmatprep.subr.bf16.mxu1 %v6915_v19  ;;  %3429 = vmatprep.subr.bf16.mxu0 %v6918_v23  ;;  %v7850_v19 = vunpack.c.l.s4 %v7520_v10  ;;  %v6942_v23 = vld [vmem:[#allocation5 + $0x1cc] ss:$16 sps:$4 sm:$0xff]  }
 0x271   :  { %3266 = vmatpush1.bf16.msra.mxu1 %v6913_v24  ;;  %3430 = vmatpush1.bf16.msra.mxu0 %v6916_v25 }
 0x272   :  { %3267 = vmatprep.subr.bf16.mxu1 %v6921_v26  ;;  %3431 = vmatprep.subr.bf16.mxu0 %v6924_v27 }
 0x275   :  { %3268 = vmatpush1.bf16.msra.mxu1 %v6919_v28  ;;  %3432 = vmatpush1.bf16.msra.mxu0 %v6922_v29 }
 0x276   :  { %3269 = vmatprep.subr.bf16.mxu1 %v6927_v43  ;;  %3433 = vmatprep.subr.bf16.mxu0 %v6930_v46  ;;  %v6937_v43 = vld [vmem:[#allocation5 + $0x1c0] ss:$16 sps:$4 sm:$0xff]  }
 0x279   :  { %3270 = vmatpush1.bf16.msra.mxu1 %v6925_v45  ;;  %3434 = vmatpush1.bf16.msra.mxu0 %v6928_v48  ;;  %v6940_v48 = vld [vmem:[#allocation5 + $0x1c8] ss:$16 sps:$4 sm:$0xff]  }
 0x27a   :  { %3271 = vmatprep.subr.bf16.mxu1 %v6933_v62  ;;  %3435 = vmatprep.subr.bf16.mxu0 %v6936_v6 }
 0x27d   :  { %3272 = vmatpush1.bf16.msra.mxu1 %v6931_v37  ;;  %3436 = vmatpush1.bf16.msra.mxu0 %v6934_v53 }
 0x27e   :  { %3273 = vmatprep.subr.bf16.mxu1 %v6939_v50  ;;  %3437 = vmatprep.subr.bf16.mxu0 %v6942_v23 }
 0x281   :  { %3274 = vmatpush1.bf16.msra.mxu1 %v6937_v43  ;;  %3438 = vmatpush1.bf16.msra.mxu0 %v6940_v48 }
 0x2fa   :  { %v7806_v39 = vpop.f32.mrb[0].mxu1  ;;  %v7808_v40 = vpop.f32.mrb[4].mxu0 }
 0x2fb   :  { %v7810_v42 = vpop.f32.mrb[1].mxu1  ;;  %v7812_v7 = vpop.f32.mrb[5].mxu0  ;;  %v1052_v47 = vmul.f32 %v7806_v39, %v7806_v39  ;;  %v1054_v49 = vmul.f32 %v7808_v40, %v7808_v40 }
 0x2fc   :  { %v1053_v32 = vmul.f32 %v7810_v42, %v7810_v42  ;;  %v1055_v33 = vmul.f32 %v7812_v7, %v7812_v7  ;;  %v7822_v34 = vpop.f32.mrb[2].mxu1  ;;  %v7824_v35 = vpop.f32.mrb[6].mxu0 }
 0x2fd   :  { %v980_v55 = vadd.f32 %v7822_v34, %v7806_v39  ;;  %v1060_v56 = vmul.f32 %v7822_v34, %v7822_v34  ;;  %v998_v57 = vadd.f32 %v7824_v35, %v7808_v40  ;;  %v1062_v58 = vmul.f32 %v7824_v35, %v7824_v35  ;;  %v7834_v59 = vpop.f32.mrb[3].mxu1  ;;  %v7836_v60 = vpop.f32.mrb[7].mxu0 }
 0x2fe   :  { %v989_v63 = vadd.f32 %v7834_v59, %v7810_v42  ;;  %v1061_v2 = vmul.f32 %v7834_v59, %v7834_v59  ;;  %v1007_v3 = vadd.f32 %v7836_v60, %v7812_v7  ;;  %v1063_v4 = vmul.f32 %v7836_v60, %v7836_v60 }
 0x2ff   :  { %v1084_v61 = vadd.f32 %v1060_v56, %v1052_v47  ;;  %v1102_v38 = vadd.f32 %v1062_v58, %v1054_v49 }
 0x300   :  { %v1093_v51 = vadd.f32 %v1061_v2, %v1053_v32  ;;  %v1111_v8 = vadd.f32 %v1063_v4, %v1055_v33 }
 0x302   :  { %v7846_v52 = vpop.f32.mrb[4].mxu1  ;;  %v7848_v9 = vpop.f32.mrb[8].mxu0 }
 0x303   :  { %v981_v24 = vadd.f32 %v980_v55, %v7846_v52  ;;  %v1068_v25 = vmul.f32 %v7846_v52, %v7846_v52  ;;  %v999_v26 = vadd.f32 %v998_v57, %v7848_v9  ;;  %v1070_v27 = vmul.f32 %v7848_v9, %v7848_v9  ;;  %v7858_v28 = vpop.f32.mrb[5].mxu1  ;;  %v7860_v29 = vpop.f32.mrb[9].mxu0  ;;  %v6945_v55 = vld [vmem:[#allocation5 + $0x1e4] ss:$16 sps:$4 sm:$0xff]  }
 0x304   :  { %v990_v46 = vadd.f32 %v989_v63, %v7858_v28  ;;  %v1069_v47 = vmul.f32 %v7858_v28, %v7858_v28  ;;  %v1008_v49 = vadd.f32 %v1007_v3, %v7860_v29  ;;  %v1071_v32 = vmul.f32 %v7860_v29, %v7860_v29  ;;  %v7868_v33 = vpop.f32.mrb[6].mxu1  ;;  %v7870_v45 = vpop.f32.mrb[10].mxu0  ;;  %v6948_v3 = vld [vmem:[#allocation5 + $0x1ec] ss:$16 sps:$4 sm:$0xff]   ;;  %3275 = vmatprep.subr.bf16.mxu1 %v6945_v55 }
 0x305   :  { %v1085_v56 = vadd.f32 %v1084_v61, %v1068_v25  ;;  %v1103_v57 = vadd.f32 %v1102_v38, %v1070_v27  ;;  %v982_v58 = vadd.f32 %v981_v24, %v7868_v33  ;;  %v1076_v62 = vmul.f32 %v7868_v33, %v7868_v33  ;;  %v7875_v63 = vpop.f32.mrb[7].mxu1  ;;  %v7877_v2 = vpop.f32.mrb[11].mxu0  ;;  %v6943_v25 = vld [vmem:[#allocation5 + $0x1e0] ss:$16 sps:$4 sm:$0xff]   ;;  %3439 = vmatprep.subr.bf16.mxu0 %v6948_v3 }
 0x306   :  { %v1094_v4 = vadd.f32 %v1093_v51, %v1069_v47  ;;  %v1112_v6 = vadd.f32 %v1111_v8, %v1071_v32  ;;  %v1000_v37 = vadd.f32 %v999_v26, %v7870_v45  ;;  %v1078_v53 = vmul.f32 %v7870_v45, %v7870_v45  ;;  %v6946_v26 = vld [vmem:[#allocation5 + $0x1e8] ss:$16 sps:$4 sm:$0xff]   ;;  %3276 = vmatpush1.bf16.msra.mxu1 %v6943_v25 }
 0x307   :  { %v983_v61 = vrot.slane %v982_v58, 4  ;;  %v1086_v38 = vadd.f32 %v1085_v56, %v1076_v62  ;;  %v991_v10 = vadd.f32 %v990_v46, %v7875_v63  ;;  %v1077_v24 = vmul.f32 %v7875_v63, %v7875_v63  ;;  %3440 = vmatpush1.bf16.msra.mxu0 %v6946_v26 }
 0x308   :  { %v1001_v27 = vrot.slane %v1000_v37, 4  ;;  %v1104_v50 = vadd.f32 %v1103_v57, %v1078_v53  ;;  %v1009_v51 = vadd.f32 %v1008_v49, %v7877_v2  ;;  %v1079_v8 = vmul.f32 %v7877_v2, %v7877_v2 }
 0x309   :  { %v984_v23 = vadd.f32 %v983_v61, %v982_v58  ;;  %v1087_v47 = vrot.slane %v1086_v38, 4  ;;  %v992_v32 = vrot.slane %v991_v10, 4  ;;  %v1095_v56 = vadd.f32 %v1094_v4, %v1077_v24  ;;  %v6951_v4 = vld [vmem:[#allocation5 + $0x204] ss:$16 sps:$4 sm:$0xff]  }
 0x30a   :  { %v1002_v46 = vadd.f32 %v1001_v27, %v1000_v37  ;;  %v1105_v62 = vrot.slane %v1104_v50, 4  ;;  %v1010_v5 = vrot.slane %v1009_v51, 4  ;;  %v1113_v43 = vadd.f32 %v1112_v6, %v1079_v8  ;;  %v6954_v6 = vld [vmem:[#allocation5 + $0x20c] ss:$16 sps:$4 sm:$0xff]   ;;  %3286 = vmatprep.subr.bf16.mxu1 %v6951_v4 }
 0x30b   :  { %v985_v0 = vrot.slane %v984_v23, 2  ;;  %v1088_v11 = vadd.f32 %v1087_v47, %v1086_v38  ;;  %v993_v57 = vadd.f32 %v992_v32, %v991_v10  ;;  %v1096_v53 = vrot.slane %v1095_v56, 4  ;;  %3450 = vmatprep.subr.bf16.mxu0 %v6954_v6 }
 0x30c   :  { %v1003_v49 = vrot.slane %v1002_v46, 2  ;;  %v1106_v1 = vadd.f32 %v1105_v62, %v1104_v50  ;;  %v1011_v22 = vadd.f32 %v1010_v5, %v1009_v51  ;;  %v1114_v48 = vrot.slane %v1113_v43, 4 }
 0x30d   :  { %v986_v55 = vadd.f32 %v985_v0, %v984_v23  ;;  %v1089_v58 = vrot.slane %v1088_v11, 2  ;;  %v994_v61 = vrot.slane %v993_v57, 2  ;;  %v1097_v36 = vadd.f32 %v1096_v53, %v1095_v56 }
 0x30e   :  { %v1004_v3 = vadd.f32 %v1003_v49, %v1002_v46  ;;  %v1107_v37 = vrot.slane %v1106_v1, 2  ;;  %v1012_v24 = vrot.slane %v1011_v22, 2  ;;  %v1115_v27 = vadd.f32 %v1114_v48, %v1113_v43 }
 0x30f   :  { %v987_v8 = vrot.slane %v986_v55, 1  ;;  %v1090_v38 = vadd.f32 %v1089_v58, %v1088_v11  ;;  %v995_v10 = vadd.f32 %v994_v61, %v993_v57  ;;  %v1098_v47 = vrot.slane %v1097_v36, 2 }
 0x310   :  { %v1005_v25 = vrot.slane %v1004_v3, 1  ;;  %v1108_v50 = vadd.f32 %v1107_v37, %v1106_v1  ;;  %v1013_v5 = vadd.f32 %v1012_v24, %v1011_v22  ;;  %v1116_v51 = vrot.slane %v1115_v27, 2 }
 0x311   :  { %v988_v0 = vadd.f32 %v987_v8, %v986_v55  ;;  %v1091_v26 = vrot.slane %v1090_v38, 1  ;;  %v996_v23 = vrot.slane %v995_v10, 1  ;;  %v1099_v32 = vadd.f32 %v1098_v47, %v1097_v36 }
 0x312   :  { %v1006_v56 = vadd.f32 %v1005_v25, %v1004_v3  ;;  %v1109_v46 = vrot.slane %v1108_v50, 1  ;;  %v1014_v62 = vrot.slane %v1013_v5, 1  ;;  %v1117_v53 = vadd.f32 %v1116_v51, %v1115_v27 }
 0x313   :  { %v1092_v43 = vadd.f32 %v1091_v26, %v1090_v38  ;;  %v7888_v49 = vmul.f32 0.03125, %v988_v0  ;;  %v997_v11 = vadd.f32 %v996_v23, %v995_v10  ;;  %v1100_v57 = vrot.slane %v1099_v32, 1 }
 0x314   :  { %v1110_v48 = vadd.f32 %v1109_v46, %v1108_v50  ;;  %v7890_v58 = vmul.f32 0.03125, %v1006_v56  ;;  %v1015_v1 = vadd.f32 %v1014_v62, %v1013_v5  ;;  %v1118_v22 = vrot.slane %v1117_v53, 1 }
 0x315   :  { %v1164_v61 = vmul.f32 0.03125, %v1092_v43  ;;  %v1172_v55 = vmul.f32 %v7888_v49, %v7888_v49  ;;  %v1101_v4 = vadd.f32 %v1100_v57, %v1099_v32  ;;  %v7894_v36 = vmul.f32 0.03125, %v997_v11 }
 0x316   :  { %v1166_v3 = vmul.f32 0.03125, %v1110_v48  ;;  %v1174_v37 = vmul.f32 %v7890_v58, %v7890_v58  ;;  %v1119_v24 = vadd.f32 %v1118_v22, %v1117_v53  ;;  %v7898_v27 = vmul.f32 0.03125, %v1015_v1 }
 0x317   :  { %v1180_v6 = vsub.f32 %v1164_v61, %v1172_v55  ;;  %v1165_v8 = vmul.f32 0.03125, %v1101_v4  ;;  %v1173_v38 = vmul.f32 %v7894_v36, %v7894_v36  ;;  %v1234_v0 = vunpack.c.0.s8 %v7850_v19 }
 0x318   :  { %v1182_v10 = vsub.f32 %v1166_v3, %v1174_v37  ;;  %v1167_v47 = vmul.f32 0.03125, %v1119_v24  ;;  %v1175_v25 = vmul.f32 %v7898_v27, %v7898_v27 }
 0x319   :  { %v1188_v50 = vmax.f32 %v1180_v6, 0.0  ;;  %v1181_v5 = vsub.f32 %v1165_v8, %v1173_v38 }
 0x31a   :  { %v1190_v51 = vmax.f32 %v1182_v10, 0.0  ;;  %v1183_v26 = vsub.f32 %v1167_v47, %v1175_v25  ;;  %v7905_v23 = vpop.f32.mrb[8].mxu1  ;;  %v7907_v32 = vpop.f32.mrb[12].mxu0 }
 0x31b   :  { %8939 = vst [vmem:[#allocation29_spill] sm:$0xff] %v7905_v23  ;;  %8940 = vst [vmem:[#allocation30_spill] sm:$0xff] %v7907_v32  ;;  %v1204_v56 = vadd.f32 1e-05, %v1188_v50  ;;  %v1189_v46 = vmax.f32 %v1181_v5, 0.0  ;;  %v1056_v62 = vmul.f32 %v7905_v23, %v7905_v23  ;;  %v1058_v53 = vmul.f32 %v7907_v32, %v7907_v32  ;;  %v7913_v43 = vpop.f32.mrb[9].mxu1 }
 0x31c   :  { %v7915_v11 = vpop.f32.mrb[13].mxu0  ;;  %v1206_v57 = vadd.f32 1e-05, %v1190_v51  ;;  %v1191_v48 = vmax.f32 %v1183_v26, 0.0  ;;  %v1057_v19 = vmul.f32 %v7913_v43, %v7913_v43  ;;  %v7921_v22 = vpop.f32.mrb[10].mxu1 }
 0x31d   :  { %8941 = vst [vmem:[#allocation31_spill] sm:$0xff] %v7915_v11  ;;  %v1059_v1 = vmul.f32 %v7915_v11, %v7915_v11  ;;  %8942 = vst [vmem:[#allocation32_spill] sm:$0xff] %v7921_v22  ;;  %v7923_v61 = vpop.f32.mrb[14].mxu0  ;;  %7341 = vrsqrt.f32 %v1204_v56  ;;  %v1205_v55 = vadd.f32 1e-05, %v1189_v46  ;;  %v1016_v4 = vadd.f32 %v7921_v22, %v7905_v23  ;;  %v7929_v37 = vpop.f32.mrb[11].mxu1 }
 0x31e   :  { %8943 = vst [vmem:[#allocation33_spill] sm:$0xff] %v7923_v61  ;;  %v1064_v3 = vmul.f32 %v7921_v22, %v7921_v22  ;;  %v7931_v24 = vpop.f32.mrb[15].mxu0  ;;  %7343 = vrsqrt.f32 %v1206_v57  ;;  %v1207_v6 = vadd.f32 1e-05, %v1191_v48  ;;  %v1034_v8 = vadd.f32 %v7923_v61, %v7907_v32 }
 0x31f   :  { %8944 = vst [vmem:[#allocation34_spill] sm:$0xff] %v7931_v24  ;;  %v1066_v38 = vmul.f32 %v7923_v61, %v7923_v61  ;;  %7345 = vrsqrt.f32 %v1205_v55  ;;  %v1025_v47 = vadd.f32 %v7929_v37, %v7913_v43  ;;  %v1065_v25 = vmul.f32 %v7929_v37, %v7929_v37 }
 0x320   :  { %v1120_v10 = vadd.f32 %v1064_v3, %v1056_v62  ;;  %7347 = vrsqrt.f32 %v1207_v6  ;;  %v1043_v5 = vadd.f32 %v7931_v24, %v7915_v11  ;;  %v1067_v51 = vmul.f32 %v7931_v24, %v7931_v24 }
 0x321   :  { %v1138_v50 = vadd.f32 %v1066_v38, %v1058_v53  ;;  %v1129_v26 = vadd.f32 %v1065_v25, %v1057_v19  ;;  %v7946_v56 = vsub.s32 %v1234_v0, %v7694_v14 }
 0x322   :  { %v1147_v46 = vadd.f32 %v1067_v51, %v1059_v1  ;;  %v7948_v62 = vpop.f32.mrb[12].mxu1  ;;  %v7950_v57 = vpop.f32.mrb[16].mxu0 }
 0x323   :  { %8945 = vst [vmem:[#allocation35_spill] sm:$0xff] %v7948_v62  ;;  %8946 = vst [vmem:[#allocation36_spill] sm:$0xff] %v7950_v57  ;;  %v1017_v48 = vadd.f32 %v1016_v4, %v7948_v62  ;;  %v1072_v53 = vmul.f32 %v7948_v62, %v7948_v62  ;;  %v1035_v55 = vadd.f32 %v1034_v8, %v7950_v57  ;;  %v7958_v6 = vpop.f32.mrb[13].mxu1  ;;  %v7960_v19 = vpop.f32.mrb[17].mxu0 }
 0x324   :  { %v1074_v3 = vmul.f32 %v7950_v57, %v7950_v57  ;;  %v1026_v0 = vadd.f32 %v1025_v47, %v7958_v6  ;;  %v1073_v1 = vmul.f32 %v7958_v6, %v7958_v6  ;;  %v1044_v38 = vadd.f32 %v1043_v5, %v7960_v19  ;;  %v7968_v25 = vpop.f32.mrb[14].mxu1  ;;  %v7970_v8 = vpop.f32.mrb[18].mxu0 }
 0x325   :  { %v1075_v4 = vmul.f32 %v7960_v19, %v7960_v19  ;;  %8947 = vst [vmem:[#allocation37_spill] sm:$0xff] %v7968_v25  ;;  %8948 = vst [vmem:[#allocation38_spill] sm:$0xff] %v7970_v8  ;;  %v1121_v51 = vadd.f32 %v1120_v10, %v1072_v53  ;;  %v1018_v16 = vadd.f32 %v1017_v48, %v7968_v25  ;;  %v7975_v47 = vpop.f32.mrb[15].mxu1  ;;  %v7977_v54 = vpop.f32.mrb[19].mxu0 }
 0x326   :  { %v1139_v13 = vadd.f32 %v1138_v50, %v1074_v3  ;;  %v1080_v44 = vmul.f32 %v7968_v25, %v7968_v25  ;;  %8949 = vst [vmem:[#allocation39_spill] sm:$0xff] %v7975_v47  ;;  %v1130_v21 = vadd.f32 %v1129_v26, %v1073_v1  ;;  %v1036_v41 = vadd.f32 %v1035_v55, %v7970_v8 }
 0x327   :  { %v1148_v5 = vadd.f32 %v1147_v46, %v1075_v4  ;;  %v1082_v30 = vmul.f32 %v7970_v8, %v7970_v8  ;;  %v7342_v31 = vpop.eup %7341  ;;  %v1019_v12 = vrot.slane %v1018_v16, 4  ;;  %v1027_v50 = vadd.f32 %v1026_v0, %v7975_v47 }
 0x328   :  { %v1122_v10 = vadd.f32 %v1121_v51, %v1080_v44  ;;  %v1081_v48 = vmul.f32 %v7975_v47, %v7975_v47  ;;  %v7344_v53 = vpop.eup %7343  ;;  %v1037_v3 = vrot.slane %v1036_v41, 4  ;;  %v1045_v57 = vadd.f32 %v1044_v38, %v7977_v54 }
 0x329   :  { %v1140_v15 = vadd.f32 %v1139_v13, %v1082_v30  ;;  %v1083_v26 = vmul.f32 %v7977_v54, %v7977_v54  ;;  %v7346_v46 = vpop.eup %7345  ;;  %v1020_v55 = vadd.f32 %v1019_v12, %v1018_v16  ;;  %v1028_v4 = vrot.slane %v1027_v50, 4 }
 0x32a   :  { %v1123_v1 = vrot.slane %v1122_v10, 4  ;;  %v1131_v8 = vadd.f32 %v1130_v21, %v1081_v48  ;;  %v7348_v61 = vpop.eup %7347  ;;  %v1228_v44 = vcombine.low %v7342_v31, %v7346_v46  ;;  %v1038_v51 = vadd.f32 %v1037_v3, %v1036_v41 }
 0x32b   :  { %v1141_v0 = vrot.slane %v1140_v15, 4  ;;  %v1046_v32 = vrot.slane %v1045_v57, 4  ;;  %v1229_v24 = vcombine.low %v7344_v53, %v7348_v61  ;;  %v1021_v11 = vrot.slane %v1020_v55, 2 }
 0x32c   :  { %v1124_v25 = vadd.f32 %v1123_v1, %v1122_v10  ;;  %v1029_v62 = vadd.f32 %v1028_v4, %v1027_v50  ;;  %v7989_v13 = vrot.slane %v1228_v44, %v7946_v56  ;;  %v1039_v30 = vrot.slane %v1038_v51, 2 }
 0x32d   :  { %v1142_v38 = vadd.f32 %v1141_v0, %v1140_v15  ;;  %v1132_v22 = vrot.slane %v1131_v8, 4  ;;  %v7992_v12 = vrot.slane %v1229_v24, %v7946_v56  ;;  %v1022_v16 = vadd.f32 %v1021_v11, %v1020_v55 }
 0x32e   :  { %v1125_v21 = vrot.slane %v1124_v25, 2  ;;  %v1030_v48 = vrot.slane %v1029_v62, 2  ;;  %v1040_v31 = vadd.f32 %v1039_v30, %v1038_v51  ;;  %v1047_v46 = vadd.f32 %v1046_v32, %v1045_v57 }
 0x32f   :  { %v1143_v41 = vrot.slane %v1142_v38, 2  ;;  %v1133_v3 = vadd.f32 %v1132_v22, %v1131_v8  ;;  %v1023_v10 = vrot.slane %v1022_v16, 1  ;;  %v1149_v57 = vadd.f32 %v1148_v5, %v1083_v26 }
 0x330   :  { %v1126_v50 = vadd.f32 %v1125_v21, %v1124_v25  ;;  %v1031_v53 = vadd.f32 %v1030_v48, %v1029_v62  ;;  %v1041_v1 = vrot.slane %v1040_v31, 1  ;;  %v1048_v44 = vrot.slane %v1047_v46, 2 }
 0x331   :  { %v1144_v4 = vadd.f32 %v1143_v41, %v1142_v38  ;;  %v1134_v15 = vrot.slane %v1133_v3, 2  ;;  %v1024_v0 = vadd.f32 %v1023_v10, %v1022_v16  ;;  %v1150_v48 = vrot.slane %v1149_v57, 4 }
 0x332   :  { %v1127_v24 = vrot.slane %v1126_v50, 1  ;;  %v1032_v23 = vrot.slane %v1031_v53, 1  ;;  %v1042_v11 = vadd.f32 %v1041_v1, %v1040_v31  ;;  %v1049_v51 = vadd.f32 %v1048_v44, %v1047_v46 }
 0x333   :  { %v1145_v55 = vrot.slane %v1144_v4, 1  ;;  %v1135_v47 = vadd.f32 %v1134_v15, %v1133_v3  ;;  %v7996_v22 = vmul.f32 0.03125, %v1024_v0  ;;  %v1151_v26 = vadd.f32 %v1150_v48, %v1149_v57 }
 0x334   :  { %v1128_v30 = vadd.f32 %v1127_v24, %v1126_v50  ;;  %v1033_v32 = vadd.f32 %v1032_v23, %v1031_v53  ;;  %v7998_v61 = vmul.f32 0.03125, %v1042_v11  ;;  %v1050_v25 = vrot.slane %v1049_v51, 1 }
 0x335   :  { %v1146_v8 = vadd.f32 %v1145_v55, %v1144_v4  ;;  %v1136_v62 = vrot.slane %v1135_v47, 1  ;;  %v1176_v16 = vmul.f32 %v7996_v22, %v7996_v22  ;;  %v1152_v1 = vrot.slane %v1151_v26, 2 }
 0x336   :  { %v1168_v38 = vmul.f32 0.03125, %v1128_v30  ;;  %v8002_v21 = vmul.f32 0.03125, %v1033_v32  ;;  %v1178_v41 = vmul.f32 %v7998_v61, %v7998_v61  ;;  %v1051_v5 = vadd.f32 %v1050_v25, %v1049_v51 }
 0x337   :  { %v1170_v31 = vmul.f32 0.03125, %v1146_v8  ;;  %v1137_v3 = vadd.f32 %v1136_v62, %v1135_v47  ;;  %v1153_v44 = vadd.f32 %v1152_v1, %v1151_v26  ;;  %v6278_v26 = vld [vmem:[%s8870_s11 + $0x2] ss:$8 sm:$0xf0] }
 0x338   :  { %v1184_v46 = vsub.f32 %v1168_v38, %v1176_v16  ;;  %v1177_v23 = vmul.f32 %v8002_v21, %v8002_v21  ;;  %v1163_v0 = vmul.f32 0.03125, %v1051_v5  ;;  %v6277_v5 = vld [vmem:[%s8870_s11 + $0x2] ss:$8 sm:$0xf] }
 0x339   :  { %v1186_v10 = vsub.f32 %v1170_v31, %v1178_v41  ;;  %v1169_v50 = vmul.f32 0.03125, %v1137_v3  ;;  %v1154_v11 = vrot.slane %v1153_v44, 1  ;;  %v1199_v1 = vor.u32 %v6278_v26, %v6277_v5 }
 0x33a   :  { %v1192_v53 = vmax.f32 %v1184_v46, 0.0  ;;  %v1179_v32 = vmul.f32 %v1163_v0, %v1163_v0 }
 0x33b   :  { %v1185_v4 = vsub.f32 %v1169_v50, %v1177_v23  ;;  %v1194_v30 = vmax.f32 %v1186_v10, 0.0  ;;  %v1155_v47 = vadd.f32 %v1154_v11, %v1153_v44  ;;  %v8950_v50 = vcombine.low %v7989_v13, %v7992_v12  ;;  %v8029_v44 = vld [vmem:[%s8871_s12 + $0x2] ss:$8 sm:$0xf0] }
 0x33c   :  { %v1208_v15 = vadd.f32 1e-05, %v1192_v53  ;;  %v8032_v11 = vsub.s32 3, %v7694_v14  ;;  %v8035_v13 = vsub.s32 4, %v7694_v14  ;;  %v8038_v12 = vsub.s32 5, %v7694_v14 }
 0x33d   :  { %v1193_v24 = vmax.f32 %v1185_v4, 0.0  ;;  %v1171_v8 = vmul.f32 0.03125, %v1155_v47  ;;  %v1210_v62 = vadd.f32 1e-05, %v1194_v30  ;;  %v1268_v53 = vrot.slane %v8950_v50, %v7946_v56 }
 0x33e   :  { %7349 = vrsqrt.f32 %v1208_v15  ;;  %v8024_v15 = vld [vmem:[%s8871_s12 + $0x2] ss:$8 sm:$0xf]  ;;  %8951 = vst [vmem:[#allocation40_spill] sm:$0xff] %v8035_v13  ;;  %8952 = vst [vmem:[#allocation41_spill] sm:$0xff] %v8038_v12  ;;  %v8044_v30 = vsub.s32 7, %v7694_v14 }
 0x33f   :  { %v1209_v55 = vadd.f32 1e-05, %v1193_v24  ;;  %v1187_v51 = vsub.f32 %v1171_v8, %v1179_v32  ;;  %v1203_v32 = vor.u32 %v8029_v44, %v8024_v15 }
 0x340   :  { %8954 = vst [vmem:[#allocation43_spill] sm:$0xff] %v8044_v30 }
 0x341   :  { %7351 = vrsqrt.f32 %v1209_v55  ;;  %v1195_v57 = vmax.f32 %v1187_v51, 0.0  ;;  %v8041_v55 = vsub.s32 6, %v7694_v14 }
 0x342   :  { %7353 = vrsqrt.f32 %v1210_v62 }
 0x343   :  { %v1211_v25 = vadd.f32 1e-05, %v1195_v57  ;;  %8953 = vst [vmem:[#allocation42_spill] sm:$0xff] %v8041_v55 }
 0x345   :  { %7355 = vrsqrt.f32 %v1211_v25 }
 0x348   :  { %v7350_v38 = vpop.eup %7349 }
 0x34b   :  { %v7352_v16 = vpop.eup %7351 }
 0x34c   :  { %v1230_v48 = vcombine.low %v7350_v38, %v7352_v16  ;;  %v7354_v31 = vpop.eup %7353 }
 0x34e   :  { %v1252_v3 = vrot.slane %v1230_v48, %v7946_v56 }
 0x34f   :  { %v7356_v41 = vpop.eup %7355 }
 0x350   :  { %v1231_v46 = vcombine.low %v7354_v31, %v7356_v41 }
 0x352   :  { %v1259_v23 = vrot.slane %v1231_v46, %v7946_v56 }
 0x354   :  { %v1261_v10 = vcombine.low %v1252_v3, %v1259_v23 }
 0x356   :  { %v1275_v4 = vrot.slane %v1261_v10, %v7946_v56 }
 0x358   :  { %v1276_v24 = vcombine.low %v1268_v53, %v1275_v4 }
 0x35a   :  { %v1278_v47 = vmul.f32 %v1276_v24, %v1199_v1 }
 0x35c   :  { %v1283_v8 = vrot.slane %v1278_v47, %v7704_v18  ;;  %v1287_v62 = vrot.slane %v1278_v47, %v7701_v17  ;;  %v1291_v51 = vrot.slane %v1278_v47, %v7710_v20  ;;  %v1295_v57 = vrot.slane %v1278_v47, %v8032_v11 }
 0x35d   :  { %v1299_v25 = vrot.slane %v1278_v47, %v8035_v13  ;;  %v1303_v38 = vrot.slane %v1278_v47, %v8038_v12  ;;  %v1307_v16 = vrot.slane %v1278_v47, %v8041_v55  ;;  %v1311_v48 = vrot.slane %v1278_v47, %v8044_v30 }
 0x35e   :  { %v1320_v31 = vmul.f32 %v1283_v8, %v7888_v49  ;;  %v1321_v41 = vmul.f32 %v1287_v62, %v7894_v36  ;;  %v1322_v3 = vmul.f32 %v1291_v51, %v7890_v58  ;;  %v1323_v46 = vmul.f32 %v1295_v57, %v7898_v27 }
 0x35f   :  { %v1324_v23 = vmul.f32 %v1299_v25, %v7996_v22  ;;  %v1325_v5 = vmul.f32 %v1303_v38, %v8002_v21  ;;  %v1326_v26 = vmul.f32 %v1307_v16, %v7998_v61  ;;  %v1327_v10 = vmul.f32 %v1311_v48, %v1163_v0 }
 0x360   :  { %v1336_v50 = vcombine.low %v1320_v31, %v1321_v41  ;;  %v1337_v53 = vcombine.low %v1322_v3, %v1323_v46  ;;  %v1410_v1 = vmul.f32 %v1311_v48, %v7960_v19  ;;  %v1418_v4 = vmul.f32 %v1311_v48, %v7977_v54 }
 0x361   :  { %v1338_v49 = vcombine.low %v1324_v23, %v1325_v5  ;;  %v1339_v15 = vcombine.low %v1326_v26, %v1327_v10  ;;  %v1388_v36 = vmul.f32 %v1287_v62, %v7810_v42  ;;  %v1396_v58 = vmul.f32 %v1287_v62, %v7834_v59 }
 0x362   :  { %v1346_v27 = vrot.slane %v1336_v50, %v7946_v56  ;;  %v1353_v22 = vrot.slane %v1337_v53, %v7946_v56  ;;  %v1404_v21 = vmul.f32 %v1287_v62, %v7858_v28  ;;  %v1412_v61 = vmul.f32 %v1287_v62, %v7875_v63  ;;  %v8963_v50 = vld [vmem:[#allocation33_spill] sm:$0xff] }
 0x363   :  { %v1360_v0 = vrot.slane %v1338_v49, %v7946_v56  ;;  %v1367_v19 = vrot.slane %v1339_v15, %v7946_v56  ;;  %v1387_v54 = vmul.f32 %v1283_v8, %v7806_v39  ;;  %v1395_v44 = vmul.f32 %v1283_v8, %v7822_v34  ;;  %v8964_v49 = vld [vmem:[#allocation36_spill] sm:$0xff] }
 0x364   :  { %v1368_v24 = vcombine.low %v1346_v27, %v1353_v22  ;;  %v1403_v42 = vmul.f32 %v1283_v8, %v7846_v52  ;;  %v1411_v59 = vmul.f32 %v1283_v8, %v7868_v33  ;;  %v1390_v47 = vmul.f32 %v1295_v57, %v7812_v7  ;;  %v8956_v8 = vld [vmem:[#allocation29_spill] sm:$0xff]  ;;  %v8965_v22 = vld [vmem:[#allocation38_spill] sm:$0xff] }
 0x365   :  { %v1369_v31 = vcombine.low %v1360_v0, %v1367_v19  ;;  %v1398_v28 = vmul.f32 %v1295_v57, %v7836_v60  ;;  %v1406_v63 = vmul.f32 %v1295_v57, %v7860_v29  ;;  %v1414_v62 = vmul.f32 %v1295_v57, %v7877_v2  ;;  %v8955_v2 = vld [vmem:[#allocation39_spill] sm:$0xff]  ;;  %v8957_v57 = vld [vmem:[#allocation32_spill] sm:$0xff] }
 0x366   :  { %v1376_v41 = vrot.slane %v1368_v24, %v7946_v56  ;;  %v8083_v39 = vmul.f32 %v1291_v51, %v7808_v40  ;;  %v8086_v34 = vmul.f32 %v1291_v51, %v7824_v35  ;;  %v8089_v52 = vmul.f32 %v1291_v51, %v7848_v9 }
 0x367   :  { %v1383_v7 = vrot.slane %v1369_v31, %v7946_v56  ;;  %v8093_v33 = vmul.f32 %v1291_v51, %v7870_v45  ;;  %v8096_v60 = vmul.f32 %v1303_v38, %v7913_v43  ;;  %v8099_v29 = vmul.f32 %v1303_v38, %v7929_v37  ;;  %v8958_v51 = vld [vmem:[#allocation35_spill] sm:$0xff]  ;;  %v8959_v43 = vld [vmem:[#allocation37_spill] sm:$0xff] }
 0x368   :  { %v8102_v40 = vmul.f32 %v1303_v38, %v7958_v6  ;;  %v8105_v35 = vmul.f32 %v1303_v38, %v8955_v2  ;;  %v8108_v9 = vmul.f32 %v1299_v25, %v8956_v8  ;;  %v8111_v3 = vmul.f32 %v1299_v25, %v8957_v57  ;;  %v8960_v37 = vld [vmem:[#allocation31_spill] sm:$0xff]  ;;  %v8961_v6 = vld [vmem:[#allocation34_spill] sm:$0xff] }
 0x369   :  { %v1384_v45 = vcombine.low %v1376_v41, %v1383_v7  ;;  %v8114_v46 = vmul.f32 %v1299_v25, %v8958_v51  ;;  %v8117_v23 = vmul.f32 %v1299_v25, %v8959_v43  ;;  %v8120_v5 = vmul.f32 %v1311_v48, %v8960_v37  ;;  %v8962_v38 = vld [vmem:[#allocation30_spill] sm:$0xff] }
 0x36a   :  { %v8123_v26 = vmul.f32 %v1311_v48, %v8961_v6  ;;  %v8126_v10 = vmul.f32 %v1307_v16, %v8962_v38  ;;  %v8129_v53 = vmul.f32 %v1307_v16, %v8963_v50  ;;  %v8132_v15 = vmul.f32 %v1307_v16, %v8964_v49 }
 0x36b   :  { %v1386_v27 = vsub.f32 %v1203_v32, %v1384_v45  ;;  %v8135_v0 = vmul.f32 %v1307_v16, %v8965_v22 }
 0x36d   :  { %v8138_v25 = vrot.slane %v1386_v27, %v8044_v30  ;;  %v1427_v19 = vrot.slane %v1386_v27, %v7701_v17  ;;  %v1423_v48 = vrot.slane %v1386_v27, %v7704_v18  ;;  %v1435_v24 = vrot.slane %v1386_v27, %v8032_v11 }
 0x36e   :  { %v8144_v31 = vrot.slane %v1386_v27, %v7710_v20  ;;  %v8147_v41 = vrot.slane %v1386_v27, %v8038_v12  ;;  %v8150_v32 = vrot.slane %v1386_v27, %v8035_v13  ;;  %v8153_v16 = vrot.slane %v1386_v27, %v8041_v55 }
 0x36f   :  { %v1483_v7 = vadd.f32 %v8138_v25, %v1410_v1  ;;  %v1491_v2 = vadd.f32 %v8138_v25, %v1418_v4  ;;  %v1461_v8 = vadd.f32 %v1427_v19, %v1388_v36  ;;  %v1469_v57 = vadd.f32 %v1427_v19, %v1396_v58 }
 0x370   :  { %v1477_v45 = vadd.f32 %v1427_v19, %v1404_v21  ;;  %v1485_v51 = vadd.f32 %v1427_v19, %v1412_v61  ;;  %v1460_v43 = vadd.f32 %v1423_v48, %v1387_v54  ;;  %v1468_v37 = vadd.f32 %v1423_v48, %v1395_v44 }
 0x371   :  { %v1515_v6 = vmax.f32 %v1483_v7, 0.0  ;;  %v1523_v38 = vmax.f32 %v1491_v2, 0.0  ;;  %v1493_v50 = vmax.f32 %v1461_v8, 0.0  ;;  %v1501_v49 = vmax.f32 %v1469_v57, 0.0 }
 0x372   :  { %v1509_v22 = vmax.f32 %v1477_v45, 0.0  ;;  %v1517_v14 = vmax.f32 %v1485_v51, 0.0  ;;  %v1476_v30 = vadd.f32 %v1423_v48, %v1403_v42  ;;  %v1484_v12 = vadd.f32 %v1423_v48, %v1411_v59 }
 0x373   :  { %v1629_v27 = vmax.f32 %v1515_v6, %v1523_v38  ;;  %v1531_v55 = vmax.f32 %v1493_v50, %v1501_v49  ;;  %v1492_v13 = vmax.f32 %v1460_v43, 0.0  ;;  %v1500_v1 = vmax.f32 %v1468_v37, 0.0 }
 0x374   :  { %v1587_v17 = vmax.f32 %v1509_v22, %v1517_v14  ;;  %v1508_v4 = vmax.f32 %v1476_v30, 0.0  ;;  %v1516_v36 = vmax.f32 %v1484_v12, 0.0  ;;  %v1463_v58 = vadd.f32 %v1435_v24, %v1390_v47 }
 0x375   :  { %v1630_v21 = vrot.slane %v1629_v27, 4  ;;  %v1532_v61 = vrot.slane %v1531_v55, 4  ;;  %v1524_v54 = vmax.f32 %v1492_v13, %v1500_v1  ;;  %v1471_v44 = vadd.f32 %v1435_v24, %v1398_v28 }
 0x376   :  { %v1588_v19 = vrot.slane %v1587_v17, 4  ;;  %v1580_v7 = vmax.f32 %v1508_v4, %v1516_v36  ;;  %v1479_v2 = vadd.f32 %v1435_v24, %v1406_v63  ;;  %v1487_v8 = vadd.f32 %v1435_v24, %v1414_v62 }
 0x377   :  { %v8157_v57 = vmax.f32 %v1629_v27, %v1630_v21  ;;  %v1533_v42 = vmax.f32 %v1531_v55, %v1532_v61  ;;  %v1525_v59 = vrot.slane %v1524_v54, 4  ;;  %v1495_v48 = vmax.f32 %v1463_v58, 0.0 }
 0x378   :  { %v1589_v45 = vmax.f32 %v1587_v17, %v1588_v19  ;;  %v1581_v51 = vrot.slane %v1580_v7, 4  ;;  %v1503_v43 = vmax.f32 %v1471_v44, 0.0  ;;  %v1511_v14 = vmax.f32 %v1479_v2, 0.0 }
 0x379   :  { %v1632_v12 = vrot.slane %v8157_v57, 2  ;;  %v1534_v30 = vrot.slane %v1533_v42, 2  ;;  %v1526_v47 = vmax.f32 %v1524_v54, %v1525_v59  ;;  %v1519_v37 = vmax.f32 %v1487_v8, 0.0 }
 0x37a   :  { %v1590_v13 = vrot.slane %v1589_v45, 2  ;;  %v1582_v28 = vmax.f32 %v1580_v7, %v1581_v51  ;;  %v1545_v6 = vmax.f32 %v1495_v48, %v1503_v43  ;;  %v1462_v63 = vadd.f32 %v8144_v31, %v8083_v39 }
 0x37b   :  { %v1535_v62 = vmax.f32 %v1533_v42, %v1534_v30  ;;  %v1527_v55 = vrot.slane %v1526_v47, 2  ;;  %v1601_v24 = vmax.f32 %v1511_v14, %v1519_v37  ;;  %v1470_v17 = vadd.f32 %v8144_v31, %v8086_v34 }
 0x37c   :  { %v1591_v38 = vmax.f32 %v1589_v45, %v1590_v13  ;;  %v1583_v50 = vrot.slane %v1582_v28, 2  ;;  %v1546_v49 = vrot.slane %v1545_v6, 4  ;;  %v1478_v22 = vadd.f32 %v8144_v31, %v8089_v52 }
 0x37d   :  { %v1536_v27 = vrot.slane %v1535_v62, 1  ;;  %v1528_v1 = vmax.f32 %v1526_v47, %v1527_v55  ;;  %v1602_v4 = vrot.slane %v1601_v24, 4  ;;  %v1486_v36 = vadd.f32 %v8144_v31, %v8093_v33 }
 0x37e   :  { %v1592_v39 = vrot.slane %v1591_v38, 1  ;;  %v1584_v58 = vmax.f32 %v1582_v28, %v1583_v50  ;;  %v1547_v21 = vmax.f32 %v1545_v6, %v1546_v49  ;;  %v1494_v61 = vmax.f32 %v1462_v63, 0.0 }
 0x37f   :  { %v1537_v54 = vmax.f32 %v1535_v62, %v1536_v27  ;;  %v1529_v44 = vrot.slane %v1528_v1, 1  ;;  %v1603_v19 = vmax.f32 %v1601_v24, %v1602_v4  ;;  %v1502_v34 = vmax.f32 %v1470_v17, 0.0 }
 0x380   :  { %v1593_v7 = vmax.f32 %v1591_v38, %v1592_v39  ;;  %v1585_v2 = vrot.slane %v1584_v58, 1  ;;  %v1548_v8 = vrot.slane %v1547_v21, 2  ;;  %v1510_v42 = vmax.f32 %v1478_v22, 0.0  ;;  %v6949_v39 = vld [vmem:[#allocation5 + $0x200] ss:$16 sps:$4 sm:$0xff]  }
 0x381   :  { %v1893_v59 = vpack.c.bf16 %v1537_v54, %v1537_v54  ;;  %v1530_v52 = vmax.f32 %v1528_v1, %v1529_v44  ;;  %v1604_v48 = vrot.slane %v1603_v19, 2  ;;  %v1518_v45 = vmax.f32 %v1486_v36, 0.0 }
 0x382   :  { %v1901_v51 = vpack.c.bf16 %v1593_v7, %v1593_v7  ;;  %v1586_v43 = vmax.f32 %v1584_v58, %v1585_v2  ;;  %v1549_v14 = vmax.f32 %v1547_v21, %v1548_v8  ;;  %v1538_v33 = vmax.f32 %v1494_v61, %v1502_v34  ;;  %v6952_v58 = vld [vmem:[#allocation5 + $0x208] ss:$16 sps:$4 sm:$0xff]   ;;  %v6957_v34 = vld [vmem:[#allocation5 + $0x224] ss:$16 sps:$4 sm:$0xff]   ;;  %v6960_v7 = vld [vmem:[#allocation5 + $0x22c] ss:$16 sps:$4 sm:$0xff]  }
 0x383   :  { %v1925_v31 = vunpack.c.l.b16 %v1893_v59  ;;  %v1892_v30 = vpack.c.bf16 %v1530_v52, %v1530_v52  ;;  %v1605_v47 = vmax.f32 %v1603_v19, %v1604_v48  ;;  %v1594_v37 = vmax.f32 %v1510_v42, %v1518_v45 }
 0x384   :  { %v1933_v13 = vunpack.c.l.b16 %v1901_v51  ;;  %v1900_v28 = vpack.c.bf16 %v1586_v43, %v1586_v43  ;;  %v1550_v6 = vrot.slane %v1549_v14, 1  ;;  %v1539_v63 = vrot.slane %v1538_v33, 4 }
 0x385   :  { %v1924_v62 = vunpack.c.l.b16 %v1892_v30  ;;  %v1606_v55 = vrot.slane %v1605_v47, 1  ;;  %v1595_v24 = vrot.slane %v1594_v37, 4  ;;  %v1465_v17 = vadd.f32 %v8147_v41, %v8096_v60  ;;  %v6958_v30 = vld [vmem:[#allocation5 + $0x228] ss:$16 sps:$4 sm:$0xff]  }
 0x386   :  { %v1942_v38 = vsel %vm1940_vm1, %v1933_v13, %v1925_v31  ;;  %v1932_v50 = vunpack.c.l.b16 %v1900_v28  ;;  %v1551_v49 = vmax.f32 %v1549_v14, %v1550_v6  ;;  %v1540_v22 = vmax.f32 %v1538_v33, %v1539_v63  ;;  %v6955_v31 = vld [vmem:[#allocation5 + $0x220] ss:$16 sps:$4 sm:$0xff]   ;;  %v6963_v6 = vld [vmem:[#allocation5 + $0x244] ss:$16 sps:$4 sm:$0xff]   ;;  %v6966_v63 = vld [vmem:[#allocation5 + $0x24c] ss:$16 sps:$4 sm:$0xff]  }
 0x387   :  { %v1950_v27 = vpack.c.b16 %v1942_v38, %v1942_v38  ;;  %v1607_v1 = vmax.f32 %v1605_v47, %v1606_v55  ;;  %v1596_v4 = vmax.f32 %v1594_v37, %v1595_v24  ;;  %v1473_v36 = vadd.f32 %v8147_v41, %v8099_v29 }
 0x388   :  { %v1941_v21 = vsel %vm1940_vm1, %v1932_v50, %v1924_v62  ;;  %v1895_v61 = vpack.c.bf16 %v1551_v49, %v1551_v49  ;;  %v1541_v54 = vrot.slane %v1540_v22, 2  ;;  %v1481_v60 = vadd.f32 %v8147_v41, %v8102_v40 }
 0x389   :  { %3277 = vmatprep.mubr.bf16.mxu1 %v1950_v27  ;;  %3441 = vmatprep.mubr.bf16.mxu0 %v1950_v27  ;;  %v1949_v44 = vpack.c.b16 %v1941_v21, %v1941_v21  ;;  %v1903_v19 = vpack.c.bf16 %v1607_v1, %v1607_v1  ;;  %v1597_v2 = vrot.slane %v1596_v4, 2  ;;  %v1489_v8 = vadd.f32 %v8147_v41, %v8105_v35  ;;  %v6964_v1 = vld [vmem:[#allocation5 + $0x248] ss:$16 sps:$4 sm:$0xff]  }
 0x38a   :  { %v1927_v29 = vunpack.c.l.b16 %v1895_v61  ;;  %v1542_v42 = vmax.f32 %v1540_v22, %v1541_v54  ;;  %v1497_v59 = vmax.f32 %v1465_v17, 0.0  ;;  %v1505_v52 = vmax.f32 %v1473_v36, 0.0 }
 0x38b   :  { %3278 = vmatmul.mubr.bf16.vlgmr.msra.gmra.mrb[16].mxu1 %v1949_v44  ;;  %3442 = vmatmul.mubr.bf16.vlgmr.msra.gmra.mrb[20].mxu0 %v1949_v44  ;;  %v1935_v48 = vunpack.c.l.b16 %v1903_v19  ;;  %v1598_v45 = vmax.f32 %v1596_v4, %v1597_v2  ;;  %v1513_v51 = vmax.f32 %v1481_v60, 0.0  ;;  %v1521_v40 = vmax.f32 %v1489_v8, 0.0 }
 0x38c   :  { %3287 = vmatpush1.bf16.msra.mxu1 %v6949_v39  ;;  %3451 = vmatpush1.bf16.msra.mxu0 %v6952_v58  ;;  %v1543_v43 = vrot.slane %v1542_v42, 1  ;;  %v1559_v14 = vmax.f32 %v1497_v59, %v1505_v52  ;;  %v1464_v33 = vadd.f32 %v8150_v32, %v8108_v9  ;;  %v1472_v35 = vadd.f32 %v8150_v32, %v8111_v3  ;;  %v6970_v59 = vld [vmem:[#allocation5 + $0x268] ss:$16 sps:$4 sm:$0xff]  }
 0x38d   :  { %v1944_v41 = vsel %vm1940_vm1, %v1935_v48, %v1927_v29  ;;  %3288 = vmatprep.subr.bf16.mxu1 %v6957_v34  ;;  %3452 = vmatprep.subr.bf16.mxu0 %v6960_v7  ;;  %v1599_v47 = vrot.slane %v1598_v45, 1  ;;  %v1615_v37 = vmax.f32 %v1513_v51, %v1521_v40  ;;  %v1480_v13 = vadd.f32 %v8150_v32, %v8114_v46  ;;  %v6961_v46 = vld [vmem:[#allocation5 + $0x240] ss:$16 sps:$4 sm:$0xff]  }
 0x38e   :  { %v1952_v28 = vpack.c.b16 %v1944_v41, %v1944_v41  ;;  %v1544_v62 = vmax.f32 %v1542_v42, %v1543_v43  ;;  %v1560_v55 = vrot.slane %v1559_v14, 4  ;;  %v1488_v9 = vadd.f32 %v8150_v32, %v8117_v23  ;;  %v6969_v23 = vld [vmem:[#allocation5 + $0x264] ss:$16 sps:$4 sm:$0xff]   ;;  %v6972_v32 = vld [vmem:[#allocation5 + $0x26c] ss:$16 sps:$4 sm:$0xff]  }
 0x38f   :  { %v1600_v3 = vmax.f32 %v1598_v45, %v1599_v47  ;;  %v1616_v24 = vrot.slane %v1615_v37, 4  ;;  %v1496_v17 = vmax.f32 %v1464_v33, 0.0  ;;  %v1504_v38 = vmax.f32 %v1472_v35, 0.0  ;;  %v6967_v42 = vld [vmem:[#allocation5 + $0x260] ss:$16 sps:$4 sm:$0xff]  }
 0x390   :  { %3318 = vmatprep.mubr.bf16.mxu1 %v1952_v28  ;;  %3482 = vmatprep.mubr.bf16.mxu0 %v1952_v28  ;;  %v1894_v50 = vpack.c.bf16 %v1544_v62, %v1544_v62  ;;  %v1561_v49 = vmax.f32 %v1559_v14, %v1560_v55  ;;  %v1512_v22 = vmax.f32 %v1480_v13, 0.0  ;;  %v1520_v27 = vmax.f32 %v1488_v9, 0.0  ;;  %v6976_v47 = vld [vmem:[#allocation5 + $0x288] ss:$16 sps:$4 sm:$0xff]  }
 0x391   :  { %3289 = vmatpush1.bf16.msra.mxu1 %v6955_v31  ;;  %3453 = vmatpush1.bf16.msra.mxu0 %v6958_v30  ;;  %v1902_v4 = vpack.c.bf16 %v1600_v3, %v1600_v3  ;;  %v1617_v36 = vmax.f32 %v1615_v37, %v1616_v24  ;;  %v1552_v39 = vmax.f32 %v1496_v17, %v1504_v38  ;;  %v6973_v30 = vld [vmem:[#allocation5 + $0x280] ss:$16 sps:$4 sm:$0xff]  }
 0x392   :  { %3290 = vmatprep.subr.bf16.mxu1 %v6963_v6  ;;  %3454 = vmatprep.subr.bf16.mxu0 %v6966_v63  ;;  %v1926_v58 = vunpack.c.l.b16 %v1894_v50  ;;  %v1562_v21 = vrot.slane %v1561_v49, 2  ;;  %v1608_v61 = vmax.f32 %v1512_v22, %v1520_v27  ;;  %v1467_v54 = vadd.f32 %v8138_v25, %v8120_v5  ;;  %v6981_v63 = vld [vmem:[#allocation5 + $0x2a4] ss:$16 sps:$4 sm:$0xff]   ;;  %v6979_v22 = vld [vmem:[#allocation5 + $0x2a0] ss:$16 sps:$4 sm:$0xff]  }
 0x393   :  { %v1934_v60 = vunpack.c.l.b16 %v1902_v4  ;;  %v1618_v44 = vrot.slane %v1617_v36, 2  ;;  %v1553_v19 = vrot.slane %v1552_v39, 4  ;;  %v1475_v34 = vadd.f32 %v8138_v25, %v8123_v26  ;;  %v6975_v26 = vld [vmem:[#allocation5 + $0x284] ss:$16 sps:$4 sm:$0xff]   ;;  %v6978_v25 = vld [vmem:[#allocation5 + $0x28c] ss:$16 sps:$4 sm:$0xff]  }
 0x394   :  { %v1563_v7 = vmax.f32 %v1561_v49, %v1562_v21  ;;  %v1609_v2 = vrot.slane %v1608_v61, 4  ;;  %v1499_v8 = vmax.f32 %v1467_v54, 0.0  ;;  %v1633_v29 = vmax.f32 %v8157_v57, %v1632_v12 }
 0x395   :  { %3291 = vmatpush1.bf16.msra.mxu1 %v6961_v46  ;;  %3455 = vmatpush1.bf16.msra.mxu0 %v6964_v1  ;;  %v8195_v52 = vsel %vm1940_vm1, %v1934_v60, %v1926_v58  ;;  %v1619_v5 = vmax.f32 %v1617_v36, %v1618_v44  ;;  %v1554_v48 = vmax.f32 %v1552_v39, %v1553_v19  ;;  %v1507_v45 = vmax.f32 %v1475_v34, 0.0  ;;  %v6987_v36 = vld [vmem:[#allocation5 + $0x2c4] ss:$16 sps:$4 sm:$0xff]   ;;  %v6990_v39 = vld [vmem:[#allocation5 + $0x2cc] ss:$16 sps:$4 sm:$0xff]  }
 0x396   :  { %3292 = vmatprep.subr.bf16.mxu1 %v6969_v23  ;;  %3456 = vmatprep.subr.bf16.mxu0 %v6972_v32  ;;  %v1564_v51 = vrot.slane %v1563_v7, 1  ;;  %v1610_v40 = vmax.f32 %v1608_v61, %v1609_v2  ;;  %v1466_v57 = vadd.f32 %v8153_v16, %v8126_v10  ;;  %v1634_v41 = vrot.slane %v1633_v29, 1  ;;  %v6984_v10 = vld [vmem:[#allocation5 + $0x2ac] ss:$16 sps:$4 sm:$0xff]   ;;  %v6985_v60 = vld [vmem:[#allocation5 + $0x2c0] ss:$16 sps:$4 sm:$0xff]  }
 0x397   :  { %v1620_v43 = vrot.slane %v1619_v5, 1  ;;  %v1555_v14 = vrot.slane %v1554_v48, 2  ;;  %v1573_v33 = vmax.f32 %v1499_v8, %v1507_v45  ;;  %v1474_v31 = vadd.f32 %v8153_v16, %v8129_v53  ;;  %v6988_v44 = vld [vmem:[#allocation5 + $0x2c8] ss:$16 sps:$4 sm:$0xff]   ;;  %v6993_v2 = vld [vmem:[#allocation5 + $0x2e4] ss:$16 sps:$4 sm:$0xff]  }
 0x398   :  { %v1565_v12 = vmax.f32 %v1563_v7, %v1564_v51  ;;  %v1611_v35 = vrot.slane %v1610_v40, 2  ;;  %v1482_v6 = vadd.f32 %v8153_v16, %v8132_v15  ;;  %v1490_v53 = vadd.f32 %v8153_v16, %v8135_v0  ;;  %v6982_v15 = vld [vmem:[#allocation5 + $0x2a8] ss:$16 sps:$4 sm:$0xff]   ;;  %v6996_v8 = vld [vmem:[#allocation5 + $0x2ec] ss:$16 sps:$4 sm:$0xff]  }
 0x399   :  { %3293 = vmatpush1.bf16.msra.mxu1 %v6967_v42  ;;  %3457 = vmatpush1.bf16.msra.mxu0 %v6970_v59  ;;  %v1621_v37 = vmax.f32 %v1619_v5, %v1620_v43  ;;  %v1556_v13 = vmax.f32 %v1554_v48, %v1555_v14  ;;  %v1574_v28 = vrot.slane %v1573_v33, 4  ;;  %v1635_v50 = vmax.f32 %v1633_v29, %v1634_v41  ;;  %v6999_v14 = vld [vmem:[#allocation5 + $0x304] ss:$16 sps:$4 sm:$0xff]  }
 0x39a   :  { %3294 = vmatprep.subr.bf16.mxu1 %v6975_v26  ;;  %3458 = vmatprep.subr.bf16.mxu0 %v6978_v25  ;;  %v1897_v62 = vpack.c.bf16 %v1565_v12, %v1565_v12  ;;  %v1612_v55 = vmax.f32 %v1610_v40, %v1611_v35  ;;  %v1498_v49 = vmax.f32 %v1466_v57, 0.0  ;;  %v1506_v4 = vmax.f32 %v1474_v31, 0.0  ;;  %v6991_v26 = vld [vmem:[#allocation5 + $0x2e0] ss:$16 sps:$4 sm:$0xff]   ;;  %v6994_v25 = vld [vmem:[#allocation5 + $0x2e8] ss:$16 sps:$4 sm:$0xff]  }
 0x39b   :  { %v1905_v9 = vpack.c.bf16 %v1621_v37, %v1621_v37  ;;  %v1557_v3 = vrot.slane %v1556_v13, 1  ;;  %v1575_v24 = vmax.f32 %v1573_v33, %v1574_v28  ;;  %v1514_v58 = vmax.f32 %v1482_v6, 0.0  ;;  %v7002_v33 = vld [vmem:[#allocation5 + $0x30c] ss:$16 sps:$4 sm:$0xff]   ;;  %v6997_v31 = vld [vmem:[#allocation5 + $0x300] ss:$16 sps:$4 sm:$0xff]  }
 0x39c   :  { %v1929_v17 = vunpack.c.l.b16 %v1897_v62  ;;  %v1613_v38 = vrot.slane %v1612_v55, 1  ;;  %v1522_v61 = vmax.f32 %v1490_v53, 0.0  ;;  %v1566_v54 = vmax.f32 %v1498_v49, %v1506_v4  ;;  %v7008_v28 = vld [vmem:[#allocation5 + $0x32c] ss:$16 sps:$4 sm:$0xff]   ;;  %v7003_v62 = vld [vmem:[#allocation5 + $0x320] ss:$16 sps:$4 sm:$0xff]  }
 0x39d   :  { %3295 = vmatpush1.bf16.msra.mxu1 %v6973_v30  ;;  %3459 = vmatpush1.bf16.msra.mxu0 %v6976_v47  ;;  %v1937_v27 = vunpack.c.l.b16 %v1905_v9  ;;  %v1558_v46 = vmax.f32 %v1556_v13, %v1557_v3  ;;  %v1576_v1 = vrot.slane %v1575_v24, 2  ;;  %v1907_v7 = vpack.c.bf16 %v1635_v50, %v1635_v50  ;;  %v7000_v30 = vld [vmem:[#allocation5 + $0x308] ss:$16 sps:$4 sm:$0xff]   ;;  %v7005_v13 = vld [vmem:[#allocation5 + $0x324] ss:$16 sps:$4 sm:$0xff]  }
 0x39e   :  { %3296 = vmatprep.subr.bf16.mxu1 %v6981_v63  ;;  %3460 = vmatprep.subr.bf16.mxu0 %v6984_v10  ;;  %v1614_v23 = vmax.f32 %v1612_v55, %v1613_v38  ;;  %v1622_v42 = vmax.f32 %v1514_v58, %v1522_v61  ;;  %v1567_v5 = vrot.slane %v1566_v54, 4  ;;  %v7006_v55 = vld [vmem:[#allocation5 + $0x328] ss:$16 sps:$4 sm:$0xff]   ;;  %v7011_v3 = vld [vmem:[#allocation5 + $0x344] ss:$16 sps:$4 sm:$0xff]  }
 0x39f   :  { %v8206_v32 = vsel %vm1940_vm1, %v1937_v27, %v1929_v17  ;;  %v1896_v0 = vpack.c.bf16 %v1558_v46, %v1558_v46  ;;  %v1577_v16 = vmax.f32 %v1575_v24, %v1576_v1  ;;  %v1939_v40 = vunpack.c.l.b16 %v1907_v7  ;;  %v7014_v24 = vld [vmem:[#allocation5 + $0x34c] ss:$16 sps:$4 sm:$0xff]   ;;  %v7009_v50 = vld [vmem:[#allocation5 + $0x340] ss:$16 sps:$4 sm:$0xff]   ;;  %v7012_v49 = vld [vmem:[#allocation5 + $0x348] ss:$16 sps:$4 sm:$0xff]  }
 0x3a0   :  { %v1904_v21 = vpack.c.bf16 %v1614_v23, %v1614_v23  ;;  %v1623_v45 = vrot.slane %v1622_v42, 4  ;;  %v1568_v43 = vmax.f32 %v1566_v54, %v1567_v5  ;;  %v7020_v27 = vld [vmem:[#allocation5 + $0x36c] ss:$16 sps:$4 sm:$0xff]   ;;  %v7015_v4 = vld [vmem:[#allocation5 + $0x360] ss:$16 sps:$4 sm:$0xff]  }
 0x3a1   :  { %3297 = vmatpush1.bf16.msra.mxu1 %v6979_v22  ;;  %3461 = vmatpush1.bf16.msra.mxu0 %v6982_v15  ;;  %v1928_v19 = vunpack.c.l.b16 %v1896_v0  ;;  %v1578_v34 = vrot.slane %v1577_v16, 1  ;;  %v7017_v15 = vld [vmem:[#allocation5 + $0x364] ss:$16 sps:$4 sm:$0xff]   ;;  %v7026_v23 = vld [vmem:[#allocation5 + $0x38c] ss:$16 sps:$4 sm:$0xff]  }
 0x3a2   :  { %3298 = vmatprep.subr.bf16.mxu1 %v6987_v36  ;;  %3462 = vmatprep.subr.bf16.mxu0 %v6990_v39  ;;  %v1936_v29 = vunpack.c.l.b16 %v1904_v21  ;;  %v1624_v57 = vmax.f32 %v1622_v42, %v1623_v45  ;;  %v1569_v35 = vrot.slane %v1568_v43, 2  ;;  %v7018_v36 = vld [vmem:[#allocation5 + $0x368] ss:$16 sps:$4 sm:$0xff]   ;;  %v7023_v39 = vld [vmem:[#allocation5 + $0x384] ss:$16 sps:$4 sm:$0xff]   ;;  %v1951_v45 = vpack.c.b16 %v8195_v52, %v8195_v52 }
 0x3a3   :  { %v1579_v59 = vmax.f32 %v1577_v16, %v1578_v34  ;;  %v7021_v0 = vld [vmem:[#allocation5 + $0x380] ss:$16 sps:$4 sm:$0xff]   ;;  %v7024_v16 = vld [vmem:[#allocation5 + $0x388] ss:$16 sps:$4 sm:$0xff]   ;;  %v7029_v58 = vld [vmem:[#allocation5 + $0x3a4] ss:$16 sps:$4 sm:$0xff]  }
 0x3a4   :  { %v8209_v48 = vsel %vm1940_vm1, %v1936_v29, %v1928_v19  ;;  %v1625_v41 = vrot.slane %v1624_v57, 2  ;;  %v1570_v37 = vmax.f32 %v1568_v43, %v1569_v35  ;;  %v7032_v21 = vld [vmem:[#allocation5 + $0x3ac] ss:$16 sps:$4 sm:$0xff]   ;;  %v7027_v61 = vld [vmem:[#allocation5 + $0x3a0] ss:$16 sps:$4 sm:$0xff]  }
 0x3a5   :  { %3299 = vmatpush1.bf16.msra.mxu1 %v6985_v60  ;;  %3463 = vmatpush1.bf16.msra.mxu0 %v6988_v44  ;;  %v1899_v51 = vpack.c.bf16 %v1579_v59, %v1579_v59  ;;  %v7030_v54 = vld [vmem:[#allocation5 + $0x3a8] ss:$16 sps:$4 sm:$0xff]   ;;  %v7035_v60 = vld [vmem:[#allocation5 + $0x3c4] ss:$16 sps:$4 sm:$0xff]   ;;  %v7038_v44 = vld [vmem:[#allocation5 + $0x3cc] ss:$16 sps:$4 sm:$0xff]  }
 0x3a6   :  { %3300 = vmatprep.subr.bf16.mxu1 %v6993_v2  ;;  %3464 = vmatprep.subr.bf16.mxu0 %v6996_v8  ;;  %v1626_v6 = vmax.f32 %v1624_v57, %v1625_v41  ;;  %v1571_v63 = vrot.slane %v1570_v37, 1  ;;  %v7033_v19 = vld [vmem:[#allocation5 + $0x3c0] ss:$16 sps:$4 sm:$0xff]   ;;  %v7036_v34 = vld [vmem:[#allocation5 + $0x3c8] ss:$16 sps:$4 sm:$0xff]  }
 0x3a7   :  { %v1931_v12 = vunpack.c.l.b16 %v1899_v51  ;;  %v7041_v7 = vld [vmem:[#allocation5 + $0x3e4] ss:$16 sps:$4 sm:$0xff]   ;;  %v7044_v2 = vld [vmem:[#allocation5 + $0x3ec] ss:$16 sps:$4 sm:$0xff]   ;;  %v7039_v8 = vld [vmem:[#allocation5 + $0x3e0] ss:$16 sps:$4 sm:$0xff]  }
 0x3a8   :  { %v1627_v10 = vrot.slane %v1626_v6, 1  ;;  %v1572_v9 = vmax.f32 %v1570_v37, %v1571_v63  ;;  %v7042_v29 = vld [vmem:[#allocation5 + $0x3e8] ss:$16 sps:$4 sm:$0xff]   ;;  %v7047_v42 = vld [vmem:[#allocation5 + $0x404] ss:$16 sps:$4 sm:$0xff]  }
 0x3a9   :  { %3301 = vmatpush1.bf16.msra.mxu1 %v6991_v26  ;;  %3465 = vmatpush1.bf16.msra.mxu0 %v6994_v25  ;;  %v8212_v47 = vsel %vm1940_vm1, %v1939_v40, %v1931_v12  ;;  %v7050_v59 = vld [vmem:[#allocation5 + $0x40c] ss:$16 sps:$4 sm:$0xff]   ;;  %v7045_v5 = vld [vmem:[#allocation5 + $0x400] ss:$16 sps:$4 sm:$0xff]   ;;  %v7048_v26 = vld [vmem:[#allocation5 + $0x408] ss:$16 sps:$4 sm:$0xff]   ;;  %v1954_v25 = vpack.c.b16 %v8206_v32, %v8206_v32 }
 0x3aa   :  { %3302 = vmatprep.subr.bf16.mxu1 %v6999_v14  ;;  %3466 = vmatprep.subr.bf16.mxu0 %v7002_v33  ;;  %v1628_v53 = vmax.f32 %v1626_v6, %v1627_v10  ;;  %v1898_v17 = vpack.c.bf16 %v1572_v9, %v1572_v9  ;;  %v7053_v51 = vld [vmem:[#allocation5 + $0x424] ss:$16 sps:$4 sm:$0xff]   ;;  %v7056_v40 = vld [vmem:[#allocation5 + $0x42c] ss:$16 sps:$4 sm:$0xff]   ;;  %v7051_v43 = vld [vmem:[#allocation5 + $0x420] ss:$16 sps:$4 sm:$0xff]  }
 0x3ab   :  { %v7054_v14 = vld [vmem:[#allocation5 + $0x428] ss:$16 sps:$4 sm:$0xff]   ;;  %v7059_v33 = vld [vmem:[#allocation5 + $0x444] ss:$16 sps:$4 sm:$0xff]   ;;  %v7062_v52 = vld [vmem:[#allocation5 + $0x44c] ss:$16 sps:$4 sm:$0xff]  }
 0x3ac   :  { %v1906_v38 = vpack.c.bf16 %v1628_v53, %v1628_v53  ;;  %v1930_v22 = vunpack.c.l.b16 %v1898_v17  ;;  %v7057_v57 = vld [vmem:[#allocation5 + $0x440] ss:$16 sps:$4 sm:$0xff]   ;;  %v7060_v12 = vld [vmem:[#allocation5 + $0x448] ss:$16 sps:$4 sm:$0xff]   ;;  %v7065_v32 = vld [vmem:[#allocation5 + $0x464] ss:$16 sps:$4 sm:$0xff]  }
 0x3ad   :  { %3303 = vmatpush1.bf16.msra.mxu1 %v6997_v31  ;;  %3467 = vmatpush1.bf16.msra.mxu0 %v7000_v30  ;;  %v7068_v35 = vld [vmem:[#allocation5 + $0x46c] ss:$16 sps:$4 sm:$0xff]   ;;  %v7063_v41 = vld [vmem:[#allocation5 + $0x460] ss:$16 sps:$4 sm:$0xff]   ;;  %v7066_v31 = vld [vmem:[#allocation5 + $0x468] ss:$16 sps:$4 sm:$0xff]  }
 0x3ae   :  { %3304 = vmatprep.subr.bf16.mxu1 %v7005_v13  ;;  %3468 = vmatprep.subr.bf16.mxu0 %v7008_v28  ;;  %v1938_v46 = vunpack.c.l.b16 %v1906_v38  ;;  %v7071_v30 = vld [vmem:[#allocation5 + $0x484] ss:$16 sps:$4 sm:$0xff]   ;;  %v7074_v37 = vld [vmem:[#allocation5 + $0x48c] ss:$16 sps:$4 sm:$0xff]   ;;  %v7069_v13 = vld [vmem:[#allocation5 + $0x480] ss:$16 sps:$4 sm:$0xff]  }
 0x3af   :  { %v7072_v28 = vld [vmem:[#allocation5 + $0x488] ss:$16 sps:$4 sm:$0xff]   ;;  %v7077_v6 = vld [vmem:[#allocation5 + $0x4a4] ss:$16 sps:$4 sm:$0xff]   ;;  %v7080_v63 = vld [vmem:[#allocation5 + $0x4ac] ss:$16 sps:$4 sm:$0xff]  }
 0x3b0   :  { %v8215_v1 = vsel %vm1940_vm1, %v1938_v46, %v1930_v22  ;;  %v7075_v10 = vld [vmem:[#allocation5 + $0x4a0] ss:$16 sps:$4 sm:$0xff]   ;;  %v7086_v9 = vld [vmem:[#allocation5 + $0x4cc] ss:$16 sps:$4 sm:$0xff]   ;;  %v7089_v53 = vld [vmem:[#allocation5 + $0x4e4] ss:$16 sps:$4 sm:$0xff]  }
 0x3b1   :  { %3305 = vmatpush1.bf16.msra.mxu1 %v7003_v62  ;;  %3469 = vmatpush1.bf16.msra.mxu0 %v7006_v55  ;;  %v7078_v62 = vld [vmem:[#allocation5 + $0x4a8] ss:$16 sps:$4 sm:$0xff]   ;;  %v7083_v55 = vld [vmem:[#allocation5 + $0x4c4] ss:$16 sps:$4 sm:$0xff]   ;;  %v7092_v17 = vld [vmem:[#allocation5 + $0x4ec] ss:$16 sps:$4 sm:$0xff]  }
 0x3b2   :  { %3306 = vmatprep.subr.bf16.mxu1 %v7011_v3  ;;  %3470 = vmatprep.subr.bf16.mxu0 %v7014_v24  ;;  %v7081_v3 = vld [vmem:[#allocation5 + $0x4c0] ss:$16 sps:$4 sm:$0xff]   ;;  %v7084_v24 = vld [vmem:[#allocation5 + $0x4c8] ss:$16 sps:$4 sm:$0xff]   ;;  %v7098_v22 = vld [vmem:[#allocation5 + $0x50c] ss:$16 sps:$4 sm:$0xff]  }
 0x3b3   :  { %v7087_v38 = vld [vmem:[#allocation5 + $0x4e0] ss:$16 sps:$4 sm:$0xff]   ;;  %v7101_v46 = vld [vmem:[#allocation5 + $0x524] ss:$16 sps:$4 sm:$0xff]  }
 0x3b5   :  { %3307 = vmatpush1.bf16.msra.mxu1 %v7009_v50  ;;  %3471 = vmatpush1.bf16.msra.mxu0 %v7012_v49  ;;  %v7090_v50 = vld [vmem:[#allocation5 + $0x4e8] ss:$16 sps:$4 sm:$0xff]   ;;  %v7095_v49 = vld [vmem:[#allocation5 + $0x504] ss:$16 sps:$4 sm:$0xff]  }
 0x3b6   :  { %3308 = vmatprep.subr.bf16.mxu1 %v7017_v15  ;;  %3472 = vmatprep.subr.bf16.mxu0 %v7020_v27  ;;  %v7093_v15 = vld [vmem:[#allocation5 + $0x500] ss:$16 sps:$4 sm:$0xff]   ;;  %v7096_v27 = vld [vmem:[#allocation5 + $0x508] ss:$16 sps:$4 sm:$0xff]  }
 0x3b9   :  { %3309 = vmatpush1.bf16.msra.mxu1 %v7015_v4  ;;  %3473 = vmatpush1.bf16.msra.mxu0 %v7018_v36  ;;  %v7104_v4 = vld [vmem:[#allocation5 + $0x52c] ss:$16 sps:$4 sm:$0xff]   ;;  %v7099_v36 = vld [vmem:[#allocation5 + $0x520] ss:$16 sps:$4 sm:$0xff]  }
 0x3ba   :  { %3310 = vmatprep.subr.bf16.mxu1 %v7023_v39  ;;  %3474 = vmatprep.subr.bf16.mxu0 %v7026_v23  ;;  %v7102_v39 = vld [vmem:[#allocation5 + $0x528] ss:$16 sps:$4 sm:$0xff]   ;;  %v7107_v23 = vld [vmem:[#allocation5 + $0x544] ss:$16 sps:$4 sm:$0xff]  }
 0x3bd   :  { %3311 = vmatpush1.bf16.msra.mxu1 %v7021_v0  ;;  %3475 = vmatpush1.bf16.msra.mxu0 %v7024_v16  ;;  %v7110_v0 = vld [vmem:[#allocation5 + $0x54c] ss:$16 sps:$4 sm:$0xff]   ;;  %v7105_v16 = vld [vmem:[#allocation5 + $0x540] ss:$16 sps:$4 sm:$0xff]  }
 0x3be   :  { %3312 = vmatprep.subr.bf16.mxu1 %v7029_v58  ;;  %3476 = vmatprep.subr.bf16.mxu0 %v7032_v21  ;;  %v7108_v58 = vld [vmem:[#allocation5 + $0x548] ss:$16 sps:$4 sm:$0xff]   ;;  %v7113_v21 = vld [vmem:[#allocation5 + $0x564] ss:$16 sps:$4 sm:$0xff]  }
 0x3c1   :  { %3313 = vmatpush1.bf16.msra.mxu1 %v7027_v61  ;;  %3477 = vmatpush1.bf16.msra.mxu0 %v7030_v54  ;;  %v7116_v61 = vld [vmem:[#allocation5 + $0x56c] ss:$16 sps:$4 sm:$0xff]   ;;  %v7111_v54 = vld [vmem:[#allocation5 + $0x560] ss:$16 sps:$4 sm:$0xff]  }
 0x3c2   :  { %3314 = vmatprep.subr.bf16.mxu1 %v7035_v60  ;;  %3478 = vmatprep.subr.bf16.mxu0 %v7038_v44  ;;  %v7114_v60 = vld [vmem:[#allocation5 + $0x568] ss:$16 sps:$4 sm:$0xff]   ;;  %v7119_v44 = vld [vmem:[#allocation5 + $0x584] ss:$16 sps:$4 sm:$0xff]  }
 0x3c5   :  { %3315 = vmatpush1.bf16.msra.mxu1 %v7033_v19  ;;  %3479 = vmatpush1.bf16.msra.mxu0 %v7036_v34  ;;  %v7122_v19 = vld [vmem:[#allocation5 + $0x58c] ss:$16 sps:$4 sm:$0xff]   ;;  %v7117_v34 = vld [vmem:[#allocation5 + $0x580] ss:$16 sps:$4 sm:$0xff]  }
 0x3c6   :  { %3316 = vmatprep.subr.bf16.mxu1 %v7041_v7  ;;  %3480 = vmatprep.subr.bf16.mxu0 %v7044_v2  ;;  %v7120_v7 = vld [vmem:[#allocation5 + $0x588] ss:$16 sps:$4 sm:$0xff]   ;;  %v7125_v2 = vld [vmem:[#allocation5 + $0x5a4] ss:$16 sps:$4 sm:$0xff]  }
 0x3c9   :  { %3317 = vmatpush1.bf16.msra.mxu1 %v7039_v8  ;;  %3481 = vmatpush1.bf16.msra.mxu0 %v7042_v29  ;;  %v7128_v8 = vld [vmem:[#allocation5 + $0x5ac] ss:$16 sps:$4 sm:$0xff]   ;;  %v7123_v29 = vld [vmem:[#allocation5 + $0x5a0] ss:$16 sps:$4 sm:$0xff]  }
 0x3ca   :  { %3327 = vmatprep.subr.bf16.mxu1 %v7047_v42  ;;  %3491 = vmatprep.subr.bf16.mxu0 %v7050_v59  ;;  %v7126_v42 = vld [vmem:[#allocation5 + $0x5a8] ss:$16 sps:$4 sm:$0xff]   ;;  %v7131_v59 = vld [vmem:[#allocation5 + $0x5c4] ss:$16 sps:$4 sm:$0xff]  }
 0x3cc   :  { %3319 = vmatmul.mubr.bf16.vlgmr.msra.gmra.mrb[16].mxu1 %v1951_v45  ;;  %3483 = vmatmul.mubr.bf16.vlgmr.msra.gmra.mrb[20].mxu0 %v1951_v45  ;;  %v7129_v45 = vld [vmem:[#allocation5 + $0x5c0] ss:$16 sps:$4 sm:$0xff]  }
 0x3cd   :  { %3328 = vmatpush1.bf16.msra.mxu1 %v7045_v5  ;;  %3359 = vmatprep.mubr.bf16.mxu1 %v1954_v25  ;;  %v7134_v5 = vld [vmem:[#allocation5 + $0x5cc] ss:$16 sps:$4 sm:$0xff]  }
 0x3ce   :  { %3492 = vmatpush1.bf16.msra.mxu0 %v7048_v26  ;;  %3523 = vmatprep.mubr.bf16.mxu0 %v1954_v25  ;;  %v7132_v26 = vld [vmem:[#allocation5 + $0x5c8] ss:$16 sps:$4 sm:$0xff]   ;;  %v7137_v25 = vld [vmem:[#allocation5 + $0x5e4] ss:$16 sps:$4 sm:$0xff]  }
 0x3cf   :  { %3329 = vmatprep.subr.bf16.mxu1 %v7053_v51  ;;  %3493 = vmatprep.subr.bf16.mxu0 %v7056_v40  ;;  %v7140_v51 = vld [vmem:[#allocation5 + $0x5ec] ss:$16 sps:$4 sm:$0xff]   ;;  %v7135_v40 = vld [vmem:[#allocation5 + $0x5e0] ss:$16 sps:$4 sm:$0xff]  }
 0x3d1   :  { %3330 = vmatpush1.bf16.msra.mxu1 %v7051_v43  ;;  %v7138_v43 = vld [vmem:[#allocation5 + $0x5e8] ss:$16 sps:$4 sm:$0xff]  }
 0x3d2   :  { %3494 = vmatpush1.bf16.msra.mxu0 %v7054_v14  ;;  %3331 = vmatprep.subr.bf16.mxu1 %v7059_v33  ;;  %v7143_v14 = vld [vmem:[#allocation5 + $0x604] ss:$16 sps:$4 sm:$0xff]   ;;  %v7146_v33 = vld [vmem:[#allocation5 + $0x60c] ss:$16 sps:$4 sm:$0xff]  }
 0x3d3   :  { %3495 = vmatprep.subr.bf16.mxu0 %v7062_v52  ;;  %v7141_v52 = vld [vmem:[#allocation5 + $0x600] ss:$16 sps:$4 sm:$0xff]  }
 0x3d5   :  { %3332 = vmatpush1.bf16.msra.mxu1 %v7057_v57  ;;  %v1953_v57 = vpack.c.b16 %v8209_v48, %v8209_v48  ;;  %v7153_v48 = vld [vmem:[#allocation5 + $0x640] ss:$16 sps:$4 sm:$0xff]  }
 0x3d6   :  { %3496 = vmatpush1.bf16.msra.mxu0 %v7060_v12  ;;  %3333 = vmatprep.subr.bf16.mxu1 %v7065_v32  ;;  %v7144_v12 = vld [vmem:[#allocation5 + $0x608] ss:$16 sps:$4 sm:$0xff]   ;;  %v7149_v32 = vld [vmem:[#allocation5 + $0x624] ss:$16 sps:$4 sm:$0xff]  }
 0x3d7   :  { %3497 = vmatprep.subr.bf16.mxu0 %v7068_v35  ;;  %v1956_v35 = vpack.c.b16 %v8212_v47, %v8212_v47  ;;  %v7164_v47 = vld [vmem:[#allocation5 + $0x66c] ss:$16 sps:$4 sm:$0xff]  }
 0x3d9   :  { %3334 = vmatpush1.bf16.msra.mxu1 %v7063_v41  ;;  %v7152_v41 = vld [vmem:[#allocation5 + $0x62c] ss:$16 sps:$4 sm:$0xff]  }
 0x3da   :  { %3498 = vmatpush1.bf16.msra.mxu0 %v7066_v31  ;;  %3335 = vmatprep.subr.bf16.mxu1 %v7071_v30  ;;  %v7147_v31 = vld [vmem:[#allocation5 + $0x620] ss:$16 sps:$4 sm:$0xff]   ;;  %v7150_v30 = vld [vmem:[#allocation5 + $0x628] ss:$16 sps:$4 sm:$0xff]  }
 0x3db   :  { %3499 = vmatprep.subr.bf16.mxu0 %v7074_v37  ;;  %v7155_v37 = vld [vmem:[#allocation5 + $0x644] ss:$16 sps:$4 sm:$0xff]  }
 0x3dd   :  { %3336 = vmatpush1.bf16.msra.mxu1 %v7069_v13  ;;  %v7158_v13 = vld [vmem:[#allocation5 + $0x64c] ss:$16 sps:$4 sm:$0xff]  }
 0x3de   :  { %3500 = vmatpush1.bf16.msra.mxu0 %v7072_v28  ;;  %3337 = vmatprep.subr.bf16.mxu1 %v7077_v6  ;;  %v7156_v28 = vld [vmem:[#allocation5 + $0x648] ss:$16 sps:$4 sm:$0xff]   ;;  %v7161_v6 = vld [vmem:[#allocation5 + $0x664] ss:$16 sps:$4 sm:$0xff]  }
 0x3df   :  { %3501 = vmatprep.subr.bf16.mxu0 %v7080_v63  ;;  %v7159_v63 = vld [vmem:[#allocation5 + $0x660] ss:$16 sps:$4 sm:$0xff]  }
 0x3e1   :  { %3338 = vmatpush1.bf16.msra.mxu1 %v7075_v10  ;;  %v7162_v10 = vld [vmem:[#allocation5 + $0x668] ss:$16 sps:$4 sm:$0xff]  }
 0x3e2   :  { %3502 = vmatpush1.bf16.msra.mxu0 %v7078_v62  ;;  %3339 = vmatprep.subr.bf16.mxu1 %v7083_v55  ;;  %v7167_v62 = vld [vmem:[#allocation5 + $0x684] ss:$16 sps:$4 sm:$0xff]   ;;  %v7170_v55 = vld [vmem:[#allocation5 + $0x68c] ss:$16 sps:$4 sm:$0xff]  }
 0x3e3   :  { %3503 = vmatprep.subr.bf16.mxu0 %v7086_v9  ;;  %v7165_v9 = vld [vmem:[#allocation5 + $0x680] ss:$16 sps:$4 sm:$0xff]  }
 0x3e5   :  { %3340 = vmatpush1.bf16.msra.mxu1 %v7081_v3  ;;  %v7168_v3 = vld [vmem:[#allocation5 + $0x688] ss:$16 sps:$4 sm:$0xff]  }
 0x3e6   :  { %3504 = vmatpush1.bf16.msra.mxu0 %v7084_v24  ;;  %3341 = vmatprep.subr.bf16.mxu1 %v7089_v53  ;;  %v7173_v24 = vld [vmem:[#allocation5 + $0x6a4] ss:$16 sps:$4 sm:$0xff]   ;;  %v7176_v53 = vld [vmem:[#allocation5 + $0x6ac] ss:$16 sps:$4 sm:$0xff]  }
 0x3e7   :  { %3505 = vmatprep.subr.bf16.mxu0 %v7092_v17  ;;  %v7171_v17 = vld [vmem:[#allocation5 + $0x6a0] ss:$16 sps:$4 sm:$0xff]  }
 0x3e9   :  { %3342 = vmatpush1.bf16.msra.mxu1 %v7087_v38  ;;  %v7174_v38 = vld [vmem:[#allocation5 + $0x6a8] ss:$16 sps:$4 sm:$0xff]  }
 0x3ea   :  { %3506 = vmatpush1.bf16.msra.mxu0 %v7090_v50  ;;  %3343 = vmatprep.subr.bf16.mxu1 %v7095_v49  ;;  %v7179_v50 = vld [vmem:[#allocation5 + $0x6c4] ss:$16 sps:$4 sm:$0xff]   ;;  %v7182_v49 = vld [vmem:[#allocation5 + $0x6cc] ss:$16 sps:$4 sm:$0xff]  }
 0x3eb   :  { %3507 = vmatprep.subr.bf16.mxu0 %v7098_v22  ;;  %v7177_v22 = vld [vmem:[#allocation5 + $0x6c0] ss:$16 sps:$4 sm:$0xff]  }
 0x3ed   :  { %3344 = vmatpush1.bf16.msra.mxu1 %v7093_v15  ;;  %v7180_v15 = vld [vmem:[#allocation5 + $0x6c8] ss:$16 sps:$4 sm:$0xff]  }
 0x3ee   :  { %3508 = vmatpush1.bf16.msra.mxu0 %v7096_v27  ;;  %3345 = vmatprep.subr.bf16.mxu1 %v7101_v46  ;;  %v7185_v27 = vld [vmem:[#allocation5 + $0x6e4] ss:$16 sps:$4 sm:$0xff]   ;;  %v7188_v46 = vld [vmem:[#allocation5 + $0x6ec] ss:$16 sps:$4 sm:$0xff]  }
 0x3ef   :  { %3509 = vmatprep.subr.bf16.mxu0 %v7104_v4  ;;  %v7183_v4 = vld [vmem:[#allocation5 + $0x6e0] ss:$16 sps:$4 sm:$0xff]  }
 0x3f1   :  { %3346 = vmatpush1.bf16.msra.mxu1 %v7099_v36  ;;  %v7186_v36 = vld [vmem:[#allocation5 + $0x6e8] ss:$16 sps:$4 sm:$0xff]  }
 0x3f2   :  { %3510 = vmatpush1.bf16.msra.mxu0 %v7102_v39  ;;  %3347 = vmatprep.subr.bf16.mxu1 %v7107_v23  ;;  %v7191_v39 = vld [vmem:[#allocation5 + $0x704] ss:$16 sps:$4 sm:$0xff]   ;;  %v7194_v23 = vld [vmem:[#allocation5 + $0x70c] ss:$16 sps:$4 sm:$0xff]  }
 0x3f3   :  { %3511 = vmatprep.subr.bf16.mxu0 %v7110_v0  ;;  %v7189_v0 = vld [vmem:[#allocation5 + $0x700] ss:$16 sps:$4 sm:$0xff]  }
 0x3f5   :  { %3348 = vmatpush1.bf16.msra.mxu1 %v7105_v16  ;;  %v7192_v16 = vld [vmem:[#allocation5 + $0x708] ss:$16 sps:$4 sm:$0xff]  }
 0x3f6   :  { %3512 = vmatpush1.bf16.msra.mxu0 %v7108_v58  ;;  %3349 = vmatprep.subr.bf16.mxu1 %v7113_v21  ;;  %v7197_v58 = vld [vmem:[#allocation5 + $0x724] ss:$16 sps:$4 sm:$0xff]   ;;  %v7200_v21 = vld [vmem:[#allocation5 + $0x72c] ss:$16 sps:$4 sm:$0xff]  }
 0x3f7   :  { %3513 = vmatprep.subr.bf16.mxu0 %v7116_v61  ;;  %v7195_v61 = vld [vmem:[#allocation5 + $0x720] ss:$16 sps:$4 sm:$0xff]  }
 0x3f9   :  { %3350 = vmatpush1.bf16.msra.mxu1 %v7111_v54  ;;  %v7198_v54 = vld [vmem:[#allocation5 + $0x728] ss:$16 sps:$4 sm:$0xff]  }
 0x3fa   :  { %3514 = vmatpush1.bf16.msra.mxu0 %v7114_v60  ;;  %3351 = vmatprep.subr.bf16.mxu1 %v7119_v44  ;;  %v7203_v60 = vld [vmem:[#allocation5 + $0x744] ss:$16 sps:$4 sm:$0xff]   ;;  %v7206_v44 = vld [vmem:[#allocation5 + $0x74c] ss:$16 sps:$4 sm:$0xff]  }
 0x3fb   :  { %3515 = vmatprep.subr.bf16.mxu0 %v7122_v19  ;;  %v7201_v19 = vld [vmem:[#allocation5 + $0x740] ss:$16 sps:$4 sm:$0xff]  }
 0x3fd   :  { %3352 = vmatpush1.bf16.msra.mxu1 %v7117_v34  ;;  %v7204_v34 = vld [vmem:[#allocation5 + $0x748] ss:$16 sps:$4 sm:$0xff]  }
 0x3fe   :  { %3516 = vmatpush1.bf16.msra.mxu0 %v7120_v7  ;;  %3353 = vmatprep.subr.bf16.mxu1 %v7125_v2  ;;  %v7209_v7 = vld [vmem:[#allocation5 + $0x764] ss:$16 sps:$4 sm:$0xff]   ;;  %v7212_v2 = vld [vmem:[#allocation5 + $0x76c] ss:$16 sps:$4 sm:$0xff]  }
 0x3ff   :  { %3517 = vmatprep.subr.bf16.mxu0 %v7128_v8  ;;  %v7207_v8 = vld [vmem:[#allocation5 + $0x760] ss:$16 sps:$4 sm:$0xff]  }
 0x401   :  { %3354 = vmatpush1.bf16.msra.mxu1 %v7123_v29  ;;  %v7210_v29 = vld [vmem:[#allocation5 + $0x768] ss:$16 sps:$4 sm:$0xff]  }
 0x402   :  { %3518 = vmatpush1.bf16.msra.mxu0 %v7126_v42  ;;  %3355 = vmatprep.subr.bf16.mxu1 %v7131_v59  ;;  %v7215_v42 = vld [vmem:[#allocation5 + $0x784] ss:$16 sps:$4 sm:$0xff]   ;;  %v7218_v59 = vld [vmem:[#allocation5 + $0x78c] ss:$16 sps:$4 sm:$0xff]  }
 0x403   :  { %3519 = vmatprep.subr.bf16.mxu0 %v7134_v5  ;;  %v7213_v5 = vld [vmem:[#allocation5 + $0x780] ss:$16 sps:$4 sm:$0xff]  }
 0x405   :  { %3356 = vmatpush1.bf16.msra.mxu1 %v7129_v45  ;;  %v7216_v45 = vld [vmem:[#allocation5 + $0x788] ss:$16 sps:$4 sm:$0xff]  }
 0x406   :  { %3520 = vmatpush1.bf16.msra.mxu0 %v7132_v26  ;;  %3357 = vmatprep.subr.bf16.mxu1 %v7137_v25  ;;  %v7221_v26 = vld [vmem:[#allocation5 + $0x7a4] ss:$16 sps:$4 sm:$0xff]   ;;  %v7224_v25 = vld [vmem:[#allocation5 + $0x7ac] ss:$16 sps:$4 sm:$0xff]  }
 0x407   :  { %3521 = vmatprep.subr.bf16.mxu0 %v7140_v51  ;;  %v7219_v51 = vld [vmem:[#allocation5 + $0x7a0] ss:$16 sps:$4 sm:$0xff]  }
 0x409   :  { %3358 = vmatpush1.bf16.msra.mxu1 %v7135_v40  ;;  %v7222_v40 = vld [vmem:[#allocation5 + $0x7a8] ss:$16 sps:$4 sm:$0xff]  }
 0x40a   :  { %3522 = vmatpush1.bf16.msra.mxu0 %v7138_v43  ;;  %3368 = vmatprep.subr.bf16.mxu1 %v7143_v14  ;;  %v7227_v43 = vld [vmem:[#allocation5 + $0x7c4] ss:$16 sps:$4 sm:$0xff]   ;;  %v7230_v14 = vld [vmem:[#allocation5 + $0x7cc] ss:$16 sps:$4 sm:$0xff]  }
 0x40b   :  { %3532 = vmatprep.subr.bf16.mxu0 %v7146_v33  ;;  %v7225_v33 = vld [vmem:[#allocation5 + $0x7c0] ss:$16 sps:$4 sm:$0xff]  }
 0x40c   :  { %3360 = vmatmul.mubr.bf16.vlgmr.msra.gmra.mrb[16].mxu1 %v1953_v57 }
 0x40d   :  { %3524 = vmatmul.mubr.bf16.vlgmr.msra.gmra.mrb[20].mxu0 %v1953_v57  ;;  %3369 = vmatpush1.bf16.msra.mxu1 %v7141_v52  ;;  %v7228_v52 = vld [vmem:[#allocation5 + $0x7c8] ss:$16 sps:$4 sm:$0xff]   ;;  %v7233_v57 = vld [vmem:[#allocation5 + $0x7e4] ss:$16 sps:$4 sm:$0xff]  }
 0x40e   :  { %3400 = vmatprep.mubr.bf16.mxu1 %v1956_v35  ;;  %3533 = vmatpush1.bf16.msra.mxu0 %v7144_v12  ;;  %v7236_v12 = vld [vmem:[#allocation5 + $0x7ec] ss:$16 sps:$4 sm:$0xff]  }
 0x40f   :  { %3564 = vmatprep.mubr.bf16.mxu0 %v1956_v35  ;;  %3370 = vmatprep.subr.bf16.mxu1 %v7149_v32  ;;  %v7231_v32 = vld [vmem:[#allocation5 + $0x7e0] ss:$16 sps:$4 sm:$0xff]   ;;  %v7234_v35 = vld [vmem:[#allocation5 + $0x7e8] ss:$16 sps:$4 sm:$0xff]  }
 0x410   :  { %3534 = vmatprep.subr.bf16.mxu0 %v7152_v41  ;;  %v1955_v41 = vpack.c.b16 %v8215_v1, %v8215_v1  ;;  %v7249_v1 = vld [vmem:[#allocation7 + $0x40] ss:$8 sps:$4 sm:$0xff]  }
 0x411   :  { %3371 = vmatpush1.bf16.msra.mxu1 %v7147_v31  ;;  %v7239_v31 = vld [vmem:[#allocation7 + $0x4] ss:$8 sps:$4 sm:$0xff]  }
 0x412   :  { %3535 = vmatpush1.bf16.msra.mxu0 %v7150_v30  ;;  %3372 = vmatprep.subr.bf16.mxu1 %v7155_v37  ;;  %v7237_v30 = vld [vmem:[#allocation7] ss:$8 sps:$4 sm:$0xff]   ;;  %v7242_v37 = vld [vmem:[#allocation7 + $0x14] ss:$8 sps:$4 sm:$0xff]  }
 0x413   :  { %3536 = vmatprep.subr.bf16.mxu0 %v7158_v13  ;;  %v7240_v13 = vld [vmem:[#allocation7 + $0x10] ss:$8 sps:$4 sm:$0xff]  }
 0x415   :  { %3373 = vmatpush1.bf16.msra.mxu1 %v7153_v48  ;;  %v7245_v48 = vld [vmem:[#allocation7 + $0x24] ss:$8 sps:$4 sm:$0xff]  }
 0x416   :  { %3537 = vmatpush1.bf16.msra.mxu0 %v7156_v28  ;;  %3374 = vmatprep.subr.bf16.mxu1 %v7161_v6  ;;  %v7243_v28 = vld [vmem:[#allocation7 + $0x20] ss:$8 sps:$4 sm:$0xff]   ;;  %v7248_v6 = vld [vmem:[#allocation7 + $0x34] ss:$8 sps:$4 sm:$0xff]  }
 0x417   :  { %3538 = vmatprep.subr.bf16.mxu0 %v7164_v47  ;;  %v7246_v47 = vld [vmem:[#allocation7 + $0x30] ss:$8 sps:$4 sm:$0xff]  }
 0x419   :  { %3375 = vmatpush1.bf16.msra.mxu1 %v7159_v63  ;;  %v7251_v63 = vld [vmem:[#allocation7 + $0x44] ss:$8 sps:$4 sm:$0xff]  }
 0x41a   :  { %3539 = vmatpush1.bf16.msra.mxu0 %v7162_v10  ;;  %3376 = vmatprep.subr.bf16.mxu1 %v7167_v62  ;;  %v7254_v10 = vld [vmem:[#allocation7 + $0x54] ss:$8 sps:$4 sm:$0xff]   ;;  %v7252_v62 = vld [vmem:[#allocation7 + $0x50] ss:$8 sps:$4 sm:$0xff]  }
 0x41b   :  { %3540 = vmatprep.subr.bf16.mxu0 %v7170_v55  ;;  %v7257_v55 = vld [vmem:[#allocation7 + $0x64] ss:$8 sps:$4 sm:$0xff]  }
 0x41d   :  { %3377 = vmatpush1.bf16.msra.mxu1 %v7165_v9  ;;  %v7255_v9 = vld [vmem:[#allocation7 + $0x60] ss:$8 sps:$4 sm:$0xff]  }
 0x41e   :  { %3541 = vmatpush1.bf16.msra.mxu0 %v7168_v3  ;;  %3378 = vmatprep.subr.bf16.mxu1 %v7173_v24  ;;  %v7260_v3 = vld [vmem:[#allocation7 + $0x74] ss:$8 sps:$4 sm:$0xff]   ;;  %v7258_v24 = vld [vmem:[#allocation7 + $0x70] ss:$8 sps:$4 sm:$0xff]  }
 0x41f   :  { %3542 = vmatprep.subr.bf16.mxu0 %v7176_v53  ;;  %v7263_v53 = vld [vmem:[#allocation7 + $0x84] ss:$8 sps:$4 sm:$0xff]  }
 0x421   :  { %3379 = vmatpush1.bf16.msra.mxu1 %v7171_v17  ;;  %v7261_v17 = vld [vmem:[#allocation7 + $0x80] ss:$8 sps:$4 sm:$0xff]  }
 0x422   :  { %3543 = vmatpush1.bf16.msra.mxu0 %v7174_v38  ;;  %3380 = vmatprep.subr.bf16.mxu1 %v7179_v50  ;;  %v7266_v38 = vld [vmem:[#allocation7 + $0x94] ss:$8 sps:$4 sm:$0xff]   ;;  %v7264_v50 = vld [vmem:[#allocation7 + $0x90] ss:$8 sps:$4 sm:$0xff]  }
 0x423   :  { %3544 = vmatprep.subr.bf16.mxu0 %v7182_v49  ;;  %v7269_v49 = vld [vmem:[#allocation7 + $0xa4] ss:$8 sps:$4 sm:$0xff]  }
 0x425   :  { %3381 = vmatpush1.bf16.msra.mxu1 %v7177_v22  ;;  %v7267_v22 = vld [vmem:[#allocation7 + $0xa0] ss:$8 sps:$4 sm:$0xff]  }
 0x426   :  { %3545 = vmatpush1.bf16.msra.mxu0 %v7180_v15  ;;  %3382 = vmatprep.subr.bf16.mxu1 %v7185_v27  ;;  %v7272_v15 = vld [vmem:[#allocation7 + $0xb4] ss:$8 sps:$4 sm:$0xff]   ;;  %v7270_v27 = vld [vmem:[#allocation7 + $0xb0] ss:$8 sps:$4 sm:$0xff]  }
 0x427   :  { %3546 = vmatprep.subr.bf16.mxu0 %v7188_v46  ;;  %v7275_v46 = vld [vmem:[#allocation7 + $0xc4] ss:$8 sps:$4 sm:$0xff]  }
 0x429   :  { %3383 = vmatpush1.bf16.msra.mxu1 %v7183_v4  ;;  %v7273_v4 = vld [vmem:[#allocation7 + $0xc0] ss:$8 sps:$4 sm:$0xff]  }
 0x42a   :  { %3547 = vmatpush1.bf16.msra.mxu0 %v7186_v36  ;;  %3384 = vmatprep.subr.bf16.mxu1 %v7191_v39  ;;  %v7278_v36 = vld [vmem:[#allocation7 + $0xd4] ss:$8 sps:$4 sm:$0xff]   ;;  %v7276_v39 = vld [vmem:[#allocation7 + $0xd0] ss:$8 sps:$4 sm:$0xff]  }
 0x42b   :  { %3548 = vmatprep.subr.bf16.mxu0 %v7194_v23  ;;  %v7281_v23 = vld [vmem:[#allocation7 + $0xe4] ss:$8 sps:$4 sm:$0xff]  }
 0x42d   :  { %3385 = vmatpush1.bf16.msra.mxu1 %v7189_v0  ;;  %v7279_v0 = vld [vmem:[#allocation7 + $0xe0] ss:$8 sps:$4 sm:$0xff]  }
 0x42e   :  { %3549 = vmatpush1.bf16.msra.mxu0 %v7192_v16  ;;  %3386 = vmatprep.subr.bf16.mxu1 %v7197_v58  ;;  %v7284_v16 = vld [vmem:[#allocation7 + $0xf4] ss:$8 sps:$4 sm:$0xff]   ;;  %v7282_v58 = vld [vmem:[#allocation7 + $0xf0] ss:$8 sps:$4 sm:$0xff]  }
 0x42f   :  { %3550 = vmatprep.subr.bf16.mxu0 %v7200_v21  ;;  %v7287_v21 = vld [vmem:[#allocation7 + $0x104] ss:$8 sps:$4 sm:$0xff]  }
 0x431   :  { %3387 = vmatpush1.bf16.msra.mxu1 %v7195_v61 }
 0x432   :  { %3551 = vmatpush1.bf16.msra.mxu0 %v7198_v54  ;;  %3388 = vmatprep.subr.bf16.mxu1 %v7203_v60 }
 0x433   :  { %3552 = vmatprep.subr.bf16.mxu0 %v7206_v44 }
 0x435   :  { %3389 = vmatpush1.bf16.msra.mxu1 %v7201_v19 }
 0x436   :  { %3553 = vmatpush1.bf16.msra.mxu0 %v7204_v34  ;;  %3390 = vmatprep.subr.bf16.mxu1 %v7209_v7 }
 0x437   :  { %3554 = vmatprep.subr.bf16.mxu0 %v7212_v2 }
 0x439   :  { %3391 = vmatpush1.bf16.msra.mxu1 %v7207_v8 }
 0x43a   :  { %3555 = vmatpush1.bf16.msra.mxu0 %v7210_v29  ;;  %3392 = vmatprep.subr.bf16.mxu1 %v7215_v42 }
 0x43b   :  { %3556 = vmatprep.subr.bf16.mxu0 %v7218_v59 }
 0x43d   :  { %3393 = vmatpush1.bf16.msra.mxu1 %v7213_v5 }
 0x43e   :  { %3557 = vmatpush1.bf16.msra.mxu0 %v7216_v45  ;;  %3394 = vmatprep.subr.bf16.mxu1 %v7221_v26 }
 0x43f   :  { %3558 = vmatprep.subr.bf16.mxu0 %v7224_v25 }
 0x441   :  { %3395 = vmatpush1.bf16.msra.mxu1 %v7219_v51 }
 0x442   :  { %3559 = vmatpush1.bf16.msra.mxu0 %v7222_v40  ;;  %3396 = vmatprep.subr.bf16.mxu1 %v7227_v43 }
 0x443   :  { %3560 = vmatprep.subr.bf16.mxu0 %v7230_v14 }
 0x445   :  { %3397 = vmatpush1.bf16.msra.mxu1 %v7225_v33 }
 0x446   :  { %3561 = vmatpush1.bf16.msra.mxu0 %v7228_v52  ;;  %3398 = vmatprep.subr.bf16.mxu1 %v7233_v57 }
 0x447   :  { %3562 = vmatprep.subr.bf16.mxu0 %v7236_v12 }
 0x449   :  { %3399 = vmatpush1.bf16.msra.mxu1 %v7231_v32 }
 0x44a   :  { %3563 = vmatpush1.bf16.msra.mxu0 %v7234_v35  ;;  %4172 = vmatprep.subr.bf16.mxu1 %v7239_v31 }
 0x44c   :  { %3401 = vmatmul.mubr.bf16.vlgmr.msra.gmra.mrb[16].mxu1 %v1955_v41 }
 0x44d   :  { %3565 = vmatmul.mubr.bf16.vlgmr.msra.gmra.mrb[20].mxu0 %v1955_v41  ;;  %4173 = vmatpush1.bf16.msra.mxu1 %v7237_v30 }
 0x44e   :  { %4174 = vmatprep.subr.bf16.mxu1 %v7242_v37 }
 0x451   :  { %4175 = vmatpush1.bf16.msra.mxu1 %v7240_v13 }
 0x452   :  { %4176 = vmatprep.subr.bf16.mxu1 %v7245_v48 }
 0x455   :  { %4177 = vmatpush1.bf16.msra.mxu1 %v7243_v28 }
 0x456   :  { %4178 = vmatprep.subr.bf16.mxu1 %v7248_v6 }
 0x459   :  { %4179 = vmatpush1.bf16.msra.mxu1 %v7246_v47 }
 0x45a   :  { %4180 = vmatprep.subr.bf16.mxu1 %v7251_v63 }
 0x45d   :  { %4181 = vmatpush1.bf16.msra.mxu1 %v7249_v1 }
 0x45e   :  { %4182 = vmatprep.subr.bf16.mxu1 %v7254_v10 }
 0x461   :  { %4183 = vmatpush1.bf16.msra.mxu1 %v7252_v62 }
 0x462   :  { %4184 = vmatprep.subr.bf16.mxu1 %v7257_v55 }
 0x465   :  { %4185 = vmatpush1.bf16.msra.mxu1 %v7255_v9 }
 0x466   :  { %4186 = vmatprep.subr.bf16.mxu1 %v7260_v3 }
 0x469   :  { %4187 = vmatpush1.bf16.msra.mxu1 %v7258_v24 }
 0x46a   :  { %4188 = vmatprep.subr.bf16.mxu1 %v7263_v53 }
 0x46d   :  { %4189 = vmatpush1.bf16.msra.mxu1 %v7261_v17 }
 0x46e   :  { %4190 = vmatprep.subr.bf16.mxu1 %v7266_v38 }
 0x471   :  { %4191 = vmatpush1.bf16.msra.mxu1 %v7264_v50 }
 0x472   :  { %4192 = vmatprep.subr.bf16.mxu1 %v7269_v49 }
 0x475   :  { %4193 = vmatpush1.bf16.msra.mxu1 %v7267_v22 }
 0x476   :  { %4194 = vmatprep.subr.bf16.mxu1 %v7272_v15 }
 0x479   :  { %4195 = vmatpush1.bf16.msra.mxu1 %v7270_v27 }
 0x47a   :  { %4196 = vmatprep.subr.bf16.mxu1 %v7275_v46 }
 0x47d   :  { %4197 = vmatpush1.bf16.msra.mxu1 %v7273_v4 }
 0x47e   :  { %4198 = vmatprep.subr.bf16.mxu1 %v7278_v36 }
 0x481   :  { %4199 = vmatpush1.bf16.msra.mxu1 %v7276_v39 }
 0x482   :  { %4200 = vmatprep.subr.bf16.mxu1 %v7281_v23 }
 0x485   :  { %4201 = vmatpush1.bf16.msra.mxu1 %v7279_v0 }
 0x486   :  { %4202 = vmatprep.subr.bf16.mxu1 %v7284_v16 }
 0x489   :  { %4203 = vmatpush1.bf16.msra.mxu1 %v7282_v58 }
 0x48a   :  { %4213 = vmatprep.subr.bf16.mxu1 %v7287_v21 }
 0x51f   :  { %v8227_v61 = vpop.f32.mrb[16].mxu1 }
 0x520   :  { %v3574_v54 = vsel %vm3573_vm2, %v8227_v61, 0.0  ;;  %v3602_v60 = vmul.f32 %v8227_v61, %v8227_v61  ;;  %v8233_v44 = vpop.f32.mrb[20].mxu0  ;;  %v8235_v19 = vpop.f32.mrb[17].mxu1 }
 0x521   :  { %v3575_v34 = vrot.slane %v3574_v54, 4  ;;  %v3588_v7 = vsel %vm3573_vm2, %v8233_v44, 0.0  ;;  %v3604_v2 = vmul.f32 %v8233_v44, %v8233_v44  ;;  %v3581_v8 = vsel %vm3573_vm2, %v8235_v19, 0.0  ;;  %v8243_v29 = vpop.f32.mrb[21].mxu0  ;;  %v3406_v42 = vpop.f32.mrb[18].mxu1 }
 0x522   :  { %v3606_v59 = vsel %vm3573_vm2, %v3602_v60, 0.0  ;;  %v3589_v5 = vrot.slane %v3588_v7, 4  ;;  %v3582_v45 = vrot.slane %v3581_v8, 4  ;;  %v3603_v26 = vmul.f32 %v8235_v19, %v8235_v19  ;;  %v3570_v25 = vpop.f32.mrb[22].mxu0  ;;  %v3407_v51 = vpop.f32.mrb[19].mxu1 }
 0x523   :  { %v3576_v40 = vadd.f32 %v3575_v34, %v3574_v54  ;;  %v3607_v43 = vrot.slane %v3606_v59, 4  ;;  %v3620_v14 = vsel %vm3573_vm2, %v3604_v2, 0.0  ;;  %v3595_v33 = vsel %vm3573_vm2, %v8243_v29, 0.0  ;;  %v3571_v52 = vpop.f32.mrb[23].mxu0 }
 0x524   :  { %v3590_v57 = vadd.f32 %v3589_v5, %v3588_v7  ;;  %v3621_v12 = vrot.slane %v3620_v14, 4  ;;  %v3583_v32 = vadd.f32 %v3582_v45, %v3581_v8  ;;  %v3613_v35 = vsel %vm3573_vm2, %v3603_v26, 0.0 }
 0x525   :  { %v3577_v41 = vrot.slane %v3576_v40, 2  ;;  %v3608_v31 = vadd.f32 %v3607_v43, %v3606_v59  ;;  %v3614_v30 = vrot.slane %v3613_v35, 4  ;;  %v3596_v37 = vrot.slane %v3595_v33, 4 }
 0x526   :  { %v3591_v13 = vrot.slane %v3590_v57, 2  ;;  %v3622_v48 = vadd.f32 %v3621_v12, %v3620_v14  ;;  %v3584_v28 = vrot.slane %v3583_v32, 2  ;;  %v3605_v6 = vmul.f32 %v8243_v29, %v8243_v29 }
 0x527   :  { %v3578_v47 = vadd.f32 %v3577_v41, %v3576_v40  ;;  %v3609_v63 = vrot.slane %v3608_v31, 2  ;;  %v3615_v1 = vadd.f32 %v3614_v30, %v3613_v35  ;;  %v3597_v10 = vadd.f32 %v3596_v37, %v3595_v33 }
 0x528   :  { %v3592_v62 = vadd.f32 %v3591_v13, %v3590_v57  ;;  %v3623_v55 = vrot.slane %v3622_v48, 2  ;;  %v3585_v9 = vadd.f32 %v3584_v28, %v3583_v32  ;;  %v3627_v3 = vsel %vm3573_vm2, %v3605_v6, 0.0 }
 0x529   :  { %v3579_v24 = vrot.slane %v3578_v47, 1  ;;  %v3610_v53 = vadd.f32 %v3609_v63, %v3608_v31  ;;  %v3616_v17 = vrot.slane %v3615_v1, 2  ;;  %v3598_v38 = vrot.slane %v3597_v10, 2 }
 0x52a   :  { %v3593_v50 = vrot.slane %v3592_v62, 1  ;;  %v3624_v49 = vadd.f32 %v3623_v55, %v3622_v48  ;;  %v3586_v22 = vrot.slane %v3585_v9, 1  ;;  %v3628_v15 = vrot.slane %v3627_v3, 4 }
 0x52b   :  { %v3580_v27 = vadd.f32 %v3579_v24, %v3578_v47  ;;  %v3611_v46 = vrot.slane %v3610_v53, 1  ;;  %v3617_v4 = vadd.f32 %v3616_v17, %v3615_v1  ;;  %v3599_v36 = vadd.f32 %v3598_v38, %v3597_v10  ;;  %v6537_v38 = vld [vmem:[%s8870_s11 + $0x3] ss:$8 sm:$0xf] }
 0x52c   :  { %v3594_v39 = vadd.f32 %v3593_v50, %v3592_v62  ;;  %v3625_v23 = vrot.slane %v3624_v49, 1  ;;  %v3587_v0 = vadd.f32 %v3586_v22, %v3585_v9  ;;  %v3629_v16 = vadd.f32 %v3628_v15, %v3627_v3 }
 0x52d   :  { %v3612_v58 = vadd.f32 %v3611_v46, %v3610_v53  ;;  %v3634_v21 = vmul.f32 0.5, %v3580_v27  ;;  %v3618_v54 = vrot.slane %v3617_v4, 1  ;;  %v3600_v60 = vrot.slane %v3599_v36, 1  ;;  %v8966_v46 = vld [vmem:[#allocation20_spill] sm:$0xff] }
 0x52e   :  { %v3626_v34 = vadd.f32 %v3625_v23, %v3624_v49  ;;  %v3636_v7 = vmul.f32 0.5, %v3594_v39  ;;  %v3635_v2 = vmul.f32 0.5, %v3587_v0  ;;  %v3630_v8 = vrot.slane %v3629_v16, 2 }
 0x52f   :  { %v3638_v42 = vmul.f32 0.5, %v3612_v58  ;;  %v3642_v59 = vmul.f32 %v3634_v21, %v3634_v21  ;;  %v3619_v5 = vadd.f32 %v3618_v54, %v3617_v4  ;;  %v3601_v45 = vadd.f32 %v3600_v60, %v3599_v36 }
 0x530   :  { %v3640_v26 = vmul.f32 0.5, %v3626_v34  ;;  %v3644_v25 = vmul.f32 %v3636_v7, %v3636_v7  ;;  %v3643_v51 = vmul.f32 %v3635_v2, %v3635_v2  ;;  %v3631_v40 = vadd.f32 %v3630_v8, %v3629_v16 }
 0x531   :  { %v3646_v43 = vsub.f32 %v3638_v42, %v3642_v59  ;;  %v3639_v14 = vmul.f32 0.5, %v3619_v5  ;;  %v3637_v33 = vmul.f32 0.5, %v3601_v45 }
 0x532   :  { %v3648_v52 = vsub.f32 %v3640_v26, %v3644_v25  ;;  %v3632_v57 = vrot.slane %v3631_v40, 1 }
 0x533   :  { %v3650_v12 = vmax.f32 %v3646_v43, 0.0  ;;  %v3647_v32 = vsub.f32 %v3639_v14, %v3643_v51  ;;  %v3645_v31 = vmul.f32 %v3637_v33, %v3637_v33 }
 0x534   :  { %v3652_v35 = vmax.f32 %v3648_v52, 0.0  ;;  %v3633_v41 = vadd.f32 %v3632_v57, %v3631_v40  ;;  %v7285_v52 = vld [vmem:[#allocation7 + $0x100] ss:$8 sps:$4 sm:$0xff]  }
 0x535   :  { %v3658_v30 = vadd.f32 1e-05, %v3650_v12  ;;  %v3651_v37 = vmax.f32 %v3647_v32, 0.0  ;;  %v7290_v12 = vld [vmem:[#allocation7 + $0x114] ss:$8 sps:$4 sm:$0xff]  }
 0x536   :  { %v3641_v13 = vmul.f32 0.5, %v3633_v41  ;;  %v3660_v28 = vadd.f32 1e-05, %v3652_v35  ;;  %v7288_v35 = vld [vmem:[#allocation7 + $0x110] ss:$8 sps:$4 sm:$0xff]  }
 0x537   :  { %7357 = vrsqrt.f32 %v3658_v30  ;;  %v3659_v48 = vadd.f32 1e-05, %v3651_v37  ;;  %v7293_v41 = vld [vmem:[#allocation7 + $0x124] ss:$8 sps:$4 sm:$0xff]   ;;  %v7296_v30 = vld [vmem:[#allocation7 + $0x134] ss:$8 sps:$4 sm:$0xff]  }
 0x538   :  { %v3649_v6 = vsub.f32 %v3641_v13, %v3645_v31  ;;  %v7291_v31 = vld [vmem:[#allocation7 + $0x120] ss:$8 sps:$4 sm:$0xff]   ;;  %v7294_v37 = vld [vmem:[#allocation7 + $0x130] ss:$8 sps:$4 sm:$0xff]   ;;  %v7299_v13 = vld [vmem:[#allocation7 + $0x144] ss:$8 sps:$4 sm:$0xff]  }
 0x539   :  { %7359 = vrsqrt.f32 %v3659_v48  ;;  %v7297_v48 = vld [vmem:[#allocation7 + $0x140] ss:$8 sps:$4 sm:$0xff]  }
 0x53a   :  { %v3653_v47 = vmax.f32 %v3649_v6, 0.0  ;;  %7361 = vrsqrt.f32 %v3660_v28  ;;  %v7302_v28 = vld [vmem:[#allocation7 + $0x154] ss:$8 sps:$4 sm:$0xff]   ;;  %v7300_v6 = vld [vmem:[#allocation7 + $0x150] ss:$8 sps:$4 sm:$0xff]  }
 0x53c   :  { %v3661_v63 = vadd.f32 1e-05, %v3653_v47  ;;  %v7305_v47 = vld [vmem:[#allocation7 + $0x164] ss:$8 sps:$4 sm:$0xff]  }
 0x53e   :  { %7363 = vrsqrt.f32 %v3661_v63  ;;  %v7303_v63 = vld [vmem:[#allocation7 + $0x160] ss:$8 sps:$4 sm:$0xff]  }
 0x541   :  { %v7358_v1 = vpop.eup %7357 }
 0x543   :  { %v7360_v10 = vpop.eup %7359 }
 0x544   :  { %v3670_v62 = vcombine.low %v7358_v1, %v7360_v10  ;;  %v7362_v55 = vpop.eup %7361  ;;  %v7308_v1 = vld [vmem:[#allocation7 + $0x174] ss:$8 sps:$4 sm:$0xff]   ;;  %v7306_v10 = vld [vmem:[#allocation7 + $0x170] ss:$8 sps:$4 sm:$0xff]  }
 0x546   :  { %v3678_v24 = vrot.slane %v3670_v62, %v7946_v56  ;;  %v7311_v62 = vld [vmem:[#allocation7 + $0x184] ss:$8 sps:$4 sm:$0xff]  }
 0x548   :  { %v7364_v9 = vpop.eup %7363 }
 0x549   :  { %v3671_v3 = vcombine.low %v7362_v55, %v7364_v9  ;;  %v7309_v55 = vld [vmem:[#allocation7 + $0x180] ss:$8 sps:$4 sm:$0xff]   ;;  %v7314_v9 = vld [vmem:[#allocation7 + $0x194] ss:$8 sps:$4 sm:$0xff]  }
 0x54b   :  { %v3685_v53 = vrot.slane %v3671_v3, %v7946_v56  ;;  %v7312_v3 = vld [vmem:[#allocation7 + $0x190] ss:$8 sps:$4 sm:$0xff]  }
 0x54d   :  { %v3686_v17 = vcombine.low %v3678_v24, %v3685_v53  ;;  %v7317_v24 = vld [vmem:[#allocation7 + $0x1a4] ss:$8 sps:$4 sm:$0xff]   ;;  %v7315_v53 = vld [vmem:[#allocation7 + $0x1a0] ss:$8 sps:$4 sm:$0xff]  }
 0x54f   :  { %v3693_v50 = vrot.slane %v3686_v17, %v7946_v56  ;;  %v7320_v17 = vld [vmem:[#allocation7 + $0x1b4] ss:$8 sps:$4 sm:$0xff]  }
 0x551   :  { %v3695_v49 = vmul.f32 %v6537_v38, %v3693_v50  ;;  %v7318_v38 = vld [vmem:[#allocation7 + $0x1b0] ss:$8 sps:$4 sm:$0xff]   ;;  %v7323_v50 = vld [vmem:[#allocation7 + $0x1c4] ss:$8 sps:$4 sm:$0xff]  }
 0x553   :  { %v3708_v22 = vrot.slane %v3695_v49, %v7710_v20  ;;  %v3712_v15 = vrot.slane %v3695_v49, %v8032_v11  ;;  %v3700_v27 = vrot.slane %v3695_v49, %v7704_v18  ;;  %v3704_v4 = vrot.slane %v3695_v49, %v8966_v46  ;;  %v7321_v49 = vld [vmem:[#allocation7 + $0x1c0] ss:$8 sps:$4 sm:$0xff]  }
 0x555   :  { %v3719_v36 = vmul.f32 %v3708_v22, %v3636_v7  ;;  %v3720_v39 = vmul.f32 %v3712_v15, %v3637_v33  ;;  %v3754_v23 = vmul.f32 %v3712_v15, %v8243_v29  ;;  %v3717_v0 = vmul.f32 %v3700_v27, %v3634_v21  ;;  %v6538_v7 = vld [vmem:[%s8871_s12 + $0x3] ss:$8 sm:$0xf] }
 0x556   :  { %v3718_v16 = vmul.f32 %v3704_v4, %v3635_v2  ;;  %v3752_v58 = vmul.f32 %v3704_v4, %v8235_v19  ;;  %v3751_v54 = vmul.f32 %v3700_v27, %v8227_v61  ;;  %v3753_v60 = vmul.f32 %v3708_v22, %v8233_v44  ;;  %v7326_v22 = vld [vmem:[#allocation7 + $0x1d4] ss:$8 sps:$4 sm:$0xff]   ;;  %v7324_v15 = vld [vmem:[#allocation7 + $0x1d0] ss:$8 sps:$4 sm:$0xff]   ;;  %v7329_v27 = vld [vmem:[#allocation7 + $0x1e4] ss:$8 sps:$4 sm:$0xff]  }
 0x557   :  { %v3726_v34 = vcombine.low %v3719_v36, %v3720_v39  ;;  %v7327_v4 = vld [vmem:[#allocation7 + $0x1e0] ss:$8 sps:$4 sm:$0xff]   ;;  %v7332_v36 = vld [vmem:[#allocation7 + $0x1f4] ss:$8 sps:$4 sm:$0xff]   ;;  %v7330_v39 = vld [vmem:[#allocation7 + $0x1f0] ss:$8 sps:$4 sm:$0xff]  }
 0x558   :  { %v3725_v8 = vcombine.low %v3717_v0, %v3718_v16  ;;  %v8967_v16 = vmov 0  }
 0x559   :  { %v3740_v42 = vrot.slane %v3726_v34, %v7946_v56 }
 0x55a   :  { %v3733_v59 = vrot.slane %v3725_v8, %v7946_v56  ;;  %v4371_v8 = vld [vmem:[%s8865_s6 + $0x8] sm:$0xff] }
 0x55c   :  { %v3741_v5 = vcombine.low %v3733_v59, %v3740_v42  ;;  %v4388_v42 = vld [vmem:[%s8865_s6 + $0x90] sm:$0xff]  ;;  %v4389_v59 = vld [vmem:[%s8865_s6 + $0x98] sm:$0xff] }
 0x55e   :  { %v3748_v29 = vrot.slane %v3741_v5, %v7946_v56 }
 0x560   :  { %v3750_v21 = vsub.f32 %v6538_v7, %v3748_v29  ;;  %v6755_v7 = vpack.c.bf16 %v4389_v59, %v4388_v42  ;;  %v4372_v29 = vld [vmem:[%s8865_s6 + $0x10] sm:$0xff] }
 0x562   :  { %v3763_v19 = vrot.slane %v3750_v21, %v8966_v46  ;;  %v3759_v61 = vrot.slane %v3750_v21, %v7704_v18  ;;  %v3771_v44 = vrot.slane %v3750_v21, %v8032_v11  ;;  %v3767_v2 = vrot.slane %v3750_v21, %v7710_v20  ;;  %v4373_v21 = vld [vmem:[%s8865_s6 + $0x18] sm:$0xff] }
 0x564   :  { %v3777_v45 = vadd.f32 %v3763_v19, %v3752_v58  ;;  %v3776_v26 = vadd.f32 %v3759_v61, %v3751_v54  ;;  %v3779_v25 = vadd.f32 %v3771_v44, %v3754_v23  ;;  %v8279_v51 = vadd.f32 %v3767_v2, %v3753_v60  ;;  %v4386_v58 = vld [vmem:[%s8865_s6 + $0x80] sm:$0xff]  ;;  %v4387_v54 = vld [vmem:[%s8865_s6 + $0x88] sm:$0xff] }
 0x565   :  { %v4370_v60 = vld [vmem:[%s8865_s6] sm:$0xff]  ;;  %v6751_v34 = vpack.c.bf16 %v4387_v54, %v4386_v58  ;;  %v4391_v61 = vld [vmem:[%s8865_s6 + $0xa8] sm:$0xff]  ;;  %v6757_v44 = vpack.c.bf16 %v4373_v21, %v4372_v29 }
 0x566   :  { %v3781_v40 = vmax.f32 %v3777_v45, 0.0  ;;  %v3780_v43 = vmax.f32 %v3776_v26, 0.0  ;;  %v3783_v14 = vmax.f32 %v3779_v25, 0.0  ;;  %v3782_v23 = vmax.f32 %v8279_v51, 0.0  ;;  %v4390_v19 = vld [vmem:[%s8865_s6 + $0xa0] sm:$0xff]  ;;  %v4375_v26 = vld [vmem:[%s8865_s6 + $0x28] sm:$0xff] }
 0x567   :  { %v6753_v5 = vpack.c.bf16 %v4371_v8, %v4370_v60  ;;  %6752 = vmatprep.subr.bf16.mxu0 %v6751_v34  ;;  %v6759_v2 = vpack.c.bf16 %v4391_v61, %v4390_v19  ;;  %v4374_v45 = vld [vmem:[%s8865_s6 + $0x20] sm:$0xff]  ;;  %v4392_v25 = vld [vmem:[%s8865_s6 + $0xb0] sm:$0xff]  ;;  %v4393_v51 = vld [vmem:[%s8865_s6 + $0xb8] sm:$0xff] }
 0x568   :  { %v3849_v33 = vpack.c.bf16 %v3781_v40, %v3781_v40  ;;  %v3848_v57 = vpack.c.bf16 %v3780_v43, %v3780_v43  ;;  %v3851_v32 = vpack.c.bf16 %v3783_v14, %v3783_v14  ;;  %v3850_v0 = vpack.c.bf16 %v3782_v23, %v3782_v23  ;;  %v4376_v14 = vld [vmem:[%s8865_s6 + $0x30] sm:$0xff] }
 0x569   :  { %6754 = vmatpush3.bf16.msra.mxu0 %v6753_v5  ;;  %v6761_v40 = vpack.c.bf16 %v4375_v26, %v4374_v45  ;;  %v6763_v43 = vpack.c.bf16 %v4393_v51, %v4392_v25 }
 0x56a   :  { %4204 = vmatprep.mubr.bf16.mxu1 %v3849_v33  ;;  %6756 = vmatprep.subr.bf16.mxu0 %v6755_v7  ;;  %v4377_v33 = vld [vmem:[%s8865_s6 + $0x38] sm:$0xff] }
 0x56b   :  { %4205 = vmatmul.mubr.bf16.vlgmr.msra.gmra.mrb[20].mxu1 %v3848_v57  ;;  %v4395_v57 = vld [vmem:[%s8865_s6 + $0xc8] sm:$0xff] }
 0x56c   :  { %4214 = vmatpush1.bf16.msra.mxu1 %v7285_v52  ;;  %4245 = vmatprep.mubr.bf16.mxu1 %v3851_v32  ;;  %v4394_v52 = vld [vmem:[%s8865_s6 + $0xc0] sm:$0xff] }
 0x56d   :  { %4215 = vmatprep.subr.bf16.mxu1 %v7290_v12  ;;  %6758 = vmatpush3.bf16.msra.mxu0 %v6757_v44  ;;  %v6765_v12 = vpack.c.bf16 %v4377_v33, %v4376_v14  ;;  %v6767_v32 = vpack.c.bf16 %v4395_v57, %v4394_v52 }
 0x56e   :  { %6760 = vmatprep.subr.bf16.mxu0 %v6759_v2 }
 0x570   :  { %4216 = vmatpush1.bf16.msra.mxu1 %v7288_v35  ;;  %v4378_v35 = vld [vmem:[%s8865_s6 + $0x40] sm:$0xff] }
 0x571   :  { %4217 = vmatprep.subr.bf16.mxu1 %v7293_v41  ;;  %6762 = vmatpush3.bf16.msra.mxu0 %v6761_v40  ;;  %v4379_v41 = vld [vmem:[%s8865_s6 + $0x48] sm:$0xff] }
 0x572   :  { %6764 = vmatprep.subr.bf16.mxu0 %v6763_v43 }
 0x574   :  { %4218 = vmatpush1.bf16.msra.mxu1 %v7291_v31  ;;  %v4396_v31 = vld [vmem:[%s8865_s6 + $0xd0] sm:$0xff] }
 0x575   :  { %4219 = vmatprep.subr.bf16.mxu1 %v7296_v30  ;;  %v4397_v30 = vld [vmem:[%s8865_s6 + $0xd8] sm:$0xff]  ;;  %6766 = vmatpush3.bf16.msra.mxu0 %v6765_v12 }
 0x576   :  { %6768 = vmatprep.subr.bf16.mxu0 %v6767_v32 }
 0x578   :  { %4220 = vmatpush1.bf16.msra.mxu1 %v7294_v37  ;;  %v6769_v37 = vpack.c.bf16 %v4379_v41, %v4378_v35 }
 0x579   :  { %4221 = vmatprep.subr.bf16.mxu1 %v7299_v13  ;;  %v6771_v13 = vpack.c.bf16 %v4397_v30, %v4396_v31 }
 0x57a   :  { %6770 = vmatpush3.bf16.msra.mxu0 %v6769_v37 }
 0x57b   :  { %6772 = vmatprep.subr.bf16.mxu0 %v6771_v13 }
 0x57c   :  { %4222 = vmatpush1.bf16.msra.mxu1 %v7297_v48  ;;  %v4380_v48 = vld [vmem:[%s8865_s6 + $0x50] sm:$0xff] }
 0x57d   :  { %4223 = vmatprep.subr.bf16.mxu1 %v7302_v28  ;;  %v4381_v28 = vld [vmem:[%s8865_s6 + $0x58] sm:$0xff] }
 0x580   :  { %4224 = vmatpush1.bf16.msra.mxu1 %v7300_v6  ;;  %v4398_v6 = vld [vmem:[%s8865_s6 + $0xe0] sm:$0xff] }
 0x581   :  { %4225 = vmatprep.subr.bf16.mxu1 %v7305_v47  ;;  %v4399_v47 = vld [vmem:[%s8865_s6 + $0xe8] sm:$0xff] }
 0x584   :  { %4226 = vmatpush1.bf16.msra.mxu1 %v7303_v63  ;;  %v6773_v63 = vpack.c.bf16 %v4381_v28, %v4380_v48 }
 0x585   :  { %4227 = vmatprep.subr.bf16.mxu1 %v7308_v1  ;;  %v6775_v1 = vpack.c.bf16 %v4399_v47, %v4398_v6 }
 0x586   :  { %6774 = vmatpush3.bf16.msra.mxu0 %v6773_v63 }
 0x587   :  { %6776 = vmatprep.subr.bf16.mxu0 %v6775_v1 }
 0x588   :  { %4228 = vmatpush1.bf16.msra.mxu1 %v7306_v10  ;;  %v4382_v10 = vld [vmem:[%s8865_s6 + $0x60] sm:$0xff] }
 0x589   :  { %4229 = vmatprep.subr.bf16.mxu1 %v7311_v62  ;;  %v4383_v62 = vld [vmem:[%s8865_s6 + $0x68] sm:$0xff] }
 0x58c   :  { %4230 = vmatpush1.bf16.msra.mxu1 %v7309_v55  ;;  %v4400_v55 = vld [vmem:[%s8865_s6 + $0xf0] sm:$0xff] }
 0x58d   :  { %4231 = vmatprep.subr.bf16.mxu1 %v7314_v9  ;;  %v4401_v9 = vld [vmem:[%s8865_s6 + $0xf8] sm:$0xff] }
 0x590   :  { %4232 = vmatpush1.bf16.msra.mxu1 %v7312_v3  ;;  %v6777_v3 = vpack.c.bf16 %v4383_v62, %v4382_v10  ;;  %v6603_v62 = vld [vmem:[%s8870_s11 + $0x4] ss:$8 sm:$0x3] }
 0x591   :  { %4233 = vmatprep.subr.bf16.mxu1 %v7317_v24  ;;  %v6779_v24 = vpack.c.bf16 %v4401_v9, %v4400_v55 }
 0x592   :  { %6778 = vmatpush3.bf16.msra.mxu0 %v6777_v3 }
 0x593   :  { %6780 = vmatprep.subr.bf16.mxu0 %v6779_v24 }
 0x594   :  { %4234 = vmatpush1.bf16.msra.mxu1 %v7315_v53  ;;  %v4384_v53 = vld [vmem:[%s8865_s6 + $0x70] sm:$0xff] }
 0x595   :  { %4235 = vmatprep.subr.bf16.mxu1 %v7320_v17  ;;  %v4385_v17 = vld [vmem:[%s8865_s6 + $0x78] sm:$0xff] }
 0x598   :  { %4236 = vmatpush1.bf16.msra.mxu1 %v7318_v38  ;;  %v6781_v38 = vpack.c.bf16 %v4385_v17, %v4384_v53 }
 0x599   :  { %4237 = vmatprep.subr.bf16.mxu1 %v7323_v50 }
 0x59a   :  { %6782 = vmatpush3.bf16.msra.mxu0 %v6781_v38 }
 0x59c   :  { %4238 = vmatpush1.bf16.msra.mxu1 %v7321_v49 }
 0x59d   :  { %4239 = vmatprep.subr.bf16.mxu1 %v7326_v22 }
 0x5a0   :  { %4240 = vmatpush1.bf16.msra.mxu1 %v7324_v15 }
 0x5a1   :  { %4241 = vmatprep.subr.bf16.mxu1 %v7329_v27 }
 0x5a4   :  { %4242 = vmatpush1.bf16.msra.mxu1 %v7327_v4 }
 0x5a5   :  { %4243 = vmatprep.subr.bf16.mxu1 %v7332_v36 }
 0x5a8   :  { %4244 = vmatpush1.bf16.msra.mxu1 %v7330_v39 }
 0x5ab   :  { %4246 = vmatmul.mubr.bf16.vlgmr.msra.gmra.mrb[20].mxu1 %v3850_v0 }
 0x5ac   :  { %5434 = vmatprep.mubr.bf16.mxu1 %v8967_v16 }
 0x67e   :  { %v4247_v50 = vpop.f32.mrb[20].mxu1 }
 0x67f   :  { %v4254_v49 = vsel %vm3573_vm2, %v4247_v50, 0.0  ;;  %v4268_v22 = vmul.f32 %v4247_v50, %v4247_v50  ;;  %v4249_v15 = vpop.f32.mrb[21].mxu1 }
 0x680   :  { %v4255_v27 = vrot.slane %v4254_v49, 4  ;;  %v4261_v4 = vsel %vm3573_vm2, %v4249_v15, 0.0  ;;  %v4269_v36 = vmul.f32 %v4249_v15, %v4249_v15  ;;  %v4251_v39 = vpop.f32.mrb[22].mxu1 }
 0x681   :  { %v4270_v23 = vsel %vm3573_vm2, %v4268_v22, 0.0  ;;  %v4262_v0 = vrot.slane %v4261_v4, 4  ;;  %v4252_v58 = vpop.f32.mrb[23].mxu1 }
 0x682   :  { %v4256_v54 = vadd.f32 %v4255_v27, %v4254_v49  ;;  %v4271_v60 = vrot.slane %v4270_v23, 4  ;;  %v4277_v34 = vsel %vm3573_vm2, %v4269_v36, 0.0 }
 0x683   :  { %v4263_v8 = vadd.f32 %v4262_v0, %v4261_v4  ;;  %v4278_v42 = vrot.slane %v4277_v34, 4  ;;  %v6604_v4 = vld [vmem:[%s8871_s12 + $0x4] ss:$8 sm:$0x3] }
 0x684   :  { %v4257_v59 = vrot.slane %v4256_v54, 2  ;;  %v4272_v5 = vadd.f32 %v4271_v60, %v4270_v23 }
 0x685   :  { %v4264_v7 = vrot.slane %v4263_v8, 2  ;;  %v4279_v29 = vadd.f32 %v4278_v42, %v4277_v34 }
 0x686   :  { %v4258_v21 = vadd.f32 %v4257_v59, %v4256_v54  ;;  %v4273_v19 = vrot.slane %v4272_v5, 2  ;;  %v6605_v59 = vld [vmem:[%s8866_s7] ss:$0 sm:$0xff]  ;;  %s7522_s7 = smov 125  }
 0x687   :  { %v4265_v61 = vadd.f32 %v4264_v7, %v4263_v8  ;;  %v4280_v44 = vrot.slane %v4279_v29, 2 }
 0x688   :  { %v4259_v2 = vrot.slane %v4258_v21, 1  ;;  %v4274_v45 = vadd.f32 %v4273_v19, %v4272_v5 }
 0x689   :  { %v4266_v26 = vrot.slane %v4265_v61, 1  ;;  %v4281_v25 = vadd.f32 %v4280_v44, %v4279_v29  ;;  %v7521_v29 = vmov 0.0  }
 0x68a   :  { %v4260_v51 = vadd.f32 %v4259_v2, %v4258_v21  ;;  %v4275_v40 = vrot.slane %v4274_v45, 1 }
 0x68b   :  { %v4267_v43 = vadd.f32 %v4266_v26, %v4265_v61  ;;  %v4282_v14 = vrot.slane %v4281_v25, 1 }
 0x68c   :  { %v4276_v33 = vadd.f32 %v4275_v40, %v4274_v45  ;;  %v4284_v52 = vmul.f32 0.5, %v4260_v51  ;;  %v8969_v51 = vld [vmem:[#allocation18_spill] sm:$0xff] }
 0x68d   :  { %v4283_v57 = vadd.f32 %v4282_v14, %v4281_v25  ;;  %v4285_v12 = vmul.f32 0.5, %v4267_v43  ;;  %v8970_v43 = vld [vmem:[#allocation15_spill] sm:$0xff] }
 0x68e   :  { %v4286_v32 = vmul.f32 0.5, %v4276_v33  ;;  %v4288_v35 = vmul.f32 %v4284_v52, %v4284_v52 }
 0x68f   :  { %v4287_v41 = vmul.f32 0.5, %v4283_v57  ;;  %v4289_v31 = vmul.f32 %v4285_v12, %v4285_v12 }
 0x690   :  { %v4290_v30 = vsub.f32 %v4286_v32, %v4288_v35  ;;  %v8973_v35 = vld [vmem:[#allocation26_spill] sm:$0xff] }
 0x691   :  { %v4291_v37 = vsub.f32 %v4287_v41, %v4289_v31  ;;  %v8974_v31 = vld [vmem:[#allocation21_spill] sm:$0xff] }
 0x692   :  { %v4292_v13 = vmax.f32 %v4290_v30, 0.0 }
 0x693   :  { %v4293_v48 = vmax.f32 %v4291_v37, 0.0  ;;  %v8975_v37 = vld [vmem:[#allocation28_spill] sm:$0xff] }
 0x694   :  { %v4298_v28 = vadd.f32 1e-05, %v4292_v13 }
 0x695   :  { %v4299_v6 = vadd.f32 1e-05, %v4293_v48  ;;  %v8976_v48 = vld [vmem:[#allocation27_spill] sm:$0xff] }
 0x696   :  { %7365 = vrsqrt.f32 %v4298_v28 }
 0x697   :  { %7367 = vrsqrt.f32 %v4299_v6 }
 0x6a0   :  { %v7366_v47 = vpop.eup %7365 }
 0x6a1   :  { %v7368_v63 = vpop.eup %7367 }
 0x6a2   :  { %v4304_v1 = vcombine.low %v7366_v47, %v7368_v63  ;;  %v8977_v63 = vld [vmem:[#allocation19_spill] sm:$0xff] }
 0x6a4   :  { %v4311_v10 = vrot.slane %v4304_v1, %v7946_v56 }
 0x6a6   :  { %v4318_v55 = vrot.slane %v4311_v10, %v7946_v56  ;;  %v8978_v10 = vld [vmem:[#allocation16_spill] sm:$0xff] }
 0x6a8   :  { %v4320_v9 = vmul.f32 %v6603_v62, %v4318_v55 }
 0x6aa   :  { %v4325_v3 = vrot.slane %v4320_v9, %v7704_v18  ;;  %v4329_v24 = vrot.slane %v4320_v9, %v8966_v46 }
 0x6ac   :  { %v4332_v53 = vmul.f32 %v4325_v3, %v4284_v52  ;;  %v4333_v17 = vmul.f32 %v4329_v24, %v4285_v12  ;;  %v4354_v38 = vmul.f32 %v4329_v24, %v4249_v15  ;;  %v4353_v49 = vmul.f32 %v4325_v3, %v4247_v50  ;;  %v8971_v52 = vld [vmem:[#allocation24_spill] sm:$0xff]  ;;  %v8972_v12 = vld [vmem:[#allocation23_spill] sm:$0xff] }
 0x6ad   :  { %v8968_v50 = vlaneseq }
 0x6ae   :  { %v4336_v22 = vcombine.low %v4332_v53, %v4333_v17 }
 0x6af   :  { %v4480_v15 = vand.u32 127, %v8968_v50 }
 0x6b0   :  { %v4343_v27 = vrot.slane %v4336_v22, %v7946_v56  ;;  %v8979_v22 = vmov 1  }
 0x6b1   :  { %v4485_v8 = vand.u32 3, %v4480_v15  ;;  %v7333_v15 = vld [vmem:[%s8868_s9] sm:$0xff]  }
 0x6b2   :  { %v4350_v36 = vrot.slane %v4343_v27, %v7946_v56  ;;  %v8980_v27 = vld [vmem:[#allocation25_spill] sm:$0xff]  ;;  %6739 = vmatprep.subr.bf16.mxu0 %v7333_v15 }
 0x6b3   :  { %vm4493_vm3 = vcmp.eq.s32.totalorder %v4485_v8, 0  ;;  %v7334_v8 = vld [vmem:[%s8868_s9 + $0x8] sm:$0xff]  }
 0x6b4   :  { %v4352_v39 = vsub.f32 %v6604_v4, %v4350_v36  ;;  %v4494_v21 = vsel %vm4493_vm3, 1.0, %v7521_v29  ;;  %v8981_v36 = vld [vmem:[#allocation22_spill] sm:$0xff] }
 0x6b6   :  { %v4363_v23 = vrot.slane %v4352_v39, %v8966_v46  ;;  %v4359_v0 = vrot.slane %v4352_v39, %v7704_v18 }
 0x6b8   :  { %v4367_v58 = vadd.f32 %v4363_v23, %v4354_v38  ;;  %v4366_v54 = vadd.f32 %v4359_v0, %v4353_v49  ;;  %v8982_v23 = vmov 2  }
 0x6ba   :  { %v4369_v60 = vmax.f32 %v4367_v58, 0.0  ;;  %v4368_v34 = vmax.f32 %v4366_v54, 0.0 }
 0x6bc   :  { %4473 = vmatprep.mubr.f32.mxu0 %v4369_v60 }
 0x6bd   :  { %4474 = vmatmul.mubr.f32.vlgmr.msra.gmra.mrb[24].mxu0 %v4368_v34 }
 0x6be   :  { %6740 = vmatpush3.bf16.msra.mxu0 %v7333_v15 }
 0x6bf   :  { %6741 = vmatprep.subr.bf16.mxu0 %v7334_v8 }
 0x6c2   :  { %6742 = vmatpush3.bf16.msra.mxu0 %v7334_v8 }
 0x790   :  { %v6718_v42 = vpop.f32.mrb[24].mxu0 }
 0x791   :  { %v6719_v5 = vpop.f32.mrb[25].mxu0 }
 0x792   :  { %v6720_v7 = vadd.f32 %v6719_v5, %v6718_v42  ;;  %v7335_v42 = vld [vmem:[%s8868_s9 + $0x10] sm:$0xff]  }
 0x793   :  { %6743 = vmatprep.subr.bf16.mxu0 %v7335_v42 }
 0x794   :  { %v4476_v19 = vadd.f32 %v6720_v7, %v6605_v59  ;;  %v7336_v59 = vld [vmem:[%s8868_s9 + $0x18] sm:$0xff]   ;;  %6744 = vmatpush3.bf16.msra.mxu0 %v7335_v42 }
 0x795   :  { %6745 = vmatprep.subr.bf16.mxu0 %v7336_v59 }
 0x796   :  { %v4495_v61 = vadd.f32 %v4494_v21, %v4476_v19 }
 0x798   :  { %4497 = vst.msk [vmem:[%s8873_s14] sm:$0x3] %vm4496_vm4, %v4495_v61  ;;  %v4505_v44 = vrot.slane %v4495_v61, %v7946_v56  ;;  %s7523_s14 = smov 122   ;;  %6746 = vmatpush3.bf16.msra.mxu0 %v7336_v59  ;;  %v4583_v61 = vld [vmem:[%s8867_s8] sm:$0x7] }
 0x79a   :  { %v4506_v2 = vcombine.high %v4505_v44, %v4505_v44  ;;  %v4513_v45 = vrot.slane %v4505_v44, %v7946_v56 }
 0x79c   :  { %v4524_v26 = vrot.slane %v4513_v45, %v7704_v18  ;;  %v4520_v25 = vrot.slane %v4506_v2, %v7946_v56  ;;  %v4631_v2 = vrot.slane %v4583_v61, %v8966_v46  ;;  %v4607_v45 = vrot.slane %v4583_v61, %v7704_v18 }
 0x79e   :  { %v4536_v40 = vmul.f32 %v4524_v26, %v8969_v51  ;;  %v4535_v14 = vmul.f32 %v4524_v26, %v8970_v43  ;;  %v4528_v33 = vrot.slane %v4520_v25, %v7704_v18  ;;  %v4559_v57 = vmul.f32 %v4524_v26, %v8971_v52 }
 0x79f   :  { %v4560_v32 = vmul.f32 %v4524_v26, %v8972_v12  ;;  %v4532_v1 = vmul.f32 %v4524_v26, %v8977_v63  ;;  %v4531_v62 = vmul.f32 %v4524_v26, %v8978_v10  ;;  %v4659_v26 = vrot.slane %v4583_v61, %v7710_v20 }
 0x7a0   :  { %4545 = vrot.lane.b32.xlu1 %v4536_v40, %s7522_s7  ;;  %4543 = vrot.lane.b32.xlu0 %v4535_v14, %s7522_s7  ;;  %v4538_v41 = vmul.f32 %v4528_v33, %v8973_v35  ;;  %v4537_v30 = vmul.f32 %v4528_v33, %v8974_v31  ;;  %v4562_v13 = vmul.f32 %v4528_v33, %v8975_v37 }
 0x7a1   :  { %v4561_v28 = vmul.f32 %v4528_v33, %v8976_v48  ;;  %v4534_v4 = vmul.f32 %v4528_v33, %v8980_v27  ;;  %v4533_v39 = vmul.f32 %v4528_v33, %v8981_v36 }
 0x7a4   :  { %4567 = vrot.lane.b32.xlu1 %v4559_v57, %s7523_s14  ;;  %4569 = vrot.lane.b32.xlu0 %v4560_v32, %s7523_s14 }
 0x7a8   :  { %4549 = vrot.lane.b32.xlu1 %v4538_v41, %s7522_s7  ;;  %4547 = vrot.lane.b32.xlu0 %v4537_v30, %s7522_s7 }
 0x7ac   :  { %4573 = vrot.lane.b32.xlu1 %v4562_v13, %s7523_s14  ;;  %4571 = vrot.lane.b32.xlu0 %v4561_v28, %s7523_s14 }
 0x812   :  { %v4546_v6 = vpop.permute.xlu1 %4545  ;;  %v4544_v47 = vpop.permute.xlu0 %4543 }
 0x813   :  { %v4556_v55 = vadd.f32 %v4546_v6, %v4532_v1  ;;  %v4555_v9 = vadd.f32 %v4544_v47, %v4531_v62 }
 0x816   :  { %v4568_v3 = vpop.permute.xlu1 %4567  ;;  %v4570_v24 = vpop.permute.xlu0 %4569 }
 0x817   :  { %v4579_v53 = vadd.f32 %v4568_v3, %v4555_v9  ;;  %v4580_v17 = vadd.f32 %v4570_v24, %v4556_v55 }
 0x819   :  { %4591 = vperm.xlu1 %6838, %v4580_v17   ;;  %4586 = vperm.xlu0 %6837, %v4579_v53  }
 0x81a   :  { %v4550_v38 = vpop.permute.xlu1 %4549  ;;  %v4548_v49 = vpop.permute.xlu0 %4547 }
 0x81b   :  { %v4558_v54 = vadd.f32 %v4550_v38, %v4534_v4  ;;  %v4557_v60 = vadd.f32 %v4548_v49, %v4533_v39 }
 0x81d   :  { %6839 = vset.pattern.permute.xlu1 %v8979_v22  ;;  %6840 = vset.pattern.permute.xlu0 %v8979_v22 }
 0x81e   :  { %4613 = vperm.xlu1 %6839, %v4579_v53   ;;  %4617 = vperm.xlu0 %6840, %v4580_v17   ;;  %v4574_v0 = vpop.permute.xlu1 %4573  ;;  %v4572_v58 = vpop.permute.xlu0 %4571 }
 0x81f   :  { %v4582_v34 = vadd.f32 %v4574_v0, %v4558_v54  ;;  %v4581_v50 = vadd.f32 %v4572_v58, %v4557_v60 }
 0x822   :  { %6842 = vset.pattern.permute.xlu1 %v8982_v23  ;;  %6841 = vset.pattern.permute.xlu0 %v8982_v23 }
 0x823   :  { %4645 = vperm.xlu1 %6842, %v4580_v17   ;;  %4641 = vperm.xlu0 %6841, %v4579_v53  }
 0x827   :  { %6843 = vset.pattern.permute.xlu1 %v8967_v16  ;;  %6846 = vset.pattern.permute.xlu0 %v8979_v22 }
 0x828   :  { %4625 = vperm.xlu0 %6846, %v4582_v34   ;;  %4596 = vperm.xlu1 %6843, %v4581_v50  }
 0x82c   :  { %6844 = vset.pattern.permute.xlu1 %v8979_v22  ;;  %6848 = vset.pattern.permute.xlu0 %v8982_v23 }
 0x82d   :  { %4621 = vperm.xlu1 %6844, %v4581_v50  }
 0x831   :  { %6845 = vset.pattern.permute.xlu1 %v8967_v16 }
 0x832   :  { %4601 = vperm.xlu1 %6845, %v4582_v34  }
 0x836   :  { %6847 = vset.pattern.permute.xlu1 %v8982_v23 }
 0x837   :  { %4649 = vperm.xlu1 %6847, %v4581_v50  }
 0x83b   :  { %4653 = vperm.xlu1 %6847, %v4582_v34  }
 0x898   :  { %v4592_v5 = vpop.permute.xlu1 %4591  ;;  %v4587_v29 = vpop.permute.xlu0 %4586 }
 0x899   :  { %v4609_v14 = vmul.f32 %v4607_v45, %v4592_v5  ;;  %v4608_v33 = vmul.f32 %v4607_v45, %v4587_v29 }
 0x89d   :  { %v4614_v7 = vpop.permute.xlu1 %4613  ;;  %v4618_v19 = vpop.permute.xlu0 %4617 }
 0x89e   :  { %v4632_v51 = vmul.f32 %v4631_v2, %v4614_v7  ;;  %v4633_v40 = vmul.f32 %v4631_v2, %v4618_v19 }
 0x8a0   :  { %v4636_v12 = vadd.f32 %v4632_v51, %v4608_v33  ;;  %v4637_v32 = vadd.f32 %v4633_v40, %v4609_v14  ;;  %v4703_v14 = vld [vmem:[%s8870_s11 + $0x5] ss:$0 sm:$0xff] }
 0x8a2   :  { %v4646_v21 = vpop.permute.xlu1 %4645  ;;  %v4642_v25 = vpop.permute.xlu0 %4641 }
 0x8a3   :  { %v4661_v52 = vmul.f32 %v4659_v26, %v4646_v21  ;;  %v4660_v57 = vmul.f32 %v4659_v26, %v4642_v25 }
 0x8a5   :  { %v4665_v41 = vadd.f32 %v4661_v52, %v4637_v32  ;;  %v4664_v31 = vadd.f32 %v4660_v57, %v4636_v12  ;;  %v4704_v57 = vld [vmem:[%s8871_s12 + $0x5] ss:$0 sm:$0xff] }
 0x8a7   :  { %v4597_v44 = vpop.permute.xlu1 %4596  ;;  %v4682_v13 = vmul.f32 %v4665_v41, %v4665_v41  ;;  %v4681_v48 = vmul.f32 %v4664_v31, %v4664_v31  ;;  %v4626_v28 = vpop.permute.xlu0 %4625  ;;  %v4669_v10 = vsel %vm192_vm0, %v4665_v41, 0.0  ;;  %v4668_v62 = vsel %vm192_vm0, %v4664_v31, 0.0 }
 0x8a8   :  { %v4610_v37 = vmul.f32 %v4607_v45, %v4597_v44  ;;  %v4635_v55 = vmul.f32 %v4631_v2, %v4626_v28  ;;  %v4670_v27 = vadd.f32 %v4669_v10, %v4668_v62 }
 0x8a9   :  { %v4686_v3 = vsel %vm192_vm0, %v4682_v13, 0.0  ;;  %v4685_v24 = vsel %vm192_vm0, %v4681_v48, 0.0 }
 0x8aa   :  { %v4687_v39 = vadd.f32 %v4686_v3, %v4685_v24  ;;  %v4861_v24 = vld [vmem:[#allocation8 + $0x20] sm:$0xff] }
 0x8ac   :  { %v4622_v43 = vpop.permute.xlu1 %4621 }
 0x8ad   :  { %v4634_v30 = vmul.f32 %v4631_v2, %v4622_v43 }
 0x8af   :  { %v4638_v47 = vadd.f32 %v4634_v30, %v4610_v37 }
 0x8b1   :  { %v4602_v35 = vpop.permute.xlu1 %4601 }
 0x8b2   :  { %v4611_v63 = vmul.f32 %v4607_v45, %v4602_v35 }
 0x8b4   :  { %v4639_v17 = vadd.f32 %v4635_v55, %v4611_v63 }
 0x8b6   :  { %v4650_v6 = vpop.permute.xlu1 %4649 }
 0x8b7   :  { %v4662_v1 = vmul.f32 %v4659_v26, %v4650_v6 }
 0x8b9   :  { %v4666_v9 = vadd.f32 %v4662_v1, %v4638_v47 }
 0x8ba   :  { %v4654_v53 = vpop.permute.xlu1 %4653 }
 0x8bb   :  { %v4671_v38 = vsel %vm192_vm0, %v4666_v9, 0.0  ;;  %v4683_v49 = vmul.f32 %v4666_v9, %v4666_v9  ;;  %v4663_v22 = vmul.f32 %v4659_v26, %v4654_v53 }
 0x8bc   :  { %v4672_v23 = vadd.f32 %v4671_v38, %v4670_v27  ;;  %v4865_v38 = vld [vmem:[#allocation8 + $0x40] sm:$0xff] }
 0x8bd   :  { %v4688_v4 = vsel %vm192_vm0, %v4683_v49, 0.0  ;;  %v4667_v36 = vadd.f32 %v4663_v22, %v4639_v17  ;;  %v4864_v17 = vld [vmem:[#allocation8 + $0x38] sm:$0xff]  ;;  %v4869_v49 = vld [vmem:[#allocation8 + $0x60] sm:$0xff] }
 0x8be   :  { %v4689_v54 = vadd.f32 %v4688_v4, %v4687_v39  ;;  %v6621_v4 = vcombine.high %v4865_v38, %v4869_v49  ;;  %v4872_v39 = vld [vmem:[#allocation8 + $0x78] sm:$0xff] }
 0x8bf   :  { %v4673_v0 = vsel %vm192_vm0, %v4667_v36, 0.0  ;;  %v4684_v58 = vmul.f32 %v4667_v36, %v4667_v36 }
 0x8c0   :  { %v4674_v60 = vadd.f32 %v4673_v0, %v4672_v23  ;;  %v4873_v23 = vld [vmem:[#allocation8 + $0x80] sm:$0xff] }
 0x8c1   :  { %v4690_v34 = vsel %vm192_vm0, %v4684_v58, 0.0  ;;  %v4877_v58 = vld [vmem:[#allocation8 + $0xa0] sm:$0xff] }
 0x8c2   :  { %v4675_v50 = vrot.slane %v4674_v60, 4  ;;  %v4691_v15 = vadd.f32 %v4690_v34, %v4689_v54  ;;  %v4876_v54 = vld [vmem:[#allocation8 + $0x98] sm:$0xff]  ;;  %v6620_v34 = vcombine.low %v4865_v38, %v4869_v49 }
 0x8c4   :  { %v4676_v8 = vadd.f32 %v4675_v50, %v4674_v60  ;;  %v4692_v42 = vrot.slane %v4691_v15, 4  ;;  %v4880_v60 = vld [vmem:[#allocation8 + $0xb8] sm:$0xff] }
 0x8c6   :  { %v4677_v59 = vrot.slane %v4676_v8, 2  ;;  %v4693_v5 = vadd.f32 %v4692_v42, %v4691_v15  ;;  %v6629_v15 = vcombine.high %v4873_v23, %v4877_v58  ;;  %v4881_v42 = vld [vmem:[#allocation8 + $0xc0] sm:$0xff] }
 0x8c8   :  { %v4678_v7 = vadd.f32 %v4677_v59, %v4676_v8  ;;  %v4694_v29 = vrot.slane %v4693_v5, 2  ;;  %v6635_v8 = vcombine.high %v4876_v54, %v4880_v60  ;;  %v4885_v59 = vld [vmem:[#allocation8 + $0xe0] sm:$0xff] }
 0x8ca   :  { %v4679_v21 = vrot.slane %v4678_v7, 1  ;;  %v4695_v19 = vadd.f32 %v4694_v29, %v4693_v5  ;;  %v4884_v5 = vld [vmem:[#allocation8 + $0xd8] sm:$0xff]  ;;  %v6628_v29 = vcombine.low %v4873_v23, %v4877_v58 }
 0x8cc   :  { %v4680_v61 = vadd.f32 %v4679_v21, %v4678_v7  ;;  %v4696_v44 = vrot.slane %v4695_v19, 1  ;;  %v4888_v7 = vld [vmem:[#allocation8 + $0xf8] sm:$0xff]  ;;  %v6634_v21 = vcombine.low %v4876_v54, %v4880_v60 }
 0x8ce   :  { %v4697_v2 = vadd.f32 %v4696_v44, %v4695_v19  ;;  %v4698_v45 = vmul.f32 0.03125, %v4680_v61  ;;  %v6637_v19 = vcombine.high %v4881_v42, %v4885_v59  ;;  %v6643_v61 = vcombine.high %v4884_v5, %v4888_v7  ;;  %v4889_v44 = vld [vmem:[#allocation8 + $0x100] sm:$0xff] }
 0x8d0   :  { %v4699_v26 = vmul.f32 0.03125, %v4697_v2  ;;  %v4700_v25 = vmul.f32 %v4698_v45, %v4698_v45  ;;  %v4893_v2 = vld [vmem:[#allocation8 + $0x120] sm:$0xff] }
 0x8d2   :  { %v4701_v51 = vsub.f32 %v4699_v26, %v4700_v25  ;;  %v4892_v26 = vld [vmem:[#allocation8 + $0x118] sm:$0xff] }
 0x8d3   :  { %v4896_v25 = vld [vmem:[#allocation8 + $0x138] sm:$0xff] }
 0x8d4   :  { %v4702_v40 = vmax.f32 %v4701_v51, 0.0  ;;  %v8468_v51 = vld [vmem:[#allocation8 + $0x28] sm:$0xff] }
 0x8d6   :  { %v4705_v43 = vadd.f32 1e-05, %v4702_v40  ;;  %v6636_v40 = vcombine.low %v4881_v42, %v4885_v59 }
 0x8d8   :  { %7369 = vrsqrt.f32 %v4705_v43 }
 0x8e2   :  { %v7370_v33 = vpop.eup %7369 }
 0x8e3   :  { %v4707_v52 = vmul.f32 %v7370_v33, %v4703_v14  ;;  %v6642_v14 = vcombine.low %v4884_v5, %v4888_v7  ;;  %v6645_v33 = vcombine.high %v4889_v44, %v4893_v2 }
 0x8e5   :  { %v4708_v12 = vmul.f32 %v4707_v52, %v4698_v45  ;;  %v4712_v32 = vmul.f32 %v4707_v52, %v4666_v9  ;;  %v4713_v30 = vmul.f32 %v4707_v52, %v4667_v36  ;;  %v4710_v37 = vmul.f32 %v4707_v52, %v4664_v31  ;;  %v4857_v9 = vld [vmem:[#allocation8] sm:$0xff]  ;;  %v4860_v31 = vld [vmem:[#allocation8 + $0x18] sm:$0xff]  ;;  %v8466_v45 = vld [vmem:[#allocation8 + $0x8] sm:$0xff] }
 0x8e6   :  { %v4711_v13 = vmul.f32 %v4707_v52, %v4665_v41  ;;  %v6612_v41 = vcombine.low %v4857_v9, %v4861_v24  ;;  %v6613_v53 = vcombine.high %v4857_v9, %v4861_v24  ;;  %v6618_v22 = vcombine.low %v4860_v31, %v4864_v17  ;;  %v4868_v36 = vld [vmem:[#allocation8 + $0x58] sm:$0xff]  ;;  %v4917_v9 = vld [vmem:[#allocation8 + $0x1e0] sm:$0xff] }
 0x8e7   :  { %v4709_v35 = vsub.f32 %v4704_v57, %v4708_v12  ;;  %v6619_v27 = vcombine.high %v4860_v31, %v4864_v17  ;;  %v6627_v0 = vcombine.high %v4868_v36, %v4872_v39  ;;  %v6626_v50 = vcombine.low %v4868_v36, %v4872_v39  ;;  %v4897_v57 = vld [vmem:[#allocation8 + $0x140] sm:$0xff]  ;;  %v4916_v24 = vld [vmem:[#allocation8 + $0x1d8] sm:$0xff] }
 0x8e8   :  { %5243 = vmatprep.subr.bf16.mxu0 %v6613_v53  ;;  %v6614_v43 = vcombine.low %v8466_v45, %v8468_v51  ;;  %v6651_v52 = vcombine.high %v4892_v26, %v4896_v25  ;;  %v4901_v12 = vld [vmem:[#allocation8 + $0x160] sm:$0xff]  ;;  %v4920_v31 = vld [vmem:[#allocation8 + $0x1f8] sm:$0xff] }
 0x8e9   :  { %v4716_v48 = vadd.f32 %v4712_v32, %v4709_v35  ;;  %v4717_v28 = vadd.f32 %v4713_v30, %v4709_v35  ;;  %v4714_v6 = vadd.f32 %v4710_v37, %v4709_v35  ;;  %v4715_v47 = vadd.f32 %v4711_v13, %v4709_v35  ;;  %5402 = vmatprep.subr.bf16.mxu1 %v6619_v27  ;;  %v4900_v32 = vld [vmem:[#allocation8 + $0x158] sm:$0xff] }
 0x8ea   :  { %5403 = vmatpush1.bf16.msra.mxu1 %v6618_v22  ;;  %v4904_v35 = vld [vmem:[#allocation8 + $0x178] sm:$0xff]  ;;  %v6644_v30 = vcombine.low %v4889_v44, %v4893_v2  ;;  %v6650_v37 = vcombine.low %v4892_v26, %v4896_v25  ;;  %v6653_v13 = vcombine.high %v4897_v57, %v4901_v12  ;;  %v6675_v38 = vcombine.high %v4916_v24, %v4920_v31 }
 0x8eb   :  { %v4720_v63 = vmax.f32 %v4716_v48, 0.0  ;;  %v4721_v1 = vmax.f32 %v4717_v28, 0.0  ;;  %v4718_v10 = vmax.f32 %v4714_v6, 0.0  ;;  %v4719_v62 = vmax.f32 %v4715_v47, 0.0  ;;  %5404 = vmatprep.subr.bf16.mxu1 %v6627_v0  ;;  %v4905_v28 = vld [vmem:[#allocation8 + $0x180] sm:$0xff]  ;;  %v4908_v47 = vld [vmem:[#allocation8 + $0x198] sm:$0xff] }
 0x8ec   :  { %v6659_v48 = vcombine.high %v4900_v32, %v4904_v35  ;;  %v4909_v6 = vld [vmem:[#allocation8 + $0x1a0] sm:$0xff]  ;;  %v6674_v22 = vcombine.low %v4916_v24, %v4920_v31  ;;  %v6615_v27 = vcombine.high %v8466_v45, %v8468_v51  ;;  %v4866_v24 = vld [vmem:[#allocation8 + $0x48] sm:$0xff] }
 0x8ed   :  { %v4731_v55 = vpack.c.bf16 %v4721_v1, %v4720_v63  ;;  %v4730_v3 = vpack.c.bf16 %v4719_v62, %v4718_v10  ;;  %v4912_v63 = vld [vmem:[#allocation8 + $0x1b8] sm:$0xff]  ;;  %v6652_v1 = vcombine.low %v4897_v57, %v4901_v12  ;;  %v6658_v10 = vcombine.low %v4900_v32, %v4904_v35  ;;  %v4870_v31 = vld [vmem:[#allocation8 + $0x68] sm:$0xff] }
 0x8ee   :  { %5405 = vmatpush1.bf16.msra.mxu1 %v6626_v50  ;;  %v6661_v62 = vcombine.high %v4905_v28, %v4909_v6  ;;  %v6666_v53 = vcombine.low %v4908_v47, %v4912_v63 }
 0x8ef   :  { %6747 = vmatprep.mubr.msk.bf16.mxu0 %vm192_vm0, %v4730_v3  ;;  %5406 = vmatprep.subr.bf16.mxu1 %v6635_v8  ;;  %v4913_v3 = vld [vmem:[#allocation8 + $0x1c0] sm:$0xff] }
 0x8f0   :  { %6748 = vmatmul.mubr.msk.bf16.vlgmr.msra.gmra.mrb[28].mxu0 %vm192_vm0, %v4731_v55  ;;  %v6667_v55 = vcombine.high %v4908_v47, %v4912_v63  ;;  %v6669_v17 = vcombine.high %v4913_v3, %v4917_v9  ;;  %v6668_v49 = vcombine.low %v4913_v3, %v4917_v9 }
 0x8f1   :  { %5275 = vmatprep.mubr.bf16.mxu0 %v8967_v16  ;;  %5244 = vmatpush1.bf16.msra.mxu0 %v6612_v41  ;;  %v6660_v41 = vcombine.low %v4905_v28, %v4909_v6 }
 0x8f2   :  { %5245 = vmatprep.subr.bf16.mxu0 %v6621_v4  ;;  %5407 = vmatpush1.bf16.msra.mxu1 %v6634_v21 }
 0x8f3   :  { %5408 = vmatprep.subr.bf16.mxu1 %v6643_v61 }
 0x8f5   :  { %5246 = vmatpush1.bf16.msra.mxu0 %v6620_v34 }
 0x8f6   :  { %5247 = vmatprep.subr.bf16.mxu0 %v6629_v15  ;;  %5409 = vmatpush1.bf16.msra.mxu1 %v6642_v14 }
 0x8f7   :  { %5410 = vmatprep.subr.bf16.mxu1 %v6651_v52 }
 0x8f9   :  { %5248 = vmatpush1.bf16.msra.mxu0 %v6628_v29 }
 0x8fa   :  { %5249 = vmatprep.subr.bf16.mxu0 %v6637_v19  ;;  %5411 = vmatpush1.bf16.msra.mxu1 %v6650_v37 }
 0x8fb   :  { %5412 = vmatprep.subr.bf16.mxu1 %v6659_v48  ;;  %v4839_v48 = vld [vmem:[%s8871_s12 + $0x6] ss:$0 sm:$0xff] }
 0x8fd   :  { %5250 = vmatpush1.bf16.msra.mxu0 %v6636_v40 }
 0x8fe   :  { %5251 = vmatprep.subr.bf16.mxu0 %v6645_v33  ;;  %5413 = vmatpush1.bf16.msra.mxu1 %v6658_v10 }
 0x8ff   :  { %5414 = vmatprep.subr.bf16.mxu1 %v6667_v55 }
 0x901   :  { %5252 = vmatpush1.bf16.msra.mxu0 %v6644_v30  ;;  %v4838_v30 = vld [vmem:[%s8870_s11 + $0x6] ss:$0 sm:$0xff] }
 0x902   :  { %5253 = vmatprep.subr.bf16.mxu0 %v6653_v13  ;;  %5415 = vmatpush1.bf16.msra.mxu1 %v6666_v53 }
 0x903   :  { %5416 = vmatprep.subr.bf16.mxu1 %v6675_v38 }
 0x905   :  { %5254 = vmatpush1.bf16.msra.mxu0 %v6652_v1 }
 0x906   :  { %5255 = vmatprep.subr.bf16.mxu0 %v6661_v62  ;;  %5417 = vmatpush1.bf16.msra.mxu1 %v6674_v22  ;;  %v6623_v22 = vcombine.high %v4866_v24, %v4870_v31 }
 0x909   :  { %5256 = vmatpush1.bf16.msra.mxu0 %v6660_v41 }
 0x90a   :  { %5257 = vmatprep.subr.bf16.mxu0 %v6669_v17 }
 0x90d   :  { %5258 = vmatpush1.bf16.msra.mxu0 %v6668_v49 }
 0x90e   :  { %5296 = vmatprep.subr.bf16.mxu0 %v6615_v27 }
 0x9c3   :  { %v6749_v4 = vpop.f32.mrb[28].mxu0 }
 0x9c4   :  { %v4796_v36 = vpop.f32.mrb[29].mxu0  ;;  %v4822_v60 = vmul.f32 %v6749_v4, %v6749_v4 }
 0x9c5   :  { %v6750_v39 = vpop.f32.mrb[30].mxu0  ;;  %v4820_v0 = vmul.f32 %v4796_v36, %v4796_v36 }
 0x9c6   :  { %v4799_v23 = vpop.f32.mrb[31].mxu0  ;;  %v4823_v15 = vmul.f32 %v6750_v39, %v6750_v39 }
 0x9c7   :  { %v4811_v58 = vadd.f32 %v4799_v23, %v4796_v36  ;;  %v4821_v54 = vmul.f32 %v4799_v23, %v4799_v23 }
 0x9c9   :  { %v4812_v34 = vadd.f32 %v6749_v4, %v4811_v58  ;;  %v4824_v50 = vadd.f32 %v4821_v54, %v4820_v0  ;;  %v4882_v0 = vld [vmem:[#allocation8 + $0xc8] sm:$0xff] }
 0x9ca   :  { %v4886_v58 = vld [vmem:[#allocation8 + $0xe8] sm:$0xff] }
 0x9cb   :  { %v4813_v8 = vadd.f32 %v6750_v39, %v4812_v34  ;;  %v4825_v42 = vadd.f32 %v4824_v50, %v4822_v60  ;;  %v6639_v60 = vcombine.high %v4882_v0, %v4886_v58  ;;  %v4890_v34 = vld [vmem:[#allocation8 + $0x108] sm:$0xff]  ;;  %v6638_v45 = vcombine.low %v4882_v0, %v4886_v58 }
 0x9cc   :  { %v4894_v50 = vld [vmem:[#allocation8 + $0x128] sm:$0xff] }
 0x9cd   :  { %v4814_v59 = vrot.slane %v4813_v8, 4  ;;  %v4826_v5 = vadd.f32 %v4825_v42, %v4823_v15  ;;  %v6647_v51 = vcombine.high %v4890_v34, %v4894_v50  ;;  %v4902_v15 = vld [vmem:[#allocation8 + $0x168] sm:$0xff] }
 0x9cf   :  { %v4815_v7 = vadd.f32 %v4814_v59, %v4813_v8  ;;  %v4827_v29 = vrot.slane %v4826_v5, 4  ;;  %v6646_v8 = vcombine.low %v4890_v34, %v4894_v50  ;;  %v4906_v59 = vld [vmem:[#allocation8 + $0x188] sm:$0xff] }
 0x9d1   :  { %v4816_v21 = vrot.slane %v4815_v7, 2  ;;  %v4828_v19 = vadd.f32 %v4827_v29, %v4826_v5  ;;  %v4910_v5 = vld [vmem:[#allocation8 + $0x1a8] sm:$0xff] }
 0x9d2   :  { %v6663_v29 = vcombine.high %v4906_v59, %v4910_v5 }
 0x9d3   :  { %v4817_v61 = vadd.f32 %v4816_v21, %v4815_v7  ;;  %v4829_v44 = vrot.slane %v4828_v19, 2  ;;  %v4914_v21 = vld [vmem:[#allocation8 + $0x1c8] sm:$0xff] }
 0x9d5   :  { %v4818_v2 = vrot.slane %v4817_v61, 1  ;;  %v4830_v26 = vadd.f32 %v4829_v44, %v4828_v19  ;;  %v4918_v19 = vld [vmem:[#allocation8 + $0x1e8] sm:$0xff] }
 0x9d6   :  { %v6671_v44 = vcombine.high %v4914_v21, %v4918_v19 }
 0x9d7   :  { %v4819_v25 = vadd.f32 %v4818_v2, %v4817_v61  ;;  %v4831_v40 = vrot.slane %v4830_v26, 1  ;;  %v6662_v61 = vcombine.low %v4906_v59, %v4910_v5  ;;  %v4859_v2 = vld [vmem:[#allocation8 + $0x10] sm:$0xff] }
 0x9d9   :  { %v4832_v14 = vadd.f32 %v4831_v40, %v4830_v26  ;;  %v4833_v33 = vmul.f32 0.03125, %v4819_v25  ;;  %v4863_v26 = vld [vmem:[#allocation8 + $0x30] sm:$0xff]  ;;  %v6670_v25 = vcombine.low %v4914_v21, %v4918_v19 }
 0x9da   :  { %v6617_v40 = vcombine.high %v4859_v2, %v4863_v26 }
 0x9db   :  { %v4834_v52 = vmul.f32 0.03125, %v4832_v14  ;;  %v4835_v57 = vmul.f32 %v4833_v33, %v4833_v33  ;;  %v4867_v14 = vld [vmem:[#allocation8 + $0x50] sm:$0xff] }
 0x9dd   :  { %v4836_v12 = vsub.f32 %v4834_v52, %v4835_v57  ;;  %v6616_v52 = vcombine.low %v4859_v2, %v4863_v26 }
 0x9df   :  { %v4837_v32 = vmax.f32 %v4836_v12, 0.0  ;;  %v4875_v12 = vld [vmem:[#allocation8 + $0x90] sm:$0xff] }
 0x9e1   :  { %v4840_v35 = vadd.f32 1e-05, %v4837_v32  ;;  %v4879_v32 = vld [vmem:[#allocation8 + $0xb0] sm:$0xff] }
 0x9e3   :  { %7371 = vrsqrt.f32 %v4840_v35 }
 0x9ed   :  { %v7372_v37 = vpop.eup %7371 }
 0x9ee   :  { %v4842_v13 = vmul.f32 %v7372_v37, %v4838_v30  ;;  %v6633_v30 = vcombine.high %v4875_v12, %v4879_v32  ;;  %v4883_v37 = vld [vmem:[#allocation8 + $0xd0] sm:$0xff] }
 0x9f0   :  { %v4843_v28 = vmul.f32 %v4842_v13, %v4833_v33  ;;  %v4846_v6 = vmul.f32 %v4842_v13, %v4799_v23  ;;  %v4845_v47 = vmul.f32 %v4842_v13, %v4796_v36  ;;  %v4847_v63 = vmul.f32 %v6749_v4, %v4842_v13  ;;  %v4874_v23 = vld [vmem:[#allocation8 + $0x88] sm:$0xff]  ;;  %v4871_v33 = vld [vmem:[#allocation8 + $0x70] sm:$0xff] }
 0x9f1   :  { %v4848_v1 = vmul.f32 %v6750_v39, %v4842_v13  ;;  %v4878_v36 = vld [vmem:[#allocation8 + $0xa8] sm:$0xff]  ;;  %v6622_v4 = vcombine.low %v4866_v24, %v4870_v31  ;;  %v6625_v57 = vcombine.high %v4867_v14, %v4871_v33  ;;  %v6624_v35 = vcombine.low %v4867_v14, %v4871_v33  ;;  %v4887_v13 = vld [vmem:[#allocation8 + $0xf0] sm:$0xff] }
 0x9f2   :  { %v4844_v10 = vsub.f32 %v4839_v48, %v4843_v28  ;;  %v6631_v39 = vcombine.high %v4874_v23, %v4878_v36  ;;  %v6630_v54 = vcombine.low %v4874_v23, %v4878_v36  ;;  %v6632_v48 = vcombine.low %v4875_v12, %v4879_v32  ;;  %v4911_v24 = vld [vmem:[#allocation8 + $0x1b0] sm:$0xff] }
 0x9f3   :  { %v6641_v28 = vcombine.high %v4883_v37, %v4887_v13 }
 0x9f4   :  { %v4850_v62 = vadd.f32 %v4846_v6, %v4844_v10  ;;  %v4849_v55 = vadd.f32 %v4845_v47, %v4844_v10  ;;  %v4851_v3 = vadd.f32 %v4847_v63, %v4844_v10  ;;  %v4852_v9 = vadd.f32 %v4848_v1, %v4844_v10  ;;  %v4891_v6 = vld [vmem:[#allocation8 + $0x110] sm:$0xff] }
 0x9f5   :  { %v4895_v47 = vld [vmem:[#allocation8 + $0x130] sm:$0xff]  ;;  %v6640_v63 = vcombine.low %v4883_v37, %v4887_v13 }
 0x9f6   :  { %v4854_v41 = vmax.f32 %v4850_v62, 0.0  ;;  %v4853_v53 = vmax.f32 %v4849_v55, 0.0  ;;  %v4855_v17 = vmax.f32 %v4851_v3, 0.0  ;;  %v4856_v38 = vmax.f32 %v4852_v9, 0.0  ;;  %v4899_v10 = vld [vmem:[#allocation8 + $0x150] sm:$0xff] }
 0x9f7   :  { %v6649_v1 = vcombine.high %v4891_v6, %v4895_v47  ;;  %v4903_v62 = vld [vmem:[#allocation8 + $0x170] sm:$0xff]  ;;  %v6648_v55 = vcombine.low %v4891_v6, %v4895_v47 }
 0x9f8   :  { %v8480_v49 = vpack.c.bf16 %v4854_v41, %v4853_v53  ;;  %v8482_v27 = vpack.c.bf16 %v4856_v38, %v4855_v17  ;;  %v6657_v3 = vcombine.high %v4899_v10, %v4903_v62  ;;  %v4907_v9 = vld [vmem:[#allocation8 + $0x190] sm:$0xff]  ;;  %v6656_v31 = vcombine.low %v4899_v10, %v4903_v62 }
 0x9f9   :  { %v6665_v41 = vcombine.high %v4907_v9, %v4911_v24  ;;  %v4915_v53 = vld [vmem:[#allocation8 + $0x1d0] sm:$0xff]  ;;  %v6664_v38 = vcombine.low %v4907_v9, %v4911_v24 }
 0x9fa   :  { %5276 = vmatmul.mubr.bf16.vlgmr.msra.gmra.mrb[32].mxu0 %v8480_v49  ;;  %5435 = vmatmul.mubr.bf16.vlgmr.msra.gmra.mrb[24].mxu1 %v8480_v49  ;;  %v4919_v17 = vld [vmem:[#allocation8 + $0x1f0] sm:$0xff] }
 0x9fb   :  { %5297 = vmatpush1.bf16.msra.mxu0 %v6614_v43  ;;  %5285 = vmatprep.mubr.bf16.mxu0 %v8967_v16  ;;  %v4898_v43 = vld [vmem:[#allocation8 + $0x148] sm:$0xff]  ;;  %v6672_v23 = vcombine.low %v4915_v53, %v4919_v17 }
 0x9fc   :  { %5298 = vmatprep.subr.bf16.mxu0 %v6623_v22  ;;  %5444 = vmatprep.mubr.bf16.mxu1 %v8967_v16  ;;  %v6655_v42 = vcombine.high %v4898_v43, %v4902_v15  ;;  %v6654_v7 = vcombine.low %v4898_v43, %v4902_v15  ;;  %v6673_v22 = vcombine.high %v4915_v53, %v4919_v17 }
 0x9ff   :  { %5299 = vmatpush1.bf16.msra.mxu0 %v6622_v4 }
 0xa00   :  { %5300 = vmatprep.subr.bf16.mxu0 %v6631_v39 }
 0xa02   :  { %5286 = vmatmul.mubr.bf16.gmra.mrb[36].mxu0 %v8482_v27  ;;  %5445 = vmatmul.mubr.bf16.gmra.mrb[28].mxu1 %v8482_v27 }
 0xa03   :  { %5301 = vmatpush1.bf16.msra.mxu0 %v6630_v54  ;;  %5328 = vmatprep.mubr.bf16.mxu0 %v8967_v16 }
 0xa04   :  { %5302 = vmatprep.subr.bf16.mxu0 %v6639_v60 }
 0xa07   :  { %5303 = vmatpush1.bf16.msra.mxu0 %v6638_v45 }
 0xa08   :  { %5304 = vmatprep.subr.bf16.mxu0 %v6647_v51 }
 0xa0b   :  { %5305 = vmatpush1.bf16.msra.mxu0 %v6646_v8 }
 0xa0c   :  { %5306 = vmatprep.subr.bf16.mxu0 %v6655_v42 }
 0xa0f   :  { %5307 = vmatpush1.bf16.msra.mxu0 %v6654_v7 }
 0xa10   :  { %5308 = vmatprep.subr.bf16.mxu0 %v6663_v29 }
 0xa13   :  { %5309 = vmatpush1.bf16.msra.mxu0 %v6662_v61 }
 0xa14   :  { %5310 = vmatprep.subr.bf16.mxu0 %v6671_v44 }
 0xa17   :  { %5311 = vmatpush1.bf16.msra.mxu0 %v6670_v25 }
 0xa18   :  { %5349 = vmatprep.subr.bf16.mxu0 %v6617_v40 }
 0xa1a   :  { %5329 = vmatmul.mubr.bf16.vlgmr.msra.gmra.mrb[40].mxu0 %v8480_v49 }
 0xa1b   :  { %5350 = vmatpush1.bf16.msra.mxu0 %v6616_v52  ;;  %5338 = vmatprep.mubr.bf16.mxu0 %v8967_v16 }
 0xa1c   :  { %5351 = vmatprep.subr.bf16.mxu0 %v6625_v57 }
 0xa1f   :  { %5352 = vmatpush1.bf16.msra.mxu0 %v6624_v35 }
 0xa20   :  { %5353 = vmatprep.subr.bf16.mxu0 %v6633_v30 }
 0xa22   :  { %5339 = vmatmul.mubr.bf16.gmra.mrb[44].mxu0 %v8482_v27 }
 0xa23   :  { %5354 = vmatpush1.bf16.msra.mxu0 %v6632_v48  ;;  %5381 = vmatprep.mubr.bf16.mxu0 %v8967_v16 }
 0xa24   :  { %5355 = vmatprep.subr.bf16.mxu0 %v6641_v28 }
 0xa27   :  { %5356 = vmatpush1.bf16.msra.mxu0 %v6640_v63 }
 0xa28   :  { %5357 = vmatprep.subr.bf16.mxu0 %v6649_v1 }
 0xa2b   :  { %5358 = vmatpush1.bf16.msra.mxu0 %v6648_v55 }
 0xa2c   :  { %5359 = vmatprep.subr.bf16.mxu0 %v6657_v3 }
 0xa2f   :  { %5360 = vmatpush1.bf16.msra.mxu0 %v6656_v31 }
 0xa30   :  { %5361 = vmatprep.subr.bf16.mxu0 %v6665_v41 }
 0xa33   :  { %5362 = vmatpush1.bf16.msra.mxu0 %v6664_v38 }
 0xa34   :  { %5363 = vmatprep.subr.bf16.mxu0 %v6673_v22 }
 0xa37   :  { %5364 = vmatpush1.bf16.msra.mxu0 %v6672_v23 }
 0xa3a   :  { %5382 = vmatmul.mubr.bf16.vlgmr.msra.gmra.mrb[48].mxu0 %v8480_v49 }
 0xa3b   :  { %5391 = vmatprep.mubr.bf16.mxu0 %v8967_v16 }
 0xa42   :  { %5392 = vmatmul.mubr.bf16.gmra.mrb[52].mxu0 %v8482_v27 }
 0xacd   :  { %v8501_v36 = vpop.f32.mrb[32].mxu0  ;;  %v8503_v4 = vpop.f32.mrb[24].mxu1 }
 0xace   :  { %v8505_v39 = vpop.f32.mrb[33].mxu0  ;;  %v8507_v0 = vpop.f32.mrb[25].mxu1  ;;  %v5527_v58 = vmul.f32 %v8501_v36, %v8501_v36  ;;  %v5533_v54 = vmul.f32 %v8503_v4, %v8503_v4 }
 0xacf   :  { %v5528_v49 = vmul.f32 %v8505_v39, %v8505_v39  ;;  %v5534_v16 = vmul.f32 %v8507_v0, %v8507_v0  ;;  %v8517_v27 = vpop.f32.mrb[34].mxu0  ;;  %v8519_v60 = vpop.f32.mrb[26].mxu1 }
 0xad0   :  { %v5455_v34 = vadd.f32 %v8517_v27, %v8501_v36  ;;  %v5535_v50 = vmul.f32 %v8517_v27, %v8517_v27  ;;  %v5509_v45 = vadd.f32 %v8519_v60, %v8503_v4  ;;  %v5541_v51 = vmul.f32 %v8519_v60, %v8519_v60  ;;  %v8529_v43 = vpop.f32.mrb[35].mxu0  ;;  %v8531_v15 = vpop.f32.mrb[27].mxu1 }
 0xad1   :  { %v5464_v8 = vadd.f32 %v8529_v43, %v8505_v39  ;;  %v5536_v42 = vmul.f32 %v8529_v43, %v8529_v43  ;;  %v5518_v59 = vadd.f32 %v8531_v15, %v8507_v0  ;;  %v5542_v5 = vmul.f32 %v8531_v15, %v8531_v15 }
 0xad2   :  { %v5559_v7 = vadd.f32 %v5535_v50, %v5527_v58  ;;  %v5613_v29 = vadd.f32 %v5541_v51, %v5533_v54 }
 0xad3   :  { %v5568_v21 = vadd.f32 %v5536_v42, %v5528_v49  ;;  %v5622_v19 = vadd.f32 %v5542_v5, %v5534_v16 }
 0xad5   :  { %v8541_v61 = vpop.f32.mrb[36].mxu0  ;;  %v8543_v44 = vpop.f32.mrb[28].mxu1 }
 0xad6   :  { %8983 = vst [vmem:[#allocation39_spill] sm:$0xff] %v8543_v44  ;;  %v5456_v2 = vadd.f32 %v5455_v34, %v8541_v61  ;;  %v5543_v26 = vmul.f32 %v8541_v61, %v8541_v61  ;;  %v5510_v25 = vadd.f32 %v5509_v45, %v8543_v44  ;;  %v5549_v40 = vmul.f32 %v8543_v44, %v8543_v44  ;;  %v8551_v14 = vpop.f32.mrb[37].mxu0  ;;  %v8553_v33 = vpop.f32.mrb[29].mxu1 }
 0xad7   :  { %8984 = vst [vmem:[#allocation29_spill] sm:$0xff] %v8553_v33  ;;  %v5465_v52 = vadd.f32 %v5464_v8, %v8551_v14  ;;  %v5544_v57 = vmul.f32 %v8551_v14, %v8551_v14  ;;  %v5519_v12 = vadd.f32 %v5518_v59, %v8553_v33  ;;  %v5550_v32 = vmul.f32 %v8553_v33, %v8553_v33  ;;  %v8561_v35 = vpop.f32.mrb[38].mxu0  ;;  %v8563_v30 = vpop.f32.mrb[30].mxu1 }
 0xad8   :  { %8985 = vst [vmem:[#allocation32_spill] sm:$0xff] %v8561_v35  ;;  %8986 = vst [vmem:[#allocation35_spill] sm:$0xff] %v8563_v30  ;;  %v5560_v37 = vadd.f32 %v5559_v7, %v5543_v26  ;;  %v5614_v13 = vadd.f32 %v5613_v29, %v5549_v40  ;;  %v5457_v48 = vadd.f32 %v5456_v2, %v8561_v35  ;;  %v8568_v6 = vpop.f32.mrb[39].mxu0  ;;  %v8570_v47 = vpop.f32.mrb[31].mxu1 }
 0xad9   :  { %v5551_v28 = vmul.f32 %v8561_v35, %v8561_v35  ;;  %8987 = vst [vmem:[#allocation37_spill] sm:$0xff] %v8568_v6  ;;  %8988 = vst [vmem:[#allocation31_spill] sm:$0xff] %v8570_v47  ;;  %v5569_v63 = vadd.f32 %v5568_v21, %v5544_v57  ;;  %v5623_v1 = vadd.f32 %v5622_v19, %v5550_v32 }
 0xada   :  { %v5511_v10 = vadd.f32 %v5510_v25, %v8563_v30  ;;  %v5557_v62 = vmul.f32 %v8563_v30, %v8563_v30  ;;  %v5458_v55 = vrot.slane %v5457_v48, 4  ;;  %v5466_v9 = vadd.f32 %v5465_v52, %v8568_v6 }
 0xadb   :  { %v5561_v3 = vadd.f32 %v5560_v37, %v5551_v28  ;;  %v5552_v24 = vmul.f32 %v8568_v6, %v8568_v6  ;;  %v5520_v53 = vadd.f32 %v5519_v12, %v8570_v47  ;;  %v5558_v17 = vmul.f32 %v8570_v47, %v8570_v47 }
 0xadc   :  { %v5512_v31 = vrot.slane %v5511_v10, 4  ;;  %v5615_v41 = vadd.f32 %v5614_v13, %v5557_v62  ;;  %v5459_v38 = vadd.f32 %v5458_v55, %v5457_v48  ;;  %v5467_v23 = vrot.slane %v5466_v9, 4 }
 0xadd   :  { %v5562_v22 = vrot.slane %v5561_v3, 4  ;;  %v5570_v58 = vadd.f32 %v5569_v63, %v5552_v24  ;;  %v5521_v16 = vrot.slane %v5520_v53, 4  ;;  %v5624_v34 = vadd.f32 %v5623_v1, %v5558_v17 }
 0xade   :  { %v5513_v54 = vadd.f32 %v5512_v31, %v5511_v10  ;;  %v5616_v49 = vrot.slane %v5615_v41, 4  ;;  %v5460_v50 = vrot.slane %v5459_v38, 2  ;;  %v5468_v51 = vadd.f32 %v5467_v23, %v5466_v9 }
 0xadf   :  { %v5563_v45 = vadd.f32 %v5562_v22, %v5561_v3  ;;  %v5571_v8 = vrot.slane %v5570_v58, 4  ;;  %v5522_v5 = vadd.f32 %v5521_v16, %v5520_v53  ;;  %v5625_v7 = vrot.slane %v5624_v34, 4 }
 0xae0   :  { %v5514_v42 = vrot.slane %v5513_v54, 2  ;;  %v5617_v59 = vadd.f32 %v5616_v49, %v5615_v41  ;;  %v5461_v29 = vadd.f32 %v5460_v50, %v5459_v38  ;;  %v5469_v19 = vrot.slane %v5468_v51, 2 }
 0xae1   :  { %v5564_v21 = vrot.slane %v5563_v45, 2  ;;  %v5572_v2 = vadd.f32 %v5571_v8, %v5570_v58  ;;  %v5523_v40 = vrot.slane %v5522_v5, 2  ;;  %v5626_v52 = vadd.f32 %v5625_v7, %v5624_v34 }
 0xae2   :  { %v5515_v26 = vadd.f32 %v5514_v42, %v5513_v54  ;;  %v5618_v25 = vrot.slane %v5617_v59, 2  ;;  %v5462_v57 = vrot.slane %v5461_v29, 1  ;;  %v5470_v32 = vadd.f32 %v5469_v19, %v5468_v51 }
 0xae3   :  { %v5565_v12 = vadd.f32 %v5564_v21, %v5563_v45  ;;  %v5573_v37 = vrot.slane %v5572_v2, 2  ;;  %v5524_v28 = vadd.f32 %v5523_v40, %v5522_v5  ;;  %v5627_v63 = vrot.slane %v5626_v52, 2 }
 0xae4   :  { %v5516_v13 = vrot.slane %v5515_v26, 1  ;;  %v5619_v48 = vadd.f32 %v5618_v25, %v5617_v59  ;;  %v5463_v1 = vadd.f32 %v5462_v57, %v5461_v29  ;;  %v5471_v62 = vrot.slane %v5470_v32, 1 }
 0xae5   :  { %v5566_v10 = vrot.slane %v5565_v12, 1  ;;  %v5574_v55 = vadd.f32 %v5573_v37, %v5572_v2  ;;  %v5525_v24 = vrot.slane %v5524_v28, 1  ;;  %v5628_v31 = vadd.f32 %v5627_v63, %v5626_v52 }
 0xae6   :  { %v5517_v3 = vadd.f32 %v5516_v13, %v5515_v26  ;;  %v5620_v9 = vrot.slane %v5619_v48, 1  ;;  %v8581_v53 = vmul.f32 0.03125, %v5463_v1  ;;  %v5472_v17 = vadd.f32 %v5471_v62, %v5470_v32 }
 0xae7   :  { %v5567_v41 = vadd.f32 %v5566_v10, %v5565_v12  ;;  %v5575_v38 = vrot.slane %v5574_v55, 1  ;;  %v5526_v58 = vadd.f32 %v5525_v24, %v5524_v28  ;;  %v5629_v54 = vrot.slane %v5628_v31, 1 }
 0xae8   :  { %v5621_v22 = vadd.f32 %v5620_v9, %v5619_v48  ;;  %v8583_v23 = vmul.f32 0.03125, %v5517_v3  ;;  %v5647_v16 = vmul.f32 %v8581_v53, %v8581_v53  ;;  %v8587_v50 = vmul.f32 0.03125, %v5472_v17 }
 0xae9   :  { %v5639_v49 = vmul.f32 0.03125, %v5567_v41  ;;  %v5576_v34 = vadd.f32 %v5575_v38, %v5574_v55  ;;  %v5630_v8 = vadd.f32 %v5629_v54, %v5628_v31  ;;  %v8591_v42 = vmul.f32 0.03125, %v5526_v58 }
 0xaea   :  { %v5645_v45 = vmul.f32 0.03125, %v5621_v22  ;;  %v5653_v51 = vmul.f32 %v8583_v23, %v8583_v23  ;;  %v5648_v7 = vmul.f32 %v8587_v50, %v8587_v50 }
 0xaeb   :  { %v5655_v59 = vsub.f32 %v5639_v49, %v5647_v16  ;;  %v5640_v5 = vmul.f32 0.03125, %v5576_v34  ;;  %v5646_v21 = vmul.f32 0.03125, %v5630_v8  ;;  %v5654_v19 = vmul.f32 %v8591_v42, %v8591_v42 }
 0xaec   :  { %v5661_v29 = vsub.f32 %v5645_v45, %v5653_v51 }
 0xaed   :  { %v5663_v2 = vmax.f32 %v5655_v59, 0.0  ;;  %v5656_v26 = vsub.f32 %v5640_v5, %v5648_v7  ;;  %v5662_v40 = vsub.f32 %v5646_v21, %v5654_v19  ;;  %v8597_v52 = vpop.f32.mrb[40].mxu0 }
 0xaee   :  { %v5669_v25 = vmax.f32 %v5661_v29, 0.0  ;;  %v8599_v32 = vpop.f32.mrb[41].mxu0  ;;  %v5529_v48 = vmul.f32 %v8597_v52, %v8597_v52 }
 0xaef   :  { %v5679_v57 = vadd.f32 1e-05, %v5663_v2  ;;  %v5664_v12 = vmax.f32 %v5656_v26, 0.0  ;;  %v5670_v13 = vmax.f32 %v5662_v40, 0.0  ;;  %v5530_v28 = vmul.f32 %v8599_v32, %v8599_v32  ;;  %v8605_v63 = vpop.f32.mrb[42].mxu0 }
 0xaf0   :  { %v5685_v37 = vadd.f32 1e-05, %v5669_v25  ;;  %v5473_v10 = vadd.f32 %v8605_v63, %v8597_v52  ;;  %v5537_v62 = vmul.f32 %v8605_v63, %v8605_v63  ;;  %v8611_v55 = vpop.f32.mrb[43].mxu0 }
 0xaf1   :  { %7373 = vrsqrt.f32 %v5679_v57  ;;  %v5680_v1 = vadd.f32 1e-05, %v5664_v12  ;;  %v5686_v3 = vadd.f32 1e-05, %v5670_v13  ;;  %v5482_v9 = vadd.f32 %v8611_v55, %v8599_v32 }
 0xaf2   :  { %7375 = vrsqrt.f32 %v5685_v37  ;;  %v5538_v24 = vmul.f32 %v8611_v55, %v8611_v55  ;;  %v5577_v31 = vadd.f32 %v5537_v62, %v5529_v48 }
 0xaf3   :  { %7377 = vrsqrt.f32 %v5680_v1 }
 0xaf4   :  { %7379 = vrsqrt.f32 %v5686_v3  ;;  %v5586_v41 = vadd.f32 %v5538_v24, %v5530_v28 }
 0xaf5   :  { %v8617_v17 = vpop.f32.mrb[44].mxu0 }
 0xaf6   :  { %8989 = vst [vmem:[#allocation34_spill] sm:$0xff] %v8617_v17  ;;  %v5474_v38 = vadd.f32 %v5473_v10, %v8617_v17  ;;  %v5545_v22 = vmul.f32 %v8617_v17, %v8617_v17  ;;  %v8622_v58 = vpop.f32.mrb[45].mxu0 }
 0xaf7   :  { %8990 = vst [vmem:[#allocation30_spill] sm:$0xff] %v8622_v58  ;;  %v5483_v54 = vadd.f32 %v5482_v9, %v8622_v58  ;;  %v5546_v49 = vmul.f32 %v8622_v58, %v8622_v58  ;;  %v8627_v16 = vpop.f32.mrb[46].mxu0 }
 0xaf8   :  { %8991 = vst [vmem:[#allocation33_spill] sm:$0xff] %v8627_v16  ;;  %v5578_v34 = vadd.f32 %v5577_v31, %v5545_v22  ;;  %v5475_v45 = vadd.f32 %v5474_v38, %v8627_v16  ;;  %v5553_v51 = vmul.f32 %v8627_v16, %v8627_v16  ;;  %v8632_v8 = vpop.f32.mrb[47].mxu0 }
 0xaf9   :  { %8992 = vst [vmem:[#allocation36_spill] sm:$0xff] %v8632_v8  ;;  %v5587_v59 = vadd.f32 %v5586_v41, %v5546_v49  ;;  %v5484_v5 = vadd.f32 %v5483_v54, %v8632_v8  ;;  %v5554_v7 = vmul.f32 %v8632_v8, %v8632_v8 }
 0xafa   :  { %v5476_v21 = vrot.slane %v5475_v45, 4  ;;  %v5579_v19 = vadd.f32 %v5578_v34, %v5553_v51 }
 0xafb   :  { %v8637_v29 = vpop.eup %7373  ;;  %v5485_v26 = vrot.slane %v5484_v5, 4  ;;  %v5588_v25 = vadd.f32 %v5587_v59, %v5554_v7 }
 0xafc   :  { %v8639_v2 = vpop.eup %7375  ;;  %v5477_v57 = vadd.f32 %v5476_v21, %v5475_v45  ;;  %v5580_v12 = vrot.slane %v5579_v19, 4 }
 0xafd   :  { %v8641_v40 = vpop.eup %7377  ;;  %v5486_v48 = vadd.f32 %v5485_v26, %v5484_v5  ;;  %v5589_v28 = vrot.slane %v5588_v25, 4 }
 0xafe   :  { %v8643_v37 = vpop.eup %7379  ;;  %v5478_v10 = vrot.slane %v5477_v57, 2  ;;  %v5581_v62 = vadd.f32 %v5580_v12, %v5579_v19 }
 0xaff   :  { %v5487_v3 = vrot.slane %v5486_v48, 2  ;;  %v5590_v9 = vadd.f32 %v5589_v28, %v5588_v25 }
 0xb00   :  { %v5479_v24 = vadd.f32 %v5478_v10, %v5477_v57  ;;  %v5582_v31 = vrot.slane %v5581_v62, 2 }
 0xb01   :  { %v5488_v41 = vadd.f32 %v5487_v3, %v5486_v48  ;;  %v5591_v38 = vrot.slane %v5590_v9, 2 }
 0xb02   :  { %v5480_v22 = vrot.slane %v5479_v24, 1  ;;  %v5583_v54 = vadd.f32 %v5582_v31, %v5581_v62 }
 0xb03   :  { %v5489_v49 = vrot.slane %v5488_v41, 1  ;;  %v5592_v34 = vadd.f32 %v5591_v38, %v5590_v9 }
 0xb04   :  { %v5481_v45 = vadd.f32 %v5480_v22, %v5479_v24  ;;  %v5584_v51 = vrot.slane %v5583_v54, 1 }
 0xb05   :  { %v5490_v59 = vadd.f32 %v5489_v49, %v5488_v41  ;;  %v5593_v5 = vrot.slane %v5592_v34, 1 }
 0xb06   :  { %v5585_v7 = vadd.f32 %v5584_v51, %v5583_v54  ;;  %v8649_v21 = vmul.f32 0.03125, %v5481_v45 }
 0xb07   :  { %v5594_v26 = vadd.f32 %v5593_v5, %v5592_v34  ;;  %v8651_v1 = vmul.f32 0.03125, %v5490_v59 }
 0xb08   :  { %v5641_v19 = vmul.f32 0.03125, %v5585_v7  ;;  %v5649_v25 = vmul.f32 %v8649_v21, %v8649_v21 }
 0xb09   :  { %v5642_v57 = vmul.f32 0.03125, %v5594_v26  ;;  %v5650_v12 = vmul.f32 %v8651_v1, %v8651_v1 }
 0xb0a   :  { %v5657_v48 = vsub.f32 %v5641_v19, %v5649_v25 }
 0xb0b   :  { %v5658_v28 = vsub.f32 %v5642_v57, %v5650_v12 }
 0xb0c   :  { %v5665_v10 = vmax.f32 %v5657_v48, 0.0 }
 0xb0d   :  { %v5666_v62 = vmax.f32 %v5658_v28, 0.0  ;;  %v8657_v3 = vpop.f32.mrb[48].mxu0 }
 0xb0e   :  { %v5681_v9 = vadd.f32 1e-05, %v5665_v10  ;;  %v8659_v24 = vpop.f32.mrb[49].mxu0  ;;  %v5531_v38 = vmul.f32 %v8657_v3, %v8657_v3 }
 0xb0f   :  { %v5682_v31 = vadd.f32 1e-05, %v5666_v62  ;;  %v8661_v41 = vpop.f32.mrb[50].mxu0  ;;  %v5532_v34 = vmul.f32 %v8659_v24, %v8659_v24 }
 0xb10   :  { %7381 = vrsqrt.f32 %v5681_v9  ;;  %v5491_v22 = vadd.f32 %v8661_v41, %v8657_v3  ;;  %v5539_v54 = vmul.f32 %v8661_v41, %v8661_v41  ;;  %v8669_v49 = vpop.f32.mrb[51].mxu0 }
 0xb11   :  { %7383 = vrsqrt.f32 %v5682_v31  ;;  %v5500_v45 = vadd.f32 %v8669_v49, %v8659_v24  ;;  %v5540_v51 = vmul.f32 %v8669_v49, %v8669_v49 }
 0xb12   :  { %v5595_v59 = vadd.f32 %v5539_v54, %v5531_v38 }
 0xb13   :  { %v5604_v5 = vadd.f32 %v5540_v51, %v5532_v34 }
 0xb15   :  { %v8677_v7 = vpop.f32.mrb[52].mxu0 }
 0xb16   :  { %v5492_v26 = vadd.f32 %v5491_v22, %v8677_v7  ;;  %v5547_v19 = vmul.f32 %v8677_v7, %v8677_v7  ;;  %v8682_v25 = vpop.f32.mrb[53].mxu0 }
 0xb17   :  { %v5501_v57 = vadd.f32 %v5500_v45, %v8682_v25  ;;  %v5548_v12 = vmul.f32 %v8682_v25, %v8682_v25  ;;  %v8687_v48 = vpop.f32.mrb[54].mxu0 }
 0xb18   :  { %v5596_v28 = vadd.f32 %v5595_v59, %v5547_v19  ;;  %v5493_v10 = vadd.f32 %v5492_v26, %v8687_v48  ;;  %v5555_v62 = vmul.f32 %v8687_v48, %v8687_v48  ;;  %v8692_v9 = vpop.f32.mrb[55].mxu0 }
 0xb19   :  { %v5605_v31 = vadd.f32 %v5604_v5, %v5548_v12  ;;  %v5502_v38 = vadd.f32 %v5501_v57, %v8692_v9  ;;  %v5556_v22 = vmul.f32 %v8692_v9, %v8692_v9  ;;  %v8993_v5 = vcombine.low %v8637_v29, %v8641_v40 }
 0xb1a   :  { %v7382_v54 = vpop.eup %7381  ;;  %v5494_v34 = vrot.slane %v5493_v10, 4  ;;  %v5597_v45 = vadd.f32 %v5596_v28, %v5555_v62 }
 0xb1b   :  { %v7384_v51 = vpop.eup %7383  ;;  %v5503_v13 = vrot.slane %v5502_v38, 4  ;;  %v5606_v47 = vadd.f32 %v5605_v31, %v5556_v22  ;;  %v5713_v12 = vrot.slane %v8993_v5, %v7946_v56 }
 0xb1c   :  { %v5704_v59 = vcombine.low %v7382_v54, %v7384_v51  ;;  %v5495_v19 = vadd.f32 %v5494_v34, %v5493_v10  ;;  %v5598_v26 = vrot.slane %v5597_v45, 4 }
 0xb1d   :  { %v5504_v30 = vadd.f32 %v5503_v13, %v5502_v38  ;;  %v5607_v8 = vrot.slane %v5606_v47, 4 }
 0xb1e   :  { %v5720_v57 = vrot.slane %v5704_v59, %v7946_v56  ;;  %v5496_v16 = vrot.slane %v5495_v19, 2  ;;  %v5599_v6 = vadd.f32 %v5598_v26, %v5597_v45 }
 0xb1f   :  { %v5505_v35 = vrot.slane %v5504_v30, 2  ;;  %v5608_v33 = vadd.f32 %v5607_v8, %v5606_v47 }
 0xb20   :  { %v5735_v28 = vcombine.low %v5713_v12, %v5720_v57  ;;  %v5497_v62 = vadd.f32 %v5496_v16, %v5495_v19  ;;  %v5600_v44 = vrot.slane %v5599_v6, 2 }
 0xb21   :  { %v5506_v31 = vadd.f32 %v5505_v35, %v5504_v30  ;;  %v5609_v22 = vrot.slane %v5608_v33, 2 }
 0xb22   :  { %v5498_v10 = vrot.slane %v5497_v62, 1  ;;  %v5601_v54 = vadd.f32 %v5600_v44, %v5599_v6 }
 0xb23   :  { %v5507_v13 = vrot.slane %v5506_v31, 1  ;;  %v5610_v38 = vadd.f32 %v5609_v22, %v5608_v33  ;;  %v6676_v22 = vld [vmem:[%s8870_s11 + $0x7] ss:$8 sm:$0xf] }
 0xb24   :  { %v5499_v34 = vadd.f32 %v5498_v10, %v5497_v62  ;;  %v5602_v51 = vrot.slane %v5601_v54, 1  ;;  %v8994_v62 = vcombine.low %v8639_v2, %v8643_v37  ;;  %v6677_v10 = vld [vmem:[%s8870_s11 + $0x7] ss:$8 sm:$0xf0]  ;;  %s7525_s11 = smov [#allocation10]  }
 0xb25   :  { %v5508_v58 = vadd.f32 %v5507_v13, %v5506_v31  ;;  %v5611_v29 = vrot.slane %v5610_v38, 1  ;;  %v5743_v13 = vrot.slane %v5735_v28, %v7946_v56  ;;  %v8720_v2 = vld [vmem:[%s8871_s12 + $0x7] ss:$8 sm:$0xf] }
 0xb26   :  { %v5603_v40 = vadd.f32 %v5602_v51, %v5601_v54  ;;  %v5635_v5 = vmul.f32 0.03125, %v5499_v34  ;;  %v7524_v51 = vmov 1983009808   ;;  %v8725_v37 = vld [vmem:[%s8871_s12 + $0x7] ss:$8 sm:$0xf0] }
 0xb27   :  { %v5612_v59 = vadd.f32 %v5611_v29, %v5610_v38  ;;  %v5636_v17 = vmul.f32 0.03125, %v5508_v58  ;;  %v5734_v58 = vrot.slane %v8994_v62, %v7946_v56  ;;  %v5674_v38 = vor.u32 %v6677_v10, %v6676_v22  ;;  %s6192_s12 = sshll.u32 %s7525_s11, 4  ;;  %s6193_s12 = int_to_ptr.vmem [resolvable:$true] %s6192_s12 }
 0xb28   :  { %v5643_v45 = vmul.f32 0.03125, %v5603_v40  ;;  %v5651_v26 = vmul.f32 %v5635_v5, %v5635_v5  ;;  %v8715_v29 = vunpack.c.l.s4 %v7524_v51  ;;  %v5678_v28 = vor.u32 %v8725_v37, %v8720_v2  ;;  %s7477_s7 = scalar_lea.vmem %s6193_s12, 256  ;;  %p7482_p5 = scmp.lt.s32.totalorder %s6193_s12, %s6193_s12 }
 0xb29   :  { %v5644_v47 = vmul.f32 0.03125, %v5612_v59  ;;  %v5652_v8 = vmul.f32 %v5636_v17, %v5636_v17  ;;  %p7478_p4 = scmp.ne.s32.totalorder %s6193_s12, %s7477_s7  ;;  %p7483_p6 = scmp.lt.s32.totalorder %s7477_s7, %s7477_s7 }
 0xb2a   :  { %v5659_v16 = vsub.f32 %v5643_v45, %v5651_v26  ;;  %v6099_v45 = vunpack.c.0.s8 %v8715_v29 }
 0xb2b   :  { %v5660_v19 = vsub.f32 %v5644_v47, %v5652_v8  ;;  %p7484_p7 = por %p7483_p6, %p7482_p5 }
 0xb2c   :  { %v5667_v35 = vmax.f32 %v5659_v16, 0.0 }
 0xb2d   :  { %v5668_v30 = vmax.f32 %v5660_v19, 0.0  ;;  %v8995_v19 = vld [vmem:[#allocation40_spill] sm:$0xff]  ;;  %p7485_p8 = pnand %p7484_p7, %p7478_p4 }
 0xb2e   :  { %v5683_v12 = vadd.f32 1e-05, %v5667_v35 }
 0xb2f   :  { %v5684_v44 = vadd.f32 1e-05, %v5668_v30  ;;  %v8996_v30 = vld [vmem:[#allocation41_spill] sm:$0xff] }
 0xb30   :  { %7385 = vrsqrt.f32 %v5683_v12 }
 0xb31   :  { %7387 = vrsqrt.f32 %v5684_v44  ;;  %v8997_v44 = vld [vmem:[#allocation42_spill] sm:$0xff] }
 0xb3a   :  { %v7386_v33 = vpop.eup %7385 }
 0xb3b   :  { %v7388_v6 = vpop.eup %7387 }
 0xb3c   :  { %v5705_v57 = vcombine.low %v7386_v33, %v7388_v6  ;;  %v8998_v6 = vld [vmem:[#allocation43_spill] sm:$0xff] }
 0xb3e   :  { %v5727_v31 = vrot.slane %v5705_v57, %v7946_v56 }
 0xb40   :  { %v5736_v54 = vcombine.low %v5727_v31, %v5734_v58 }
 0xb42   :  { %v5750_v34 = vrot.slane %v5736_v54, %v7946_v56 }
 0xb44   :  { %v5751_v40 = vcombine.low %v5743_v13, %v5750_v34 }
 0xb46   :  { %v5753_v59 = vmul.f32 %v5751_v40, %v5674_v38 }
 0xb48   :  { %v5758_v26 = vrot.slane %v5753_v59, %v7704_v18  ;;  %v5762_v47 = vrot.slane %v5753_v59, %v8966_v46  ;;  %v5766_v8 = vrot.slane %v5753_v59, %v7710_v20  ;;  %v5770_v16 = vrot.slane %v5753_v59, %v8032_v11 }
 0xb49   :  { %v5774_v35 = vrot.slane %v5753_v59, %v8995_v19  ;;  %v5778_v12 = vrot.slane %v5753_v59, %v8996_v30  ;;  %v5782_v33 = vrot.slane %v5753_v59, %v8997_v44  ;;  %v5786_v57 = vrot.slane %v5753_v59, %v8998_v6 }
 0xb4a   :  { %v5795_v62 = vmul.f32 %v5758_v26, %v8581_v53  ;;  %v5796_v58 = vmul.f32 %v5762_v47, %v8587_v50  ;;  %v5797_v31 = vmul.f32 %v5766_v8, %v8649_v21  ;;  %v5798_v22 = vmul.f32 %v5770_v16, %v8651_v1 }
 0xb4b   :  { %v5799_v10 = vmul.f32 %v5774_v35, %v5635_v5  ;;  %v5800_v54 = vmul.f32 %v5778_v12, %v5636_v17  ;;  %v5801_v13 = vmul.f32 %v5782_v33, %v8583_v23  ;;  %v5802_v38 = vmul.f32 %v5786_v57, %v8591_v42 }
 0xb4c   :  { %v5811_v34 = vcombine.low %v5795_v62, %v5796_v58  ;;  %v5812_v51 = vcombine.low %v5797_v31, %v5798_v22  ;;  %v5867_v2 = vmul.f32 %v5778_v12, %v8659_v24  ;;  %v5875_v37 = vmul.f32 %v5778_v12, %v8669_v49 }
 0xb4d   :  { %v5813_v40 = vcombine.low %v5799_v10, %v5800_v54  ;;  %v5814_v53 = vcombine.low %v5801_v13, %v5802_v38  ;;  %v5882_v50 = vmul.f32 %v5774_v35, %v8677_v7  ;;  %v5883_v21 = vmul.f32 %v5778_v12, %v8682_v25  ;;  %v8999_v54 = vld [vmem:[#allocation34_spill] sm:$0xff] }
 0xb4e   :  { %v5821_v1 = vrot.slane %v5811_v34, %v7946_v56  ;;  %v5828_v17 = vrot.slane %v5812_v51, %v7946_v56  ;;  %v5890_v23 = vmul.f32 %v5774_v35, %v8687_v48  ;;  %v5891_v42 = vmul.f32 %v5778_v12, %v8692_v9  ;;  %v9000_v38 = vld [vmem:[#allocation30_spill] sm:$0xff] }
 0xb4f   :  { %v5835_v5 = vrot.slane %v5813_v40, %v7946_v56  ;;  %v5842_v24 = vrot.slane %v5814_v53, %v7946_v56  ;;  %v5862_v49 = vmul.f32 %v5758_v26, %v8501_v36  ;;  %v5863_v59 = vmul.f32 %v5762_v47, %v8505_v39 }
 0xb50   :  { %v5843_v62 = vcombine.low %v5821_v1, %v5828_v17  ;;  %v5864_v7 = vmul.f32 %v5766_v8, %v8597_v52  ;;  %v5865_v25 = vmul.f32 %v5770_v16, %v8599_v32  ;;  %v5866_v58 = vmul.f32 %v5774_v35, %v8657_v3 }
 0xb51   :  { %v5844_v31 = vcombine.low %v5835_v5, %v5842_v24  ;;  %v5868_v48 = vmul.f32 %v5782_v33, %v8503_v4  ;;  %v5869_v9 = vmul.f32 %v5786_v57, %v8507_v0  ;;  %v5870_v12 = vmul.f32 %v5758_v26, %v8517_v27  ;;  %v9008_v24 = vld [vmem:[#allocation31_spill] sm:$0xff] }
 0xb52   :  { %v5851_v22 = vrot.slane %v5843_v62, %v7946_v56  ;;  %v5871_v36 = vmul.f32 %v5762_v47, %v8529_v43  ;;  %v5872_v39 = vmul.f32 %v5766_v8, %v8605_v63  ;;  %v5873_v10 = vmul.f32 %v5770_v16, %v8611_v55  ;;  %v9001_v63 = vld [vmem:[#allocation39_spill] sm:$0xff]  ;;  %v9002_v55 = vld [vmem:[#allocation29_spill] sm:$0xff] }
 0xb53   :  { %v5858_v52 = vrot.slane %v5844_v31, %v7946_v56  ;;  %v5874_v32 = vmul.f32 %v5774_v35, %v8661_v41  ;;  %v5876_v3 = vmul.f32 %v5782_v33, %v8519_v60  ;;  %v5877_v4 = vmul.f32 %v5786_v57, %v8531_v15  ;;  %v9003_v56 = vld [vmem:[#allocation32_spill] sm:$0xff]  ;;  %v9004_v41 = vld [vmem:[#allocation37_spill] sm:$0xff] }
 0xb54   :  { %v5878_v0 = vmul.f32 %v5758_v26, %v8541_v61  ;;  %v5879_v27 = vmul.f32 %v5762_v47, %v8551_v14  ;;  %v5880_v13 = vmul.f32 %v5766_v8, %v8999_v54  ;;  %v5881_v43 = vmul.f32 %v5770_v16, %v9000_v38  ;;  %v9005_v60 = vld [vmem:[#allocation33_spill] sm:$0xff]  ;;  %v9006_v15 = vld [vmem:[#allocation36_spill] sm:$0xff]  ;;  %v9007_v61 = vld [vmem:[#allocation35_spill] sm:$0xff] }
 0xb55   :  { %v5859_v34 = vcombine.low %v5851_v22, %v5858_v52  ;;  %v5884_v51 = vmul.f32 %v5782_v33, %v9001_v63  ;;  %v5885_v40 = vmul.f32 %v5786_v57, %v9002_v55  ;;  %v5886_v53 = vmul.f32 %v5758_v26, %v9003_v56  ;;  %v9009_v31 = vld [vmem:[#allocation17_spill] sm:$0xff] }
 0xb56   :  { %v5887_v35 = vmul.f32 %v5762_v47, %v9004_v41  ;;  %v5888_v1 = vmul.f32 %v5766_v8, %v9005_v60  ;;  %v5889_v17 = vmul.f32 %v5770_v16, %v9006_v15  ;;  %v5892_v5 = vmul.f32 %v5782_v33, %v9007_v61 }
 0xb57   :  { %v5861_v14 = vsub.f32 %v5678_v28, %v5859_v34  ;;  %v5893_v62 = vmul.f32 %v5786_v57, %v9008_v24  ;;  %v8785_v22 = vsub.s32 %v6099_v45, %v9009_v31 }
 0xb59   :  { %v5914_v52 = vrot.slane %v5861_v14, %v8995_v19  ;;  %v5918_v26 = vrot.slane %v5861_v14, %v8996_v30  ;;  %v5898_v47 = vrot.slane %v5861_v14, %v7704_v18  ;;  %v5902_v8 = vrot.slane %v5861_v14, %v8966_v46 }
 0xb5a   :  { %v5906_v16 = vrot.slane %v5861_v14, %v7710_v20  ;;  %v5910_v33 = vrot.slane %v5861_v14, %v8032_v11  ;;  %v5922_v28 = vrot.slane %v5861_v14, %v8997_v44  ;;  %v5926_v57 = vrot.slane %v5861_v14, %v8998_v6 }
 0xb5b   :  { %v5940_v54 = vadd.f32 %v5918_v26, %v5867_v2  ;;  %v5948_v29 = vadd.f32 %v5918_v26, %v5875_v37  ;;  %v5955_v45 = vadd.f32 %v5914_v52, %v5882_v50  ;;  %v5956_v38 = vadd.f32 %v5918_v26, %v5883_v21 }
 0xb5c   :  { %v5963_v34 = vadd.f32 %v5914_v52, %v5890_v23  ;;  %v5964_v19 = vadd.f32 %v5918_v26, %v5891_v42  ;;  %v5935_v63 = vadd.f32 %v5898_v47, %v5862_v49  ;;  %v5936_v30 = vadd.f32 %v5902_v8, %v5863_v59 }
 0xb5d   :  { %v6002_v55 = vadd.f32 %v5948_v29, %v5940_v54  ;;  %v5937_v18 = vadd.f32 %v5906_v16, %v5864_v7  ;;  %v5938_v56 = vadd.f32 %v5910_v33, %v5865_v25  ;;  %v5939_v46 = vadd.f32 %v5914_v52, %v5866_v58 }
 0xb5e   :  { %v6051_v41 = vadd.f32 %v5963_v34, %v5955_v45  ;;  %v6058_v20 = vadd.f32 %v5964_v19, %v5956_v38  ;;  %v5941_v60 = vadd.f32 %v5922_v28, %v5868_v48  ;;  %v8795_v11 = vadd.f32 %v5926_v57, %v5869_v9 }
 0xb5f   :  { %v6003_v44 = vrot.slane %v6002_v55, 4  ;;  %v5943_v15 = vadd.f32 %v5898_v47, %v5870_v12  ;;  %v5944_v6 = vadd.f32 %v5902_v8, %v5871_v36  ;;  %v5945_v2 = vadd.f32 %v5906_v16, %v5872_v39 }
 0xb60   :  { %v6052_v37 = vrot.slane %v6051_v41, 4  ;;  %v6059_v50 = vrot.slane %v6058_v20, 4  ;;  %v5946_v21 = vadd.f32 %v5910_v33, %v5873_v10  ;;  %v5947_v23 = vadd.f32 %v5914_v52, %v5874_v32 }
 0xb61   :  { %v6004_v42 = vadd.f32 %v6003_v44, %v6002_v55  ;;  %v5949_v49 = vadd.f32 %v5922_v28, %v5876_v3  ;;  %v5950_v59 = vadd.f32 %v5926_v57, %v5877_v4  ;;  %v5951_v61 = vadd.f32 %v5898_v47, %v5878_v0 }
 0xb62   :  { %v6053_v7 = vadd.f32 %v6052_v37, %v6051_v41  ;;  %v6060_v25 = vadd.f32 %v6059_v50, %v6058_v20  ;;  %v8797_v58 = vadd.f32 %v5902_v8, %v5879_v27  ;;  %v8799_v14 = vadd.f32 %v5906_v16, %v5880_v13 }
 0xb63   :  { %v8801_v48 = vadd.f32 %v5910_v33, %v5881_v43  ;;  %v8803_v9 = vadd.f32 %v5922_v28, %v5884_v51  ;;  %v8805_v12 = vadd.f32 %v5926_v57, %v5885_v40  ;;  %v5959_v36 = vadd.f32 %v5898_v47, %v5886_v53 }
 0xb64   :  { %v6054_v39 = vrot.slane %v6053_v7, 2  ;;  %v6061_v10 = vrot.slane %v6060_v25, 2  ;;  %v5960_v32 = vadd.f32 %v5902_v8, %v5887_v35  ;;  %v8807_v24 = vadd.f32 %v5906_v16, %v5888_v1 }
 0xb65   :  { %v8809_v3 = vadd.f32 %v5910_v33, %v5889_v17  ;;  %v8811_v4 = vadd.f32 %v5922_v28, %v5892_v5  ;;  %v8813_v0 = vadd.f32 %v5926_v57, %v5893_v62  ;;  %v5967_v27 = vadd.f32 %v5943_v15, %v5935_v63 }
 0xb66   :  { %v6055_v13 = vadd.f32 %v6054_v39, %v6053_v7  ;;  %v6062_v43 = vadd.f32 %v6061_v10, %v6060_v25  ;;  %v5974_v31 = vadd.f32 %v5944_v6, %v5936_v30  ;;  %v5981_v51 = vadd.f32 %v5945_v2, %v5937_v18 }
 0xb67   :  { %v5968_v52 = vrot.slane %v5967_v27, 4  ;;  %v5988_v40 = vadd.f32 %v5946_v21, %v5938_v56  ;;  %v5995_v26 = vadd.f32 %v5947_v23, %v5939_v46  ;;  %v6005_v53 = vrot.slane %v6004_v42, 2 }
 0xb68   :  { %v6056_v47 = vrot.slane %v6055_v13, 1  ;;  %v6063_v54 = vrot.slane %v6062_v43, 1  ;;  %v5975_v35 = vrot.slane %v5974_v31, 4  ;;  %v5982_v1 = vrot.slane %v5981_v51, 4 }
 0xb69   :  { %v5969_v8 = vadd.f32 %v5968_v52, %v5967_v27  ;;  %v5989_v17 = vrot.slane %v5988_v40, 4  ;;  %v5996_v16 = vrot.slane %v5995_v26, 4  ;;  %v6006_v5 = vadd.f32 %v6005_v53, %v6004_v42 }
 0xb6a   :  { %v8815_v33 = vadd.f32 %v6056_v47, %v6055_v13  ;;  %v8817_v62 = vadd.f32 %v6063_v54, %v6062_v43  ;;  %v5976_v28 = vadd.f32 %v5975_v35, %v5974_v31  ;;  %v5983_v57 = vadd.f32 %v5982_v1, %v5981_v51 }
 0xb6b   :  { %v5970_v29 = vrot.slane %v5969_v8, 2  ;;  %v5990_v45 = vadd.f32 %v5989_v17, %v5988_v40  ;;  %v5997_v38 = vadd.f32 %v5996_v16, %v5995_v26  ;;  %v6007_v34 = vrot.slane %v6006_v5, 1 }
 0xb6c   :  { %v6146_v19 = vcombine.low %v8815_v33, %v8817_v62  ;;  %v5977_v63 = vrot.slane %v5976_v28, 2  ;;  %v5984_v30 = vrot.slane %v5983_v57, 2  ;;  %v6009_v55 = vadd.f32 %v5949_v49, %v5941_v60 }
 0xb6d   :  { %v5971_v18 = vadd.f32 %v5970_v29, %v5969_v8  ;;  %v5991_v56 = vrot.slane %v5990_v45, 2  ;;  %v5998_v46 = vrot.slane %v5997_v38, 2  ;;  %v8821_v41 = vadd.f32 %v6007_v34, %v6006_v5 }
 0xb6e   :  { %v5978_v20 = vadd.f32 %v5977_v63, %v5976_v28  ;;  %v5985_v44 = vadd.f32 %v5984_v30, %v5983_v57  ;;  %v6010_v15 = vrot.slane %v6009_v55, 4  ;;  %v6016_v6 = vadd.f32 %v5950_v59, %v8795_v11 }
 0xb6f   :  { %v5972_v2 = vrot.slane %v5971_v18, 1  ;;  %v5992_v37 = vadd.f32 %v5991_v56, %v5990_v45  ;;  %v5999_v50 = vadd.f32 %v5998_v46, %v5997_v38  ;;  %v6023_v21 = vadd.f32 %v5959_v36, %v5951_v61 }
 0xb70   :  { %v5979_v23 = vrot.slane %v5978_v20, 1  ;;  %v5986_v42 = vrot.slane %v5985_v44, 1  ;;  %v6011_v7 = vadd.f32 %v6010_v15, %v6009_v55  ;;  %v6017_v25 = vrot.slane %v6016_v6, 4 }
 0xb71   :  { %v5973_v39 = vadd.f32 %v5972_v2, %v5971_v18  ;;  %v5993_v60 = vrot.slane %v5992_v37, 1  ;;  %v6000_v49 = vrot.slane %v5999_v50, 1  ;;  %v6024_v10 = vrot.slane %v6023_v21, 4 }
 0xb72   :  { %v5980_v27 = vadd.f32 %v5979_v23, %v5978_v20  ;;  %v5987_v13 = vadd.f32 %v5986_v42, %v5985_v44  ;;  %v6012_v43 = vrot.slane %v6011_v7, 2  ;;  %v6018_v31 = vadd.f32 %v6017_v25, %v6016_v6 }
 0xb73   :  { %v5994_v51 = vadd.f32 %v5993_v60, %v5992_v37  ;;  %v6001_v52 = vadd.f32 %v6000_v49, %v5999_v50  ;;  %v6025_v40 = vadd.f32 %v6024_v10, %v6023_v21  ;;  %v6030_v11 = vadd.f32 %v5960_v32, %v8797_v58 }
 0xb74   :  { %v6013_v59 = vadd.f32 %v6012_v43, %v6011_v7  ;;  %v6019_v26 = vrot.slane %v6018_v31, 2  ;;  %v6037_v61 = vadd.f32 %v8807_v24, %v8799_v14  ;;  %v6044_v36 = vadd.f32 %v8809_v3, %v8801_v48 }
 0xb75   :  { %v6026_v53 = vrot.slane %v6025_v40, 2  ;;  %v6031_v47 = vrot.slane %v6030_v11, 4  ;;  %v6065_v54 = vadd.f32 %v8811_v4, %v8803_v9  ;;  %v6072_v35 = vadd.f32 %v8813_v0, %v8805_v12 }
 0xb76   :  { %v6014_v1 = vrot.slane %v6013_v59, 1  ;;  %v6020_v8 = vadd.f32 %v6019_v26, %v6018_v31  ;;  %v6038_v17 = vrot.slane %v6037_v61, 4  ;;  %v6045_v58 = vrot.slane %v6044_v36, 4 }
 0xb77   :  { %v6027_v32 = vadd.f32 %v6026_v53, %v6025_v40  ;;  %v6032_v16 = vadd.f32 %v6031_v47, %v6030_v11  ;;  %v6066_v5 = vrot.slane %v6065_v54, 4  ;;  %v6073_v28 = vrot.slane %v6072_v35, 4 }
 0xb78   :  { %v6015_v14 = vadd.f32 %v6014_v1, %v6013_v59  ;;  %v6021_v24 = vrot.slane %v6020_v8, 1  ;;  %v6039_v57 = vadd.f32 %v6038_v17, %v6037_v61  ;;  %v6046_v48 = vadd.f32 %v6045_v58, %v6044_v36 }
 0xb79   :  { %v6028_v3 = vrot.slane %v6027_v32, 1  ;;  %v6033_v29 = vrot.slane %v6032_v16, 2  ;;  %v6067_v45 = vadd.f32 %v6066_v5, %v6065_v54  ;;  %v6074_v38 = vadd.f32 %v6073_v28, %v6072_v35 }
 0xb7a   :  { %v6022_v9 = vadd.f32 %v6021_v24, %v6020_v8  ;;  %v6040_v4 = vrot.slane %v6039_v57, 2  ;;  %v6047_v34 = vrot.slane %v6046_v48, 2  ;;  %v6095_v12 = vcombine.low %v5973_v39, %v5980_v27 }
 0xb7b   :  { %v6029_v0 = vadd.f32 %v6028_v3, %v6027_v32  ;;  %v6034_v63 = vadd.f32 %v6033_v29, %v6032_v16  ;;  %v6068_v30 = vrot.slane %v6067_v45, 2  ;;  %v6075_v55 = vrot.slane %v6074_v38, 2 }
 0xb7c   :  { %v6041_v18 = vadd.f32 %v6040_v4, %v6039_v57  ;;  %v6048_v56 = vadd.f32 %v6047_v34, %v6046_v48  ;;  %v6096_v46 = vcombine.low %v5987_v13, %v5994_v51  ;;  %v6103_v20 = vrot.slane %v6095_v12, %v8785_v22 }
 0xb7d   :  { %v6035_v44 = vrot.slane %v6034_v63, 1  ;;  %v6069_v15 = vadd.f32 %v6068_v30, %v6067_v45  ;;  %v6076_v6 = vadd.f32 %v6075_v55, %v6074_v38  ;;  %v6112_v2 = vcombine.low %v6001_v52, %v8821_v41 }
 0xb7e   :  { %v6042_v37 = vrot.slane %v6041_v18, 1  ;;  %v6049_v50 = vrot.slane %v6048_v56, 1  ;;  %v6110_v21 = vrot.slane %v6096_v46, %v8785_v22  ;;  %v6113_v23 = vcombine.low %v6015_v14, %v6022_v9 }
 0xb7f   :  { %v6036_v42 = vadd.f32 %v6035_v44, %v6034_v63  ;;  %v6070_v7 = vrot.slane %v6069_v15, 1  ;;  %v6077_v25 = vrot.slane %v6076_v6, 1  ;;  %v6120_v39 = vrot.slane %v6112_v2, %v8785_v22 }
 0xb80   :  { %v6043_v60 = vadd.f32 %v6042_v37, %v6041_v18  ;;  %v6050_v49 = vadd.f32 %v6049_v50, %v6048_v56  ;;  %v6111_v10 = vcombine.low %v6103_v20, %v6110_v21  ;;  %v6127_v27 = vrot.slane %v6113_v23, %v8785_v22 }
 0xb81   :  { %v6071_v13 = vadd.f32 %v6070_v7, %v6069_v15  ;;  %v6078_v43 = vadd.f32 %v6077_v25, %v6076_v6  ;;  %v6129_v31 = vcombine.low %v6029_v0, %v6036_v42  ;;  %v6154_v11 = vrot.slane %v6146_v19, %v8785_v22 }
 0xb82   :  { %v6128_v51 = vcombine.low %v6120_v39, %v6127_v27  ;;  %v6130_v41 = vcombine.low %v6043_v60, %v6050_v49 }
 0xb83   :  { %v6137_v52 = vrot.slane %v6129_v31, %v8785_v22  ;;  %v6147_v40 = vcombine.low %v6071_v13, %v6078_v43 }
 0xb84   :  { %v6144_v59 = vrot.slane %v6130_v41, %v8785_v22 }
 0xb85   :  { %v6161_v26 = vrot.slane %v6147_v40, %v8785_v22 }
 0xb86   :  { %v6145_v61 = vcombine.low %v6137_v52, %v6144_v59 }
 0xb87   :  { %v6162_v36 = vcombine.low %v6154_v11, %v6161_v26 }
 0xb88   :  { %v6167_v53 = vrot.slane %v6145_v61, 7 }
 0xb89   :  { %v6177_v47 = vrot.slane %v6162_v36, 7 }
 0xb8a   :  { %v6168_v54 = vsel %vm1940_vm1, %v6167_v53, %v6111_v10 }
 0xb8b   :  { %v6170_v35 = vsel %vm6169_vm5, %v6167_v53, %v6168_v54  ;;  %v6178_v1 = vsel %vm1940_vm1, %v6177_v47, %v6128_v51 }
 0xb8c   :  { %v6172_v33 = vsel %vm6171_vm6, %v6167_v53, %v6170_v35  ;;  %v6179_v62 = vsel %vm6169_vm5, %v6177_v47, %v6178_v1 }
 0xb8d   :  { %v6174_v19 = vsel %vm6173_vm7, %v6167_v53, %v6172_v33  ;;  %v6180_v8 = vsel %vm6171_vm6, %v6177_v47, %v6179_v62 }
 0xb8e   :  { %v6181_v22 = vsel %vm6173_vm7, %v6177_v47, %v6180_v8  ;;  %6184 = vst [vmem:[#allocation10] sm:$0xff] %v6174_v19 }
 0xb8f   :  { %6185 = vst [vmem:[#allocation10 + $0x8] sm:$0xff] %v6181_v22 }
 0xb90   :  { %7488 = shalt.err (!%p7485_p8)
}
 0xb91   :  { %s7489_s1 = scalar_lea.hbm %s8872_s13, 256 }
 0xb92   :  { %p7490_p9 = scmp.ne.s32.totalorder %s8872_s13, %s7489_s1  ;;  %p7493_p10 = scmp.lt.u32.totalorder %s7489_s1, %s8872_s13 }
 0xb94   :  { %p7495_p11 = pnand %p7493_p10, %p7490_p9 }
 0xb96   :  { %7498 = shalt.err (!%p7495_p11)
}
 0xb97   :  { %6195 = dma.vmem_to_hbm [thread:$0]  %s6193_s12, 256, %s8872_s13, [#allocation4]  }
 0xb98   :  { %7505 = dma.done.wait [#allocation4], 256  }
 0xb99   :  { %7506 = vsyncadd [#allocation4], 4294967040 }
 0xb9a   :  { %6203 = vsyncpa [#allocation3], 1 }
 0xb9b   :  { %6204 = vsyncpa [#allocation6], 1 }
 0xb9c   :  { %6205 = vsyncpa [#allocation9], 1 }
 0xb9d   :  { %6206 = vsyncpa [#allocation4], 1 }

</bundles_post_ra>
